<compile_context>
chip_gen: v7x
topology: tpu7x:2x2x1
jax: 0.10.0
libtpu: 0.0.40
codegen_flags: <defaults>
</compile_context>

<pallas_src>
import functools

import jax
import jax.numpy as jnp
from jax import lax
from jax.experimental import pallas as pl
from jax.experimental.pallas import tpu as pltpu

EPS = 1e-5
CH = (3, 8, 16, 32)                      # image / level-1 / level-2 / level-3
_VMEM = pl.BlockSpec(memory_space=pltpu.MemorySpace.VMEM)
_SMEM = pl.BlockSpec(memory_space=pltpu.MemorySpace.SMEM)


# --------------------------------------------------------------------------
# In-kernel helpers: native-layout channel statistics via 0/1 pooling matmuls
# --------------------------------------------------------------------------
def _lane_pool(woc, c, transpose=False):
    """(Wo*C, C) 0/1 pooling matrix (or its transpose).  C is a power of two
    here, so the modulo is a bitwise AND on the lane iota."""
    shape = (c, woc) if transpose else (woc, c)
    j = lax.broadcasted_iota(jnp.int32, shape, 1 if transpose else 0)
    k = lax.broadcasted_iota(jnp.int32, shape, 0 if transpose else 1)
    jm = jnp.bitwise_and(j, c - 1) if (c & (c - 1)) == 0 else j % c
    return (jm == k).astype(jnp.float32)


def _row_pool(b, ho, transpose=False):
    """(B, B*Ho) 0/1 per-image row pooling matrix (or its transpose)."""
    shape = (b * ho, b) if transpose else (b, b * ho)
    j = lax.broadcasted_iota(jnp.int32, shape, 0 if transpose else 1)
    i = lax.broadcasted_iota(jnp.int32, shape, 1 if transpose else 0)
    return ((j >= i * ho) & (j < (i + 1) * ho)).astype(jnp.float32)


def _expand(a, b, ho, wo, c):
    """(B, C) per-image/channel values -> (B*Ho, Wo*C) native-layout map."""
    lane = jnp.dot(a, _lane_pool(wo * c, c, transpose=True),
                   preferred_element_type=jnp.float32)
    return jnp.dot(_row_pool(b, ho, transpose=True), lane,
                   preferred_element_type=jnp.float32)


def _channel_stats(x, b, ho, wo, c):
    """Per-(image, channel) spatial mean / biased variance of x: (B*Ho, Wo*C).
    TODO(synk): torch.std is unbiased by default; biased variance kept."""
    pool = _lane_pool(wo * c, c)
    rows = _row_pool(b, ho)
    inv = 1.0 / float(ho * wo)
    mean = inv * jnp.dot(rows, jnp.dot(x, pool, preferred_element_type=jnp.float32),
                         preferred_element_type=jnp.float32)            # (B, C)
    cen = x - _expand(mean, b, ho, wo, c)
    var = inv * jnp.dot(rows, jnp.dot(cen * cen, pool,
                                      preferred_element_type=jnp.float32),
                        preferred_element_type=jnp.float32)             # (B, C)
    return mean, var


# --------------------------------------------------------------------------
# The single fused forward kernel
# --------------------------------------------------------------------------
def _fused_forward_kernel(
        cs_ref,
        e1_r, e1_w, e1_b, e2_r, e2_w, e2_b, e3_r, e3_w, e3_b,
        d1_r, d1_w, d1_b, d2_r, d2_w, d2_b, d3_r, d3_w, d3_b,
        o_ref, *, n, enc_geom, alpha, style_weight):
    two_n = 2 * n

    def conv(x, rsel_ref, wband_ref, bias_ref, relu, blocks, built_blocks):
        """Fused [nearest-2x upsample] + pad(1) + conv3x3(stride) + bias + ReLU
        over a `blocks`-image batch stacked along rows.
          x     : (blocks*Hin, W*Cin) f32
          rsel  : (3, built_blocks*Ho, built_blocks*Hin) block-diag 0/1 f32
          wband : (3, W*Cin, Wo*Cout) bf16 banded weights
          bias  : (1, Wo*Cout) f32
        Encoder operands are built for 2N images; the re-encode pass reuses
        their leading N diagonal blocks via a static slice.
        """
        rows_out = (rsel_ref.shape[1] // built_blocks) * blocks
        rows_in = (rsel_ref.shape[2] // built_blocks) * blocks
        acc = None
        for dh in range(3):
            sel = rsel_ref[dh]
            if blocks != built_blocks:
                sel = sel[:rows_out, :rows_in]
            rows = jnp.dot(sel, x, preferred_element_type=jnp.float32)
            part = jnp.dot(rows.astype(jnp.bfloat16), wband_ref[dh],
                           preferred_element_type=jnp.float32)
            acc = part if acc is None else acc + part
        acc = acc + bias_ref[...]
        return jnp.maximum(acc, 0.0) if relu else acc

    # ---- encoder over the stacked [content; style] batch (2N images) -------
    x = cs_ref[...]
    f1 = conv(x, e1_r, e1_w, e1_b, True, two_n, two_n)
    f2 = conv(f1, e2_r, e2_w, e2_b, True, two_n, two_n)
    f3 = conv(f2, e3_r, e3_w, e3_b, True, two_n, two_n)

    (h1, w1, c1), (h2, w2, c2), (h3, w3, c3) = enc_geom
    c3_feat = f3[: n * h3]                       # content level-3 features
    s3_feat = f3[n * h3:]                        # style   level-3 features

    # ---- AdaIN (per-(image,channel) spatial stats) + alpha blend -----------
    c_mean, c_var = _channel_stats(c3_feat, n, h3, w3, c3)
    s_mean, s_var = _channel_stats(s3_feat, n, h3, w3, c3)
    scale = jnp.sqrt(s_var + EPS) * lax.rsqrt(c_var + EPS)       # EUP rsqrt
    shift = s_mean - scale * c_mean
    adain = _expand(scale, n, h3, w3, c3) * c3_feat + _expand(shift, n, h3, w3, c3)
    t = alpha * adain + (1.0 - alpha) * c3_feat  # blended target (as in spec)

    # ---- decoder (N images); nearest-2x upsample folded into d2/d3 ---------
    y = conv(t, d1_r, d1_w, d1_b, True, n, n)
    y = conv(y, d2_r, d2_w, d2_b, True, n, n)
    result = conv(y, d3_r, d3_w, d3_b, False, n, n)

    # ---- re-encode the decoded result (N images) ---------------------------
    r1 = conv(result, e1_r, e1_w, e1_b, True, n, two_n)
    r2 = conv(r1, e2_r, e2_w, e2_b, True, n, two_n)
    r3 = conv(r2, e3_r, e3_w, e3_b, True, n, two_n)

    # ---- losses -------------------------------------------------------------
    content_loss = jnp.mean((r3 - t) ** 2)

    style_loss = jnp.float32(0.0)
    enc_feats = (f1, f2, f3)
    res_feats = (r1, r2, r3)
    for lvl in range(3):
        ho, wo, ch = enc_geom[lvl]
        if lvl == 2:                              # reuse level-3 style stats
            sm, sv = s_mean, s_var
        else:
            sm, sv = _channel_stats(enc_feats[lvl][n * ho:], n, ho, wo, ch)
        rm, rv = _channel_stats(res_feats[lvl], n, ho, wo, ch)
        style_loss = style_loss + jnp.mean((rm - sm) ** 2) + jnp.mean(
            (jnp.sqrt(rv + EPS) - jnp.sqrt(sv + EPS)) ** 2)

    o_ref[0, 0] = content_loss + style_weight * style_loss


# --------------------------------------------------------------------------
# Conv layer preparation: fold pad / stride / upsample / batch into matrices
# --------------------------------------------------------------------------
def build_conv_layer(w, b, H, W, Cin, Cout, *, stride=1, upsample=1, nblocks=1):
    """w: (3,3,Cin,Cout) HWIO, b: (Cout,).  Static geometry per layer.
    Returns arrays only (safe to pass through jit as a pytree):
      rsel : (3, nblocks*Ho, nblocks*H) f32 block-diag row selector per dh
      wband: (3, W*Cin, Wo*Cout)        bf16 banded weights per dh
      bias : (1, Wo*Cout)               f32
    TODO(synk): wband is O(W^2) dense; switch to lane-roll weights at scale.
    """
    U, s = upsample, stride
    Hu, Wu = U * H, U * W
    Ho = (Hu - 1) // s + 1
    Wo = (Wu - 1) // s + 1

    def selector(n_out, n_in, n_up, d):
        # padded/upsampled coordinate read by output position * stride + tap d
        pos = jnp.arange(n_out) * s + d
        valid = (pos >= 1) & (pos <= n_up)             # 0 / n_up+1 are zero-pad
        src = (pos - 1) // U                           # nearest-neighbor source
        sel = (src[:, None] == jnp.arange(n_in)[None, :]) & valid[:, None]
        return sel.astype(jnp.float32)                 # (n_out, n_in)

    eye = jnp.eye(nblocks, dtype=jnp.float32)
    rsel = jnp.stack([jnp.kron(eye, selector(Ho, H, Hu, dh)) for dh in range(3)])

    wband = []
    for dh in range(3):
        acc = jnp.zeros((W, Cin, Wo, Cout), jnp.float32)
        for dw in range(3):
            csel = selector(Wo, W, Wu, dw)             # (Wo, W)
            acc = acc + csel.T[:, None, :, None] * w[dh, dw][None, :, None, :]
        wband.append(acc.reshape(W * Cin, Wo * Cout))
    wband = jnp.stack(wband).astype(jnp.bfloat16)      # bf16 MXU operand

    bias = jnp.tile(b, (Wo,)).reshape(1, Wo * Cout).astype(jnp.float32)
    return dict(rsel=rsel, wband=wband, bias=bias)


def build_layers(params, n, H=16, W=16):
    """Hoisted out of forward(); encoder operands are built for the 2N-batch,
    decoder operands for the N-batch."""
    two_n = 2 * n
    e1 = build_conv_layer(*params["e1"], H, W, CH[0], CH[1], stride=1, nblocks=two_n)
    e2 = build_conv_layer(*params["e2"], H, W, CH[1], CH[2], stride=2, nblocks=two_n)
    e3 = build_conv_layer(*params["e3"], H // 2, W // 2, CH[2], CH[3], stride=2, nblocks=two_n)
    d1 = build_conv_layer(*params["d1"], H // 4, W // 4, CH[3], CH[2], stride=1, nblocks=n)
    d2 = build_conv_layer(*params["d2"], H // 4, W // 4, CH[2], CH[1], upsample=2, nblocks=n)
    d3 = build_conv_layer(*params["d3"], H // 2, W // 2, CH[1], CH[0], upsample=2, nblocks=n)
    return dict(e1=e1, e2=e2, e3=e3, d1=d1, d2=d2, d3=d3)


def init_params(key):
    def conv_init(k, cin, cout):
        k1, k2 = jax.random.split(k)
        w = jax.random.normal(k1, (3, 3, cin, cout), jnp.float32) * (1.0 / (9 * cin) ** 0.5)
        b = jax.random.normal(k2, (cout,), jnp.float32) * 0.01
        return w, b

    ks = jax.random.split(key, 6)
    return {
        "e1": conv_init(ks[0], CH[0], CH[1]),
        "e2": conv_init(ks[1], CH[1], CH[2]),
        "e3": conv_init(ks[2], CH[2], CH[3]),
        "d1": conv_init(ks[3], CH[3], CH[2]),
        "d2": conv_init(ks[4], CH[2], CH[1]),
        "d3": conv_init(ks[5], CH[1], CH[0]),
    }


# --------------------------------------------------------------------------
# Forward: one pallas_call for the whole model
# --------------------------------------------------------------------------
@functools.partial(jax.jit, static_argnames=("alpha", "style_weight"))
def forward(layers, content, style, alpha=1.0, style_weight=10.0):
    """content/style: (N, H, W*3) flattened-NHWC images.  Returns scalar loss."""
    n, H, WC = content.shape
    W = WC // CH[0]
    enc_geom = ((H, W, CH[1]), (H // 2, W // 2, CH[2]), (H // 4, W // 4, CH[3]))

    # Stack [content; style] -> (2N*H, W*3); same linear memory, free reshape.
    cs = jnp.concatenate([content, style], axis=0).reshape(2 * n * H, WC)

    args = [cs]
    for name in ("e1", "e2", "e3", "d1", "d2", "d3"):
        layer = layers[name]
        args.extend([layer["rsel"], layer["wband"], layer["bias"]])

    kernel = functools.partial(
        _fused_forward_kernel, n=n, enc_geom=enc_geom,
        alpha=float(alpha), style_weight=float(style_weight))

    loss = pl.pallas_call(
        kernel,
        out_shape=jax.ShapeDtypeStruct((1, 1), jnp.float32),
        in_specs=[_VMEM] * len(args),
        out_specs=_SMEM,
    )(*args)
    return loss[0, 0]


# --------------------------------------------------------------------------
if __name__ == "__main__":
    key = jax.random.PRNGKey(0)
    pkey, ckey, skey = jax.random.split(key, 3)
    params = init_params(pkey)

    N, H, W = 2, 16, 16
    # PyTorch-convention NCHW inputs -> NHWC -> flattened (N, H, W*C) layout.
    content_nchw = jax.random.uniform(ckey, (N, 3, H, W), jnp.float32)
    style_nchw = jax.random.uniform(skey, (N, 3, H, W), jnp.float32)
    content = jnp.transpose(content_nchw, (0, 2, 3, 1)).reshape(N, H, W * 3)
    style = jnp.transpose(style_nchw, (0, 2, 3, 1)).reshape(N, H, W * 3)

    # Layer preparation hoisted out of the jitted forward (runs once).
    layers = build_layers(params, n=N, H=H, W=W)

    loss = forward(layers, content, style, alpha=1.0, style_weight=10.0)
    jax.block_until_ready(loss)
    print("KERNEL_OK")
</pallas_src>

<mosaic_0001>
module attributes {stable_mosaic.version = 11 : i64} {
  func.func @_fused_forward_kernel(%arg0: memref<64x48xf32, #tpu.memory_space<vmem>>, %arg1: memref<3x64x64xf32, #tpu.memory_space<vmem>>, %arg2: memref<3x48x128xbf16, #tpu.memory_space<vmem>>, %arg3: memref<1x128xf32, #tpu.memory_space<vmem>>, %arg4: memref<3x32x64xf32, #tpu.memory_space<vmem>>, %arg5: memref<3x128x128xbf16, #tpu.memory_space<vmem>>, %arg6: memref<1x128xf32, #tpu.memory_space<vmem>>, %arg7: memref<3x16x32xf32, #tpu.memory_space<vmem>>, %arg8: memref<3x128x128xbf16, #tpu.memory_space<vmem>>, %arg9: memref<1x128xf32, #tpu.memory_space<vmem>>, %arg10: memref<3x8x8xf32, #tpu.memory_space<vmem>>, %arg11: memref<3x128x64xbf16, #tpu.memory_space<vmem>>, %arg12: memref<1x64xf32, #tpu.memory_space<vmem>>, %arg13: memref<3x16x8xf32, #tpu.memory_space<vmem>>, %arg14: memref<3x64x64xbf16, #tpu.memory_space<vmem>>, %arg15: memref<1x64xf32, #tpu.memory_space<vmem>>, %arg16: memref<3x32x16xf32, #tpu.memory_space<vmem>>, %arg17: memref<3x64x48xbf16, #tpu.memory_space<vmem>>, %arg18: memref<1x48xf32, #tpu.memory_space<vmem>>, %arg19: memref<1x1xf32, #tpu.memory_space<smem>>) attributes {dimension_semantics = [], scalar_prefetch = 0 : i64, scratch_operands = 0 : i64, tpu.core_type = #tpu.core_type<tc>} {
    %c0 = arith.constant 0 : index
    %c0_0 = arith.constant 0 : index
    %0 = vector.load %arg0[%c0, %c0_0] : memref<64x48xf32, #tpu.memory_space<vmem>>, vector<64x48xf32>
    %c0_1 = arith.constant 0 : index
    %c0_2 = arith.constant 0 : index
    %c0_3 = arith.constant 0 : index
    %1 = vector.load %arg1[%c0_1, %c0_2, %c0_3] : memref<3x64x64xf32, #tpu.memory_space<vmem>>, vector<1x64x64xf32>
    %2 = vector.shape_cast %1 : vector<1x64x64xf32> to vector<64x64xf32>
    %cst = arith.constant dense<0.000000e+00> : vector<64x48xf32>
    %3 = tpu.matmul %2, %0, %cst {dimension_numbers = #tpu.dot_dimension_numbers<[1], [0], [0], [1], [0, 0, 1, 1], [], []>} : vector<64x64xf32>, vector<64x48xf32>, vector<64x48xf32> -> vector<64x48xf32>
    %4 = arith.truncf %3 : vector<64x48xf32> to vector<64x48xbf16>
    %c0_4 = arith.constant 0 : index
    %c0_5 = arith.constant 0 : index
    %c0_6 = arith.constant 0 : index
    %5 = vector.load %arg2[%c0_4, %c0_5, %c0_6] : memref<3x48x128xbf16, #tpu.memory_space<vmem>>, vector<1x48x128xbf16>
    %6 = vector.shape_cast %5 : vector<1x48x128xbf16> to vector<48x128xbf16>
    %cst_7 = arith.constant dense<0.000000e+00> : vector<64x128xf32>
    %7 = tpu.matmul %4, %6, %cst_7 {dimension_numbers = #tpu.dot_dimension_numbers<[1], [0], [0], [1], [0, 0, 1, 1], [], []>} : vector<64x48xbf16>, vector<48x128xbf16>, vector<64x128xf32> -> vector<64x128xf32>
    %c1 = arith.constant 1 : index
    %c0_8 = arith.constant 0 : index
    %c0_9 = arith.constant 0 : index
    %8 = vector.load %arg1[%c1, %c0_8, %c0_9] : memref<3x64x64xf32, #tpu.memory_space<vmem>>, vector<1x64x64xf32>
    %9 = vector.shape_cast %8 : vector<1x64x64xf32> to vector<64x64xf32>
    %cst_10 = arith.constant dense<0.000000e+00> : vector<64x48xf32>
    %10 = tpu.matmul %9, %0, %cst_10 {dimension_numbers = #tpu.dot_dimension_numbers<[1], [0], [0], [1], [0, 0, 1, 1], [], []>} : vector<64x64xf32>, vector<64x48xf32>, vector<64x48xf32> -> vector<64x48xf32>
    %11 = arith.truncf %10 : vector<64x48xf32> to vector<64x48xbf16>
    %c1_11 = arith.constant 1 : index
    %c0_12 = arith.constant 0 : index
    %c0_13 = arith.constant 0 : index
    %12 = vector.load %arg2[%c1_11, %c0_12, %c0_13] : memref<3x48x128xbf16, #tpu.memory_space<vmem>>, vector<1x48x128xbf16>
    %13 = vector.shape_cast %12 : vector<1x48x128xbf16> to vector<48x128xbf16>
    %cst_14 = arith.constant dense<0.000000e+00> : vector<64x128xf32>
    %14 = tpu.matmul %11, %13, %cst_14 {dimension_numbers = #tpu.dot_dimension_numbers<[1], [0], [0], [1], [0, 0, 1, 1], [], []>} : vector<64x48xbf16>, vector<48x128xbf16>, vector<64x128xf32> -> vector<64x128xf32>
    %15 = arith.addf %7, %14 : vector<64x128xf32>
    %c2 = arith.constant 2 : index
    %c0_15 = arith.constant 0 : index
    %c0_16 = arith.constant 0 : index
    %16 = vector.load %arg1[%c2, %c0_15, %c0_16] : memref<3x64x64xf32, #tpu.memory_space<vmem>>, vector<1x64x64xf32>
    %17 = vector.shape_cast %16 : vector<1x64x64xf32> to vector<64x64xf32>
    %cst_17 = arith.constant dense<0.000000e+00> : vector<64x48xf32>
    %18 = tpu.matmul %17, %0, %cst_17 {dimension_numbers = #tpu.dot_dimension_numbers<[1], [0], [0], [1], [0, 0, 1, 1], [], []>} : vector<64x64xf32>, vector<64x48xf32>, vector<64x48xf32> -> vector<64x48xf32>
    %19 = arith.truncf %18 : vector<64x48xf32> to vector<64x48xbf16>
    %c2_18 = arith.constant 2 : index
    %c0_19 = arith.constant 0 : index
    %c0_20 = arith.constant 0 : index
    %20 = vector.load %arg2[%c2_18, %c0_19, %c0_20] : memref<3x48x128xbf16, #tpu.memory_space<vmem>>, vector<1x48x128xbf16>
    %21 = vector.shape_cast %20 : vector<1x48x128xbf16> to vector<48x128xbf16>
    %cst_21 = arith.constant dense<0.000000e+00> : vector<64x128xf32>
    %22 = tpu.matmul %19, %21, %cst_21 {dimension_numbers = #tpu.dot_dimension_numbers<[1], [0], [0], [1], [0, 0, 1, 1], [], []>} : vector<64x48xbf16>, vector<48x128xbf16>, vector<64x128xf32> -> vector<64x128xf32>
    %23 = arith.addf %15, %22 : vector<64x128xf32>
    %c0_22 = arith.constant 0 : index
    %c0_23 = arith.constant 0 : index
    %24 = vector.load %arg3[%c0_22, %c0_23] : memref<1x128xf32, #tpu.memory_space<vmem>>, vector<1x128xf32>
    %25 = vector.broadcast %24 : vector<1x128xf32> to vector<64x128xf32>
    %26 = arith.addf %23, %25 : vector<64x128xf32>
    %cst_24 = arith.constant 0.000000e+00 : f32
    %27 = vector.broadcast %cst_24 : f32 to vector<64x128xf32>
    %28 = arith.maximumf %26, %27 : vector<64x128xf32>
    %c0_25 = arith.constant 0 : index
    %c0_26 = arith.constant 0 : index
    %c0_27 = arith.constant 0 : index
    %29 = vector.load %arg4[%c0_25, %c0_26, %c0_27] : memref<3x32x64xf32, #tpu.memory_space<vmem>>, vector<1x32x64xf32>
    %30 = vector.shape_cast %29 : vector<1x32x64xf32> to vector<32x64xf32>
    %cst_28 = arith.constant dense<0.000000e+00> : vector<32x128xf32>
    %31 = tpu.matmul %30, %28, %cst_28 {dimension_numbers = #tpu.dot_dimension_numbers<[1], [0], [0], [1], [0, 0, 1, 1], [], []>} : vector<32x64xf32>, vector<64x128xf32>, vector<32x128xf32> -> vector<32x128xf32>
    %32 = arith.truncf %31 : vector<32x128xf32> to vector<32x128xbf16>
    %c0_29 = arith.constant 0 : index
    %c0_30 = arith.constant 0 : index
    %c0_31 = arith.constant 0 : index
    %33 = vector.load %arg5[%c0_29, %c0_30, %c0_31] : memref<3x128x128xbf16, #tpu.memory_space<vmem>>, vector<1x128x128xbf16>
    %34 = vector.shape_cast %33 : vector<1x128x128xbf16> to vector<128x128xbf16>
    %cst_32 = arith.constant dense<0.000000e+00> : vector<32x128xf32>
    %35 = tpu.matmul %32, %34, %cst_32 {dimension_numbers = #tpu.dot_dimension_numbers<[1], [0], [0], [1], [0, 0, 1, 1], [], []>} : vector<32x128xbf16>, vector<128x128xbf16>, vector<32x128xf32> -> vector<32x128xf32>
    %c1_33 = arith.constant 1 : index
    %c0_34 = arith.constant 0 : index
    %c0_35 = arith.constant 0 : index
    %36 = vector.load %arg4[%c1_33, %c0_34, %c0_35] : memref<3x32x64xf32, #tpu.memory_space<vmem>>, vector<1x32x64xf32>
    %37 = vector.shape_cast %36 : vector<1x32x64xf32> to vector<32x64xf32>
    %cst_36 = arith.constant dense<0.000000e+00> : vector<32x128xf32>
    %38 = tpu.matmul %37, %28, %cst_36 {dimension_numbers = #tpu.dot_dimension_numbers<[1], [0], [0], [1], [0, 0, 1, 1], [], []>} : vector<32x64xf32>, vector<64x128xf32>, vector<32x128xf32> -> vector<32x128xf32>
    %39 = arith.truncf %38 : vector<32x128xf32> to vector<32x128xbf16>
    %c1_37 = arith.constant 1 : index
    %c0_38 = arith.constant 0 : index
    %c0_39 = arith.constant 0 : index
    %40 = vector.load %arg5[%c1_37, %c0_38, %c0_39] : memref<3x128x128xbf16, #tpu.memory_space<vmem>>, vector<1x128x128xbf16>
    %41 = vector.shape_cast %40 : vector<1x128x128xbf16> to vector<128x128xbf16>
    %cst_40 = arith.constant dense<0.000000e+00> : vector<32x128xf32>
    %42 = tpu.matmul %39, %41, %cst_40 {dimension_numbers = #tpu.dot_dimension_numbers<[1], [0], [0], [1], [0, 0, 1, 1], [], []>} : vector<32x128xbf16>, vector<128x128xbf16>, vector<32x128xf32> -> vector<32x128xf32>
    %43 = arith.addf %35, %42 : vector<32x128xf32>
    %c2_41 = arith.constant 2 : index
    %c0_42 = arith.constant 0 : index
    %c0_43 = arith.constant 0 : index
    %44 = vector.load %arg4[%c2_41, %c0_42, %c0_43] : memref<3x32x64xf32, #tpu.memory_space<vmem>>, vector<1x32x64xf32>
    %45 = vector.shape_cast %44 : vector<1x32x64xf32> to vector<32x64xf32>
    %cst_44 = arith.constant dense<0.000000e+00> : vector<32x128xf32>
    %46 = tpu.matmul %45, %28, %cst_44 {dimension_numbers = #tpu.dot_dimension_numbers<[1], [0], [0], [1], [0, 0, 1, 1], [], []>} : vector<32x64xf32>, vector<64x128xf32>, vector<32x128xf32> -> vector<32x128xf32>
    %47 = arith.truncf %46 : vector<32x128xf32> to vector<32x128xbf16>
    %c2_45 = arith.constant 2 : index
    %c0_46 = arith.constant 0 : index
    %c0_47 = arith.constant 0 : index
    %48 = vector.load %arg5[%c2_45, %c0_46, %c0_47] : memref<3x128x128xbf16, #tpu.memory_space<vmem>>, vector<1x128x128xbf16>
    %49 = vector.shape_cast %48 : vector<1x128x128xbf16> to vector<128x128xbf16>
    %cst_48 = arith.constant dense<0.000000e+00> : vector<32x128xf32>
    %50 = tpu.matmul %47, %49, %cst_48 {dimension_numbers = #tpu.dot_dimension_numbers<[1], [0], [0], [1], [0, 0, 1, 1], [], []>} : vector<32x128xbf16>, vector<128x128xbf16>, vector<32x128xf32> -> vector<32x128xf32>
    %51 = arith.addf %43, %50 : vector<32x128xf32>
    %c0_49 = arith.constant 0 : index
    %c0_50 = arith.constant 0 : index
    %52 = vector.load %arg6[%c0_49, %c0_50] : memref<1x128xf32, #tpu.memory_space<vmem>>, vector<1x128xf32>
    %53 = vector.broadcast %52 : vector<1x128xf32> to vector<32x128xf32>
    %54 = arith.addf %51, %53 : vector<32x128xf32>
    %cst_51 = arith.constant 0.000000e+00 : f32
    %55 = vector.broadcast %cst_51 : f32 to vector<32x128xf32>
    %56 = arith.maximumf %54, %55 : vector<32x128xf32>
    %c0_52 = arith.constant 0 : index
    %c0_53 = arith.constant 0 : index
    %c0_54 = arith.constant 0 : index
    %57 = vector.load %arg7[%c0_52, %c0_53, %c0_54] : memref<3x16x32xf32, #tpu.memory_space<vmem>>, vector<1x16x32xf32>
    %58 = vector.shape_cast %57 : vector<1x16x32xf32> to vector<16x32xf32>
    %cst_55 = arith.constant dense<0.000000e+00> : vector<16x128xf32>
    %59 = tpu.matmul %58, %56, %cst_55 {dimension_numbers = #tpu.dot_dimension_numbers<[1], [0], [0], [1], [0, 0, 1, 1], [], []>} : vector<16x32xf32>, vector<32x128xf32>, vector<16x128xf32> -> vector<16x128xf32>
    %60 = arith.truncf %59 : vector<16x128xf32> to vector<16x128xbf16>
    %c0_56 = arith.constant 0 : index
    %c0_57 = arith.constant 0 : index
    %c0_58 = arith.constant 0 : index
    %61 = vector.load %arg8[%c0_56, %c0_57, %c0_58] : memref<3x128x128xbf16, #tpu.memory_space<vmem>>, vector<1x128x128xbf16>
    %62 = vector.shape_cast %61 : vector<1x128x128xbf16> to vector<128x128xbf16>
    %cst_59 = arith.constant dense<0.000000e+00> : vector<16x128xf32>
    %63 = tpu.matmul %60, %62, %cst_59 {dimension_numbers = #tpu.dot_dimension_numbers<[1], [0], [0], [1], [0, 0, 1, 1], [], []>} : vector<16x128xbf16>, vector<128x128xbf16>, vector<16x128xf32> -> vector<16x128xf32>
    %c1_60 = arith.constant 1 : index
    %c0_61 = arith.constant 0 : index
    %c0_62 = arith.constant 0 : index
    %64 = vector.load %arg7[%c1_60, %c0_61, %c0_62] : memref<3x16x32xf32, #tpu.memory_space<vmem>>, vector<1x16x32xf32>
    %65 = vector.shape_cast %64 : vector<1x16x32xf32> to vector<16x32xf32>
    %cst_63 = arith.constant dense<0.000000e+00> : vector<16x128xf32>
    %66 = tpu.matmul %65, %56, %cst_63 {dimension_numbers = #tpu.dot_dimension_numbers<[1], [0], [0], [1], [0, 0, 1, 1], [], []>} : vector<16x32xf32>, vector<32x128xf32>, vector<16x128xf32> -> vector<16x128xf32>
    %67 = arith.truncf %66 : vector<16x128xf32> to vector<16x128xbf16>
    %c1_64 = arith.constant 1 : index
    %c0_65 = arith.constant 0 : index
    %c0_66 = arith.constant 0 : index
    %68 = vector.load %arg8[%c1_64, %c0_65, %c0_66] : memref<3x128x128xbf16, #tpu.memory_space<vmem>>, vector<1x128x128xbf16>
    %69 = vector.shape_cast %68 : vector<1x128x128xbf16> to vector<128x128xbf16>
    %cst_67 = arith.constant dense<0.000000e+00> : vector<16x128xf32>
    %70 = tpu.matmul %67, %69, %cst_67 {dimension_numbers = #tpu.dot_dimension_numbers<[1], [0], [0], [1], [0, 0, 1, 1], [], []>} : vector<16x128xbf16>, vector<128x128xbf16>, vector<16x128xf32> -> vector<16x128xf32>
    %71 = arith.addf %63, %70 : vector<16x128xf32>
    %c2_68 = arith.constant 2 : index
    %c0_69 = arith.constant 0 : index
    %c0_70 = arith.constant 0 : index
    %72 = vector.load %arg7[%c2_68, %c0_69, %c0_70] : memref<3x16x32xf32, #tpu.memory_space<vmem>>, vector<1x16x32xf32>
    %73 = vector.shape_cast %72 : vector<1x16x32xf32> to vector<16x32xf32>
    %cst_71 = arith.constant dense<0.000000e+00> : vector<16x128xf32>
    %74 = tpu.matmul %73, %56, %cst_71 {dimension_numbers = #tpu.dot_dimension_numbers<[1], [0], [0], [1], [0, 0, 1, 1], [], []>} : vector<16x32xf32>, vector<32x128xf32>, vector<16x128xf32> -> vector<16x128xf32>
    %75 = arith.truncf %74 : vector<16x128xf32> to vector<16x128xbf16>
    %c2_72 = arith.constant 2 : index
    %c0_73 = arith.constant 0 : index
    %c0_74 = arith.constant 0 : index
    %76 = vector.load %arg8[%c2_72, %c0_73, %c0_74] : memref<3x128x128xbf16, #tpu.memory_space<vmem>>, vector<1x128x128xbf16>
    %77 = vector.shape_cast %76 : vector<1x128x128xbf16> to vector<128x128xbf16>
    %cst_75 = arith.constant dense<0.000000e+00> : vector<16x128xf32>
    %78 = tpu.matmul %75, %77, %cst_75 {dimension_numbers = #tpu.dot_dimension_numbers<[1], [0], [0], [1], [0, 0, 1, 1], [], []>} : vector<16x128xbf16>, vector<128x128xbf16>, vector<16x128xf32> -> vector<16x128xf32>
    %79 = arith.addf %71, %78 : vector<16x128xf32>
    %c0_76 = arith.constant 0 : index
    %c0_77 = arith.constant 0 : index
    %80 = vector.load %arg9[%c0_76, %c0_77] : memref<1x128xf32, #tpu.memory_space<vmem>>, vector<1x128xf32>
    %81 = vector.broadcast %80 : vector<1x128xf32> to vector<16x128xf32>
    %82 = arith.addf %79, %81 : vector<16x128xf32>
    %cst_78 = arith.constant 0.000000e+00 : f32
    %83 = vector.broadcast %cst_78 : f32 to vector<16x128xf32>
    %84 = arith.maximumf %82, %83 : vector<16x128xf32>
    %85 = vector.extract_strided_slice %84 {offsets = [0, 0], sizes = [8, 128], strides = [1, 1]} : vector<16x128xf32> to vector<8x128xf32>
    %86 = vector.extract_strided_slice %84 {offsets = [8, 0], sizes = [8, 128], strides = [1, 1]} : vector<16x128xf32> to vector<8x128xf32>
    %87 = tpu.iota {dimensions = array<i32: 0>} : vector<128x32xi32>
    %88 = tpu.iota {dimensions = array<i32: 1>} : vector<128x32xi32>
    %c31_i32 = arith.constant 31 : i32
    %89 = vector.broadcast %c31_i32 : i32 to vector<128x32xi32>
    %90 = arith.andi %87, %89 : vector<128x32xi32>
    %91 = arith.cmpi eq, %90, %88 : vector<128x32xi32>
    %92 = arith.extui %91 : vector<128x32xi1> to vector<128x32xi32>
    %93 = arith.sitofp %92 : vector<128x32xi32> to vector<128x32xf32>
    %94 = tpu.iota {dimensions = array<i32: 1>} : vector<2x8xi32>
    %95 = tpu.iota {dimensions = array<i32: 0>} : vector<2x8xi32>
    %c4_i32 = arith.constant 4 : i32
    %96 = vector.broadcast %c4_i32 : i32 to vector<2x8xi32>
    %97 = arith.muli %95, %96 : vector<2x8xi32>
    %98 = arith.cmpi sge, %94, %97 : vector<2x8xi32>
    %c1_i32 = arith.constant 1 : i32
    %99 = vector.broadcast %c1_i32 : i32 to vector<2x8xi32>
    %100 = arith.addi %95, %99 : vector<2x8xi32>
    %c4_i32_79 = arith.constant 4 : i32
    %101 = vector.broadcast %c4_i32_79 : i32 to vector<2x8xi32>
    %102 = arith.muli %100, %101 : vector<2x8xi32>
    %103 = arith.cmpi slt, %94, %102 : vector<2x8xi32>
    %104 = arith.andi %98, %103 : vector<2x8xi1>
    %105 = arith.extui %104 : vector<2x8xi1> to vector<2x8xi32>
    %106 = arith.sitofp %105 : vector<2x8xi32> to vector<2x8xf32>
    %cst_80 = arith.constant dense<0.000000e+00> : vector<8x32xf32>
    %107 = tpu.matmul %85, %93, %cst_80 {dimension_numbers = #tpu.dot_dimension_numbers<[1], [0], [0], [1], [0, 0, 1, 1], [], []>} : vector<8x128xf32>, vector<128x32xf32>, vector<8x32xf32> -> vector<8x32xf32>
    %cst_81 = arith.constant dense<0.000000e+00> : vector<2x32xf32>
    %108 = tpu.matmul %106, %107, %cst_81 {dimension_numbers = #tpu.dot_dimension_numbers<[1], [0], [0], [1], [0, 0, 1, 1], [], []>} : vector<2x8xf32>, vector<8x32xf32>, vector<2x32xf32> -> vector<2x32xf32>
    %cst_82 = arith.constant 6.250000e-02 : f32
    %109 = vector.broadcast %cst_82 : f32 to vector<2x32xf32>
    %110 = arith.mulf %109, %108 : vector<2x32xf32>
    %111 = tpu.iota {dimensions = array<i32: 1>} : vector<32x128xi32>
    %112 = tpu.iota {dimensions = array<i32: 0>} : vector<32x128xi32>
    %c31_i32_83 = arith.constant 31 : i32
    %113 = vector.broadcast %c31_i32_83 : i32 to vector<32x128xi32>
    %114 = arith.andi %111, %113 : vector<32x128xi32>
    %115 = arith.cmpi eq, %114, %112 : vector<32x128xi32>
    %116 = arith.extui %115 : vector<32x128xi1> to vector<32x128xi32>
    %117 = arith.sitofp %116 : vector<32x128xi32> to vector<32x128xf32>
    %cst_84 = arith.constant dense<0.000000e+00> : vector<2x128xf32>
    %118 = tpu.matmul %110, %117, %cst_84 {dimension_numbers = #tpu.dot_dimension_numbers<[1], [0], [0], [1], [0, 0, 1, 1], [], []>} : vector<2x32xf32>, vector<32x128xf32>, vector<2x128xf32> -> vector<2x128xf32>
    %119 = tpu.iota {dimensions = array<i32: 0>} : vector<8x2xi32>
    %120 = tpu.iota {dimensions = array<i32: 1>} : vector<8x2xi32>
    %c4_i32_85 = arith.constant 4 : i32
    %121 = vector.broadcast %c4_i32_85 : i32 to vector<8x2xi32>
    %122 = arith.muli %120, %121 : vector<8x2xi32>
    %123 = arith.cmpi sge, %119, %122 : vector<8x2xi32>
    %c1_i32_86 = arith.constant 1 : i32
    %124 = vector.broadcast %c1_i32_86 : i32 to vector<8x2xi32>
    %125 = arith.addi %120, %124 : vector<8x2xi32>
    %c4_i32_87 = arith.constant 4 : i32
    %126 = vector.broadcast %c4_i32_87 : i32 to vector<8x2xi32>
    %127 = arith.muli %125, %126 : vector<8x2xi32>
    %128 = arith.cmpi slt, %119, %127 : vector<8x2xi32>
    %129 = arith.andi %123, %128 : vector<8x2xi1>
    %130 = arith.extui %129 : vector<8x2xi1> to vector<8x2xi32>
    %131 = arith.sitofp %130 : vector<8x2xi32> to vector<8x2xf32>
    %cst_88 = arith.constant dense<0.000000e+00> : vector<8x128xf32>
    %132 = tpu.matmul %131, %118, %cst_88 {dimension_numbers = #tpu.dot_dimension_numbers<[1], [0], [0], [1], [0, 0, 1, 1], [], []>} : vector<8x2xf32>, vector<2x128xf32>, vector<8x128xf32> -> vector<8x128xf32>
    %133 = arith.subf %85, %132 : vector<8x128xf32>
    %134 = arith.mulf %133, %133 : vector<8x128xf32>
    %cst_89 = arith.constant dense<0.000000e+00> : vector<8x32xf32>
    %135 = tpu.matmul %134, %93, %cst_89 {dimension_numbers = #tpu.dot_dimension_numbers<[1], [0], [0], [1], [0, 0, 1, 1], [], []>} : vector<8x128xf32>, vector<128x32xf32>, vector<8x32xf32> -> vector<8x32xf32>
    %cst_90 = arith.constant dense<0.000000e+00> : vector<2x32xf32>
    %136 = tpu.matmul %106, %135, %cst_90 {dimension_numbers = #tpu.dot_dimension_numbers<[1], [0], [0], [1], [0, 0, 1, 1], [], []>} : vector<2x8xf32>, vector<8x32xf32>, vector<2x32xf32> -> vector<2x32xf32>
    %cst_91 = arith.constant 6.250000e-02 : f32
    %137 = vector.broadcast %cst_91 : f32 to vector<2x32xf32>
    %138 = arith.mulf %137, %136 : vector<2x32xf32>
    %139 = tpu.iota {dimensions = array<i32: 0>} : vector<128x32xi32>
    %140 = tpu.iota {dimensions = array<i32: 1>} : vector<128x32xi32>
    %c31_i32_92 = arith.constant 31 : i32
    %141 = vector.broadcast %c31_i32_92 : i32 to vector<128x32xi32>
    %142 = arith.andi %139, %141 : vector<128x32xi32>
    %143 = arith.cmpi eq, %142, %140 : vector<128x32xi32>
    %144 = arith.extui %143 : vector<128x32xi1> to vector<128x32xi32>
    %145 = arith.sitofp %144 : vector<128x32xi32> to vector<128x32xf32>
    %146 = tpu.iota {dimensions = array<i32: 1>} : vector<2x8xi32>
    %147 = tpu.iota {dimensions = array<i32: 0>} : vector<2x8xi32>
    %c4_i32_93 = arith.constant 4 : i32
    %148 = vector.broadcast %c4_i32_93 : i32 to vector<2x8xi32>
    %149 = arith.muli %147, %148 : vector<2x8xi32>
    %150 = arith.cmpi sge, %146, %149 : vector<2x8xi32>
    %c1_i32_94 = arith.constant 1 : i32
    %151 = vector.broadcast %c1_i32_94 : i32 to vector<2x8xi32>
    %152 = arith.addi %147, %151 : vector<2x8xi32>
    %c4_i32_95 = arith.constant 4 : i32
    %153 = vector.broadcast %c4_i32_95 : i32 to vector<2x8xi32>
    %154 = arith.muli %152, %153 : vector<2x8xi32>
    %155 = arith.cmpi slt, %146, %154 : vector<2x8xi32>
    %156 = arith.andi %150, %155 : vector<2x8xi1>
    %157 = arith.extui %156 : vector<2x8xi1> to vector<2x8xi32>
    %158 = arith.sitofp %157 : vector<2x8xi32> to vector<2x8xf32>
    %cst_96 = arith.constant dense<0.000000e+00> : vector<8x32xf32>
    %159 = tpu.matmul %86, %145, %cst_96 {dimension_numbers = #tpu.dot_dimension_numbers<[1], [0], [0], [1], [0, 0, 1, 1], [], []>} : vector<8x128xf32>, vector<128x32xf32>, vector<8x32xf32> -> vector<8x32xf32>
    %cst_97 = arith.constant dense<0.000000e+00> : vector<2x32xf32>
    %160 = tpu.matmul %158, %159, %cst_97 {dimension_numbers = #tpu.dot_dimension_numbers<[1], [0], [0], [1], [0, 0, 1, 1], [], []>} : vector<2x8xf32>, vector<8x32xf32>, vector<2x32xf32> -> vector<2x32xf32>
    %cst_98 = arith.constant 6.250000e-02 : f32
    %161 = vector.broadcast %cst_98 : f32 to vector<2x32xf32>
    %162 = arith.mulf %161, %160 : vector<2x32xf32>
    %163 = tpu.iota {dimensions = array<i32: 1>} : vector<32x128xi32>
    %164 = tpu.iota {dimensions = array<i32: 0>} : vector<32x128xi32>
    %c31_i32_99 = arith.constant 31 : i32
    %165 = vector.broadcast %c31_i32_99 : i32 to vector<32x128xi32>
    %166 = arith.andi %163, %165 : vector<32x128xi32>
    %167 = arith.cmpi eq, %166, %164 : vector<32x128xi32>
    %168 = arith.extui %167 : vector<32x128xi1> to vector<32x128xi32>
    %169 = arith.sitofp %168 : vector<32x128xi32> to vector<32x128xf32>
    %cst_100 = arith.constant dense<0.000000e+00> : vector<2x128xf32>
    %170 = tpu.matmul %162, %169, %cst_100 {dimension_numbers = #tpu.dot_dimension_numbers<[1], [0], [0], [1], [0, 0, 1, 1], [], []>} : vector<2x32xf32>, vector<32x128xf32>, vector<2x128xf32> -> vector<2x128xf32>
    %171 = tpu.iota {dimensions = array<i32: 0>} : vector<8x2xi32>
    %172 = tpu.iota {dimensions = array<i32: 1>} : vector<8x2xi32>
    %c4_i32_101 = arith.constant 4 : i32
    %173 = vector.broadcast %c4_i32_101 : i32 to vector<8x2xi32>
    %174 = arith.muli %172, %173 : vector<8x2xi32>
    %175 = arith.cmpi sge, %171, %174 : vector<8x2xi32>
    %c1_i32_102 = arith.constant 1 : i32
    %176 = vector.broadcast %c1_i32_102 : i32 to vector<8x2xi32>
    %177 = arith.addi %172, %176 : vector<8x2xi32>
    %c4_i32_103 = arith.constant 4 : i32
    %178 = vector.broadcast %c4_i32_103 : i32 to vector<8x2xi32>
    %179 = arith.muli %177, %178 : vector<8x2xi32>
    %180 = arith.cmpi slt, %171, %179 : vector<8x2xi32>
    %181 = arith.andi %175, %180 : vector<8x2xi1>
    %182 = arith.extui %181 : vector<8x2xi1> to vector<8x2xi32>
    %183 = arith.sitofp %182 : vector<8x2xi32> to vector<8x2xf32>
    %cst_104 = arith.constant dense<0.000000e+00> : vector<8x128xf32>
    %184 = tpu.matmul %183, %170, %cst_104 {dimension_numbers = #tpu.dot_dimension_numbers<[1], [0], [0], [1], [0, 0, 1, 1], [], []>} : vector<8x2xf32>, vector<2x128xf32>, vector<8x128xf32> -> vector<8x128xf32>
    %185 = arith.subf %86, %184 : vector<8x128xf32>
    %186 = arith.mulf %185, %185 : vector<8x128xf32>
    %cst_105 = arith.constant dense<0.000000e+00> : vector<8x32xf32>
    %187 = tpu.matmul %186, %145, %cst_105 {dimension_numbers = #tpu.dot_dimension_numbers<[1], [0], [0], [1], [0, 0, 1, 1], [], []>} : vector<8x128xf32>, vector<128x32xf32>, vector<8x32xf32> -> vector<8x32xf32>
    %cst_106 = arith.constant dense<0.000000e+00> : vector<2x32xf32>
    %188 = tpu.matmul %158, %187, %cst_106 {dimension_numbers = #tpu.dot_dimension_numbers<[1], [0], [0], [1], [0, 0, 1, 1], [], []>} : vector<2x8xf32>, vector<8x32xf32>, vector<2x32xf32> -> vector<2x32xf32>
    %cst_107 = arith.constant 6.250000e-02 : f32
    %189 = vector.broadcast %cst_107 : f32 to vector<2x32xf32>
    %190 = arith.mulf %189, %188 : vector<2x32xf32>
    %cst_108 = arith.constant 9.99999974E-6 : f32
    %191 = vector.broadcast %cst_108 : f32 to vector<2x32xf32>
    %192 = arith.addf %190, %191 : vector<2x32xf32>
    %193 = math.sqrt %192 : vector<2x32xf32>
    %cst_109 = arith.constant 9.99999974E-6 : f32
    %194 = vector.broadcast %cst_109 : f32 to vector<2x32xf32>
    %195 = arith.addf %138, %194 : vector<2x32xf32>
    %196 = math.rsqrt %195 : vector<2x32xf32>
    %197 = arith.mulf %193, %196 : vector<2x32xf32>
    %198 = arith.mulf %197, %110 : vector<2x32xf32>
    %199 = arith.subf %162, %198 : vector<2x32xf32>
    %200 = tpu.iota {dimensions = array<i32: 1>} : vector<32x128xi32>
    %201 = tpu.iota {dimensions = array<i32: 0>} : vector<32x128xi32>
    %c31_i32_110 = arith.constant 31 : i32
    %202 = vector.broadcast %c31_i32_110 : i32 to vector<32x128xi32>
    %203 = arith.andi %200, %202 : vector<32x128xi32>
    %204 = arith.cmpi eq, %203, %201 : vector<32x128xi32>
    %205 = arith.extui %204 : vector<32x128xi1> to vector<32x128xi32>
    %206 = arith.sitofp %205 : vector<32x128xi32> to vector<32x128xf32>
    %cst_111 = arith.constant dense<0.000000e+00> : vector<2x128xf32>
    %207 = tpu.matmul %197, %206, %cst_111 {dimension_numbers = #tpu.dot_dimension_numbers<[1], [0], [0], [1], [0, 0, 1, 1], [], []>} : vector<2x32xf32>, vector<32x128xf32>, vector<2x128xf32> -> vector<2x128xf32>
    %208 = tpu.iota {dimensions = array<i32: 0>} : vector<8x2xi32>
    %209 = tpu.iota {dimensions = array<i32: 1>} : vector<8x2xi32>
    %c4_i32_112 = arith.constant 4 : i32
    %210 = vector.broadcast %c4_i32_112 : i32 to vector<8x2xi32>
    %211 = arith.muli %209, %210 : vector<8x2xi32>
    %212 = arith.cmpi sge, %208, %211 : vector<8x2xi32>
    %c1_i32_113 = arith.constant 1 : i32
    %213 = vector.broadcast %c1_i32_113 : i32 to vector<8x2xi32>
    %214 = arith.addi %209, %213 : vector<8x2xi32>
    %c4_i32_114 = arith.constant 4 : i32
    %215 = vector.broadcast %c4_i32_114 : i32 to vector<8x2xi32>
    %216 = arith.muli %214, %215 : vector<8x2xi32>
    %217 = arith.cmpi slt, %208, %216 : vector<8x2xi32>
    %218 = arith.andi %212, %217 : vector<8x2xi1>
    %219 = arith.extui %218 : vector<8x2xi1> to vector<8x2xi32>
    %220 = arith.sitofp %219 : vector<8x2xi32> to vector<8x2xf32>
    %cst_115 = arith.constant dense<0.000000e+00> : vector<8x128xf32>
    %221 = tpu.matmul %220, %207, %cst_115 {dimension_numbers = #tpu.dot_dimension_numbers<[1], [0], [0], [1], [0, 0, 1, 1], [], []>} : vector<8x2xf32>, vector<2x128xf32>, vector<8x128xf32> -> vector<8x128xf32>
    %222 = arith.mulf %221, %85 : vector<8x128xf32>
    %223 = tpu.iota {dimensions = array<i32: 1>} : vector<32x128xi32>
    %224 = tpu.iota {dimensions = array<i32: 0>} : vector<32x128xi32>
    %c31_i32_116 = arith.constant 31 : i32
    %225 = vector.broadcast %c31_i32_116 : i32 to vector<32x128xi32>
    %226 = arith.andi %223, %225 : vector<32x128xi32>
    %227 = arith.cmpi eq, %226, %224 : vector<32x128xi32>
    %228 = arith.extui %227 : vector<32x128xi1> to vector<32x128xi32>
    %229 = arith.sitofp %228 : vector<32x128xi32> to vector<32x128xf32>
    %cst_117 = arith.constant dense<0.000000e+00> : vector<2x128xf32>
    %230 = tpu.matmul %199, %229, %cst_117 {dimension_numbers = #tpu.dot_dimension_numbers<[1], [0], [0], [1], [0, 0, 1, 1], [], []>} : vector<2x32xf32>, vector<32x128xf32>, vector<2x128xf32> -> vector<2x128xf32>
    %231 = tpu.iota {dimensions = array<i32: 0>} : vector<8x2xi32>
    %232 = tpu.iota {dimensions = array<i32: 1>} : vector<8x2xi32>
    %c4_i32_118 = arith.constant 4 : i32
    %233 = vector.broadcast %c4_i32_118 : i32 to vector<8x2xi32>
    %234 = arith.muli %232, %233 : vector<8x2xi32>
    %235 = arith.cmpi sge, %231, %234 : vector<8x2xi32>
    %c1_i32_119 = arith.constant 1 : i32
    %236 = vector.broadcast %c1_i32_119 : i32 to vector<8x2xi32>
    %237 = arith.addi %232, %236 : vector<8x2xi32>
    %c4_i32_120 = arith.constant 4 : i32
    %238 = vector.broadcast %c4_i32_120 : i32 to vector<8x2xi32>
    %239 = arith.muli %237, %238 : vector<8x2xi32>
    %240 = arith.cmpi slt, %231, %239 : vector<8x2xi32>
    %241 = arith.andi %235, %240 : vector<8x2xi1>
    %242 = arith.extui %241 : vector<8x2xi1> to vector<8x2xi32>
    %243 = arith.sitofp %242 : vector<8x2xi32> to vector<8x2xf32>
    %cst_121 = arith.constant dense<0.000000e+00> : vector<8x128xf32>
    %244 = tpu.matmul %243, %230, %cst_121 {dimension_numbers = #tpu.dot_dimension_numbers<[1], [0], [0], [1], [0, 0, 1, 1], [], []>} : vector<8x2xf32>, vector<2x128xf32>, vector<8x128xf32> -> vector<8x128xf32>
    %245 = arith.addf %222, %244 : vector<8x128xf32>
    %cst_122 = arith.constant 1.000000e+00 : f32
    %246 = vector.broadcast %cst_122 : f32 to vector<8x128xf32>
    %247 = arith.mulf %246, %245 : vector<8x128xf32>
    %cst_123 = arith.constant 0.000000e+00 : f32
    %248 = vector.broadcast %cst_123 : f32 to vector<8x128xf32>
    %249 = arith.mulf %248, %85 : vector<8x128xf32>
    %250 = arith.addf %247, %249 : vector<8x128xf32>
    %c0_124 = arith.constant 0 : index
    %c0_125 = arith.constant 0 : index
    %c0_126 = arith.constant 0 : index
    %251 = vector.load %arg10[%c0_124, %c0_125, %c0_126] : memref<3x8x8xf32, #tpu.memory_space<vmem>>, vector<1x8x8xf32>
    %252 = vector.shape_cast %251 : vector<1x8x8xf32> to vector<8x8xf32>
    %cst_127 = arith.constant dense<0.000000e+00> : vector<8x128xf32>
    %253 = tpu.matmul %252, %250, %cst_127 {dimension_numbers = #tpu.dot_dimension_numbers<[1], [0], [0], [1], [0, 0, 1, 1], [], []>} : vector<8x8xf32>, vector<8x128xf32>, vector<8x128xf32> -> vector<8x128xf32>
    %254 = arith.truncf %253 : vector<8x128xf32> to vector<8x128xbf16>
    %c0_128 = arith.constant 0 : index
    %c0_129 = arith.constant 0 : index
    %c0_130 = arith.constant 0 : index
    %255 = vector.load %arg11[%c0_128, %c0_129, %c0_130] : memref<3x128x64xbf16, #tpu.memory_space<vmem>>, vector<1x128x64xbf16>
    %256 = vector.shape_cast %255 : vector<1x128x64xbf16> to vector<128x64xbf16>
    %cst_131 = arith.constant dense<0.000000e+00> : vector<8x64xf32>
    %257 = tpu.matmul %254, %256, %cst_131 {dimension_numbers = #tpu.dot_dimension_numbers<[1], [0], [0], [1], [0, 0, 1, 1], [], []>} : vector<8x128xbf16>, vector<128x64xbf16>, vector<8x64xf32> -> vector<8x64xf32>
    %c1_132 = arith.constant 1 : index
    %c0_133 = arith.constant 0 : index
    %c0_134 = arith.constant 0 : index
    %258 = vector.load %arg10[%c1_132, %c0_133, %c0_134] : memref<3x8x8xf32, #tpu.memory_space<vmem>>, vector<1x8x8xf32>
    %259 = vector.shape_cast %258 : vector<1x8x8xf32> to vector<8x8xf32>
    %cst_135 = arith.constant dense<0.000000e+00> : vector<8x128xf32>
    %260 = tpu.matmul %259, %250, %cst_135 {dimension_numbers = #tpu.dot_dimension_numbers<[1], [0], [0], [1], [0, 0, 1, 1], [], []>} : vector<8x8xf32>, vector<8x128xf32>, vector<8x128xf32> -> vector<8x128xf32>
    %261 = arith.truncf %260 : vector<8x128xf32> to vector<8x128xbf16>
    %c1_136 = arith.constant 1 : index
    %c0_137 = arith.constant 0 : index
    %c0_138 = arith.constant 0 : index
    %262 = vector.load %arg11[%c1_136, %c0_137, %c0_138] : memref<3x128x64xbf16, #tpu.memory_space<vmem>>, vector<1x128x64xbf16>
    %263 = vector.shape_cast %262 : vector<1x128x64xbf16> to vector<128x64xbf16>
    %cst_139 = arith.constant dense<0.000000e+00> : vector<8x64xf32>
    %264 = tpu.matmul %261, %263, %cst_139 {dimension_numbers = #tpu.dot_dimension_numbers<[1], [0], [0], [1], [0, 0, 1, 1], [], []>} : vector<8x128xbf16>, vector<128x64xbf16>, vector<8x64xf32> -> vector<8x64xf32>
    %265 = arith.addf %257, %264 : vector<8x64xf32>
    %c2_140 = arith.constant 2 : index
    %c0_141 = arith.constant 0 : index
    %c0_142 = arith.constant 0 : index
    %266 = vector.load %arg10[%c2_140, %c0_141, %c0_142] : memref<3x8x8xf32, #tpu.memory_space<vmem>>, vector<1x8x8xf32>
    %267 = vector.shape_cast %266 : vector<1x8x8xf32> to vector<8x8xf32>
    %cst_143 = arith.constant dense<0.000000e+00> : vector<8x128xf32>
    %268 = tpu.matmul %267, %250, %cst_143 {dimension_numbers = #tpu.dot_dimension_numbers<[1], [0], [0], [1], [0, 0, 1, 1], [], []>} : vector<8x8xf32>, vector<8x128xf32>, vector<8x128xf32> -> vector<8x128xf32>
    %269 = arith.truncf %268 : vector<8x128xf32> to vector<8x128xbf16>
    %c2_144 = arith.constant 2 : index
    %c0_145 = arith.constant 0 : index
    %c0_146 = arith.constant 0 : index
    %270 = vector.load %arg11[%c2_144, %c0_145, %c0_146] : memref<3x128x64xbf16, #tpu.memory_space<vmem>>, vector<1x128x64xbf16>
    %271 = vector.shape_cast %270 : vector<1x128x64xbf16> to vector<128x64xbf16>
    %cst_147 = arith.constant dense<0.000000e+00> : vector<8x64xf32>
    %272 = tpu.matmul %269, %271, %cst_147 {dimension_numbers = #tpu.dot_dimension_numbers<[1], [0], [0], [1], [0, 0, 1, 1], [], []>} : vector<8x128xbf16>, vector<128x64xbf16>, vector<8x64xf32> -> vector<8x64xf32>
    %273 = arith.addf %265, %272 : vector<8x64xf32>
    %c0_148 = arith.constant 0 : index
    %c0_149 = arith.constant 0 : index
    %274 = vector.load %arg12[%c0_148, %c0_149] : memref<1x64xf32, #tpu.memory_space<vmem>>, vector<1x64xf32>
    %275 = vector.broadcast %274 : vector<1x64xf32> to vector<8x64xf32>
    %276 = arith.addf %273, %275 : vector<8x64xf32>
    %cst_150 = arith.constant 0.000000e+00 : f32
    %277 = vector.broadcast %cst_150 : f32 to vector<8x64xf32>
    %278 = arith.maximumf %276, %277 : vector<8x64xf32>
    %c0_151 = arith.constant 0 : index
    %c0_152 = arith.constant 0 : index
    %c0_153 = arith.constant 0 : index
    %279 = vector.load %arg13[%c0_151, %c0_152, %c0_153] : memref<3x16x8xf32, #tpu.memory_space<vmem>>, vector<1x16x8xf32>
    %280 = vector.shape_cast %279 : vector<1x16x8xf32> to vector<16x8xf32>
    %cst_154 = arith.constant dense<0.000000e+00> : vector<16x64xf32>
    %281 = tpu.matmul %280, %278, %cst_154 {dimension_numbers = #tpu.dot_dimension_numbers<[1], [0], [0], [1], [0, 0, 1, 1], [], []>} : vector<16x8xf32>, vector<8x64xf32>, vector<16x64xf32> -> vector<16x64xf32>
    %282 = arith.truncf %281 : vector<16x64xf32> to vector<16x64xbf16>
    %c0_155 = arith.constant 0 : index
    %c0_156 = arith.constant 0 : index
    %c0_157 = arith.constant 0 : index
    %283 = vector.load %arg14[%c0_155, %c0_156, %c0_157] : memref<3x64x64xbf16, #tpu.memory_space<vmem>>, vector<1x64x64xbf16>
    %284 = vector.shape_cast %283 : vector<1x64x64xbf16> to vector<64x64xbf16>
    %cst_158 = arith.constant dense<0.000000e+00> : vector<16x64xf32>
    %285 = tpu.matmul %282, %284, %cst_158 {dimension_numbers = #tpu.dot_dimension_numbers<[1], [0], [0], [1], [0, 0, 1, 1], [], []>} : vector<16x64xbf16>, vector<64x64xbf16>, vector<16x64xf32> -> vector<16x64xf32>
    %c1_159 = arith.constant 1 : index
    %c0_160 = arith.constant 0 : index
    %c0_161 = arith.constant 0 : index
    %286 = vector.load %arg13[%c1_159, %c0_160, %c0_161] : memref<3x16x8xf32, #tpu.memory_space<vmem>>, vector<1x16x8xf32>
    %287 = vector.shape_cast %286 : vector<1x16x8xf32> to vector<16x8xf32>
    %cst_162 = arith.constant dense<0.000000e+00> : vector<16x64xf32>
    %288 = tpu.matmul %287, %278, %cst_162 {dimension_numbers = #tpu.dot_dimension_numbers<[1], [0], [0], [1], [0, 0, 1, 1], [], []>} : vector<16x8xf32>, vector<8x64xf32>, vector<16x64xf32> -> vector<16x64xf32>
    %289 = arith.truncf %288 : vector<16x64xf32> to vector<16x64xbf16>
    %c1_163 = arith.constant 1 : index
    %c0_164 = arith.constant 0 : index
    %c0_165 = arith.constant 0 : index
    %290 = vector.load %arg14[%c1_163, %c0_164, %c0_165] : memref<3x64x64xbf16, #tpu.memory_space<vmem>>, vector<1x64x64xbf16>
    %291 = vector.shape_cast %290 : vector<1x64x64xbf16> to vector<64x64xbf16>
    %cst_166 = arith.constant dense<0.000000e+00> : vector<16x64xf32>
    %292 = tpu.matmul %289, %291, %cst_166 {dimension_numbers = #tpu.dot_dimension_numbers<[1], [0], [0], [1], [0, 0, 1, 1], [], []>} : vector<16x64xbf16>, vector<64x64xbf16>, vector<16x64xf32> -> vector<16x64xf32>
    %293 = arith.addf %285, %292 : vector<16x64xf32>
    %c2_167 = arith.constant 2 : index
    %c0_168 = arith.constant 0 : index
    %c0_169 = arith.constant 0 : index
    %294 = vector.load %arg13[%c2_167, %c0_168, %c0_169] : memref<3x16x8xf32, #tpu.memory_space<vmem>>, vector<1x16x8xf32>
    %295 = vector.shape_cast %294 : vector<1x16x8xf32> to vector<16x8xf32>
    %cst_170 = arith.constant dense<0.000000e+00> : vector<16x64xf32>
    %296 = tpu.matmul %295, %278, %cst_170 {dimension_numbers = #tpu.dot_dimension_numbers<[1], [0], [0], [1], [0, 0, 1, 1], [], []>} : vector<16x8xf32>, vector<8x64xf32>, vector<16x64xf32> -> vector<16x64xf32>
    %297 = arith.truncf %296 : vector<16x64xf32> to vector<16x64xbf16>
    %c2_171 = arith.constant 2 : index
    %c0_172 = arith.constant 0 : index
    %c0_173 = arith.constant 0 : index
    %298 = vector.load %arg14[%c2_171, %c0_172, %c0_173] : memref<3x64x64xbf16, #tpu.memory_space<vmem>>, vector<1x64x64xbf16>
    %299 = vector.shape_cast %298 : vector<1x64x64xbf16> to vector<64x64xbf16>
    %cst_174 = arith.constant dense<0.000000e+00> : vector<16x64xf32>
    %300 = tpu.matmul %297, %299, %cst_174 {dimension_numbers = #tpu.dot_dimension_numbers<[1], [0], [0], [1], [0, 0, 1, 1], [], []>} : vector<16x64xbf16>, vector<64x64xbf16>, vector<16x64xf32> -> vector<16x64xf32>
    %301 = arith.addf %293, %300 : vector<16x64xf32>
    %c0_175 = arith.constant 0 : index
    %c0_176 = arith.constant 0 : index
    %302 = vector.load %arg15[%c0_175, %c0_176] : memref<1x64xf32, #tpu.memory_space<vmem>>, vector<1x64xf32>
    %303 = vector.broadcast %302 : vector<1x64xf32> to vector<16x64xf32>
    %304 = arith.addf %301, %303 : vector<16x64xf32>
    %cst_177 = arith.constant 0.000000e+00 : f32
    %305 = vector.broadcast %cst_177 : f32 to vector<16x64xf32>
    %306 = arith.maximumf %304, %305 : vector<16x64xf32>
    %c0_178 = arith.constant 0 : index
    %c0_179 = arith.constant 0 : index
    %c0_180 = arith.constant 0 : index
    %307 = vector.load %arg16[%c0_178, %c0_179, %c0_180] : memref<3x32x16xf32, #tpu.memory_space<vmem>>, vector<1x32x16xf32>
    %308 = vector.shape_cast %307 : vector<1x32x16xf32> to vector<32x16xf32>
    %cst_181 = arith.constant dense<0.000000e+00> : vector<32x64xf32>
    %309 = tpu.matmul %308, %306, %cst_181 {dimension_numbers = #tpu.dot_dimension_numbers<[1], [0], [0], [1], [0, 0, 1, 1], [], []>} : vector<32x16xf32>, vector<16x64xf32>, vector<32x64xf32> -> vector<32x64xf32>
    %310 = arith.truncf %309 : vector<32x64xf32> to vector<32x64xbf16>
    %c0_182 = arith.constant 0 : index
    %c0_183 = arith.constant 0 : index
    %c0_184 = arith.constant 0 : index
    %311 = vector.load %arg17[%c0_182, %c0_183, %c0_184] : memref<3x64x48xbf16, #tpu.memory_space<vmem>>, vector<1x64x48xbf16>
    %312 = vector.shape_cast %311 : vector<1x64x48xbf16> to vector<64x48xbf16>
    %cst_185 = arith.constant dense<0.000000e+00> : vector<32x48xf32>
    %313 = tpu.matmul %310, %312, %cst_185 {dimension_numbers = #tpu.dot_dimension_numbers<[1], [0], [0], [1], [0, 0, 1, 1], [], []>} : vector<32x64xbf16>, vector<64x48xbf16>, vector<32x48xf32> -> vector<32x48xf32>
    %c1_186 = arith.constant 1 : index
    %c0_187 = arith.constant 0 : index
    %c0_188 = arith.constant 0 : index
    %314 = vector.load %arg16[%c1_186, %c0_187, %c0_188] : memref<3x32x16xf32, #tpu.memory_space<vmem>>, vector<1x32x16xf32>
    %315 = vector.shape_cast %314 : vector<1x32x16xf32> to vector<32x16xf32>
    %cst_189 = arith.constant dense<0.000000e+00> : vector<32x64xf32>
    %316 = tpu.matmul %315, %306, %cst_189 {dimension_numbers = #tpu.dot_dimension_numbers<[1], [0], [0], [1], [0, 0, 1, 1], [], []>} : vector<32x16xf32>, vector<16x64xf32>, vector<32x64xf32> -> vector<32x64xf32>
    %317 = arith.truncf %316 : vector<32x64xf32> to vector<32x64xbf16>
    %c1_190 = arith.constant 1 : index
    %c0_191 = arith.constant 0 : index
    %c0_192 = arith.constant 0 : index
    %318 = vector.load %arg17[%c1_190, %c0_191, %c0_192] : memref<3x64x48xbf16, #tpu.memory_space<vmem>>, vector<1x64x48xbf16>
    %319 = vector.shape_cast %318 : vector<1x64x48xbf16> to vector<64x48xbf16>
    %cst_193 = arith.constant dense<0.000000e+00> : vector<32x48xf32>
    %320 = tpu.matmul %317, %319, %cst_193 {dimension_numbers = #tpu.dot_dimension_numbers<[1], [0], [0], [1], [0, 0, 1, 1], [], []>} : vector<32x64xbf16>, vector<64x48xbf16>, vector<32x48xf32> -> vector<32x48xf32>
    %321 = arith.addf %313, %320 : vector<32x48xf32>
    %c2_194 = arith.constant 2 : index
    %c0_195 = arith.constant 0 : index
    %c0_196 = arith.constant 0 : index
    %322 = vector.load %arg16[%c2_194, %c0_195, %c0_196] : memref<3x32x16xf32, #tpu.memory_space<vmem>>, vector<1x32x16xf32>
    %323 = vector.shape_cast %322 : vector<1x32x16xf32> to vector<32x16xf32>
    %cst_197 = arith.constant dense<0.000000e+00> : vector<32x64xf32>
    %324 = tpu.matmul %323, %306, %cst_197 {dimension_numbers = #tpu.dot_dimension_numbers<[1], [0], [0], [1], [0, 0, 1, 1], [], []>} : vector<32x16xf32>, vector<16x64xf32>, vector<32x64xf32> -> vector<32x64xf32>
    %325 = arith.truncf %324 : vector<32x64xf32> to vector<32x64xbf16>
    %c2_198 = arith.constant 2 : index
    %c0_199 = arith.constant 0 : index
    %c0_200 = arith.constant 0 : index
    %326 = vector.load %arg17[%c2_198, %c0_199, %c0_200] : memref<3x64x48xbf16, #tpu.memory_space<vmem>>, vector<1x64x48xbf16>
    %327 = vector.shape_cast %326 : vector<1x64x48xbf16> to vector<64x48xbf16>
    %cst_201 = arith.constant dense<0.000000e+00> : vector<32x48xf32>
    %328 = tpu.matmul %325, %327, %cst_201 {dimension_numbers = #tpu.dot_dimension_numbers<[1], [0], [0], [1], [0, 0, 1, 1], [], []>} : vector<32x64xbf16>, vector<64x48xbf16>, vector<32x48xf32> -> vector<32x48xf32>
    %329 = arith.addf %321, %328 : vector<32x48xf32>
    %c0_202 = arith.constant 0 : index
    %c0_203 = arith.constant 0 : index
    %330 = vector.load %arg18[%c0_202, %c0_203] : memref<1x48xf32, #tpu.memory_space<vmem>>, vector<1x48xf32>
    %331 = vector.broadcast %330 : vector<1x48xf32> to vector<32x48xf32>
    %332 = arith.addf %329, %331 : vector<32x48xf32>
    %c0_204 = arith.constant 0 : index
    %c0_205 = arith.constant 0 : index
    %c0_206 = arith.constant 0 : index
    %333 = vector.load %arg1[%c0_204, %c0_205, %c0_206] : memref<3x64x64xf32, #tpu.memory_space<vmem>>, vector<1x64x64xf32>
    %334 = vector.shape_cast %333 : vector<1x64x64xf32> to vector<64x64xf32>
    %335 = vector.extract_strided_slice %334 {offsets = [0, 0], sizes = [32, 32], strides = [1, 1]} : vector<64x64xf32> to vector<32x32xf32>
    %cst_207 = arith.constant dense<0.000000e+00> : vector<32x48xf32>
    %336 = tpu.matmul %335, %332, %cst_207 {dimension_numbers = #tpu.dot_dimension_numbers<[1], [0], [0], [1], [0, 0, 1, 1], [], []>} : vector<32x32xf32>, vector<32x48xf32>, vector<32x48xf32> -> vector<32x48xf32>
    %337 = arith.truncf %336 : vector<32x48xf32> to vector<32x48xbf16>
    %c0_208 = arith.constant 0 : index
    %c0_209 = arith.constant 0 : index
    %c0_210 = arith.constant 0 : index
    %338 = vector.load %arg2[%c0_208, %c0_209, %c0_210] : memref<3x48x128xbf16, #tpu.memory_space<vmem>>, vector<1x48x128xbf16>
    %339 = vector.shape_cast %338 : vector<1x48x128xbf16> to vector<48x128xbf16>
    %cst_211 = arith.constant dense<0.000000e+00> : vector<32x128xf32>
    %340 = tpu.matmul %337, %339, %cst_211 {dimension_numbers = #tpu.dot_dimension_numbers<[1], [0], [0], [1], [0, 0, 1, 1], [], []>} : vector<32x48xbf16>, vector<48x128xbf16>, vector<32x128xf32> -> vector<32x128xf32>
    %c1_212 = arith.constant 1 : index
    %c0_213 = arith.constant 0 : index
    %c0_214 = arith.constant 0 : index
    %341 = vector.load %arg1[%c1_212, %c0_213, %c0_214] : memref<3x64x64xf32, #tpu.memory_space<vmem>>, vector<1x64x64xf32>
    %342 = vector.shape_cast %341 : vector<1x64x64xf32> to vector<64x64xf32>
    %343 = vector.extract_strided_slice %342 {offsets = [0, 0], sizes = [32, 32], strides = [1, 1]} : vector<64x64xf32> to vector<32x32xf32>
    %cst_215 = arith.constant dense<0.000000e+00> : vector<32x48xf32>
    %344 = tpu.matmul %343, %332, %cst_215 {dimension_numbers = #tpu.dot_dimension_numbers<[1], [0], [0], [1], [0, 0, 1, 1], [], []>} : vector<32x32xf32>, vector<32x48xf32>, vector<32x48xf32> -> vector<32x48xf32>
    %345 = arith.truncf %344 : vector<32x48xf32> to vector<32x48xbf16>
    %c1_216 = arith.constant 1 : index
    %c0_217 = arith.constant 0 : index
    %c0_218 = arith.constant 0 : index
    %346 = vector.load %arg2[%c1_216, %c0_217, %c0_218] : memref<3x48x128xbf16, #tpu.memory_space<vmem>>, vector<1x48x128xbf16>
    %347 = vector.shape_cast %346 : vector<1x48x128xbf16> to vector<48x128xbf16>
    %cst_219 = arith.constant dense<0.000000e+00> : vector<32x128xf32>
    %348 = tpu.matmul %345, %347, %cst_219 {dimension_numbers = #tpu.dot_dimension_numbers<[1], [0], [0], [1], [0, 0, 1, 1], [], []>} : vector<32x48xbf16>, vector<48x128xbf16>, vector<32x128xf32> -> vector<32x128xf32>
    %349 = arith.addf %340, %348 : vector<32x128xf32>
    %c2_220 = arith.constant 2 : index
    %c0_221 = arith.constant 0 : index
    %c0_222 = arith.constant 0 : index
    %350 = vector.load %arg1[%c2_220, %c0_221, %c0_222] : memref<3x64x64xf32, #tpu.memory_space<vmem>>, vector<1x64x64xf32>
    %351 = vector.shape_cast %350 : vector<1x64x64xf32> to vector<64x64xf32>
    %352 = vector.extract_strided_slice %351 {offsets = [0, 0], sizes = [32, 32], strides = [1, 1]} : vector<64x64xf32> to vector<32x32xf32>
    %cst_223 = arith.constant dense<0.000000e+00> : vector<32x48xf32>
    %353 = tpu.matmul %352, %332, %cst_223 {dimension_numbers = #tpu.dot_dimension_numbers<[1], [0], [0], [1], [0, 0, 1, 1], [], []>} : vector<32x32xf32>, vector<32x48xf32>, vector<32x48xf32> -> vector<32x48xf32>
    %354 = arith.truncf %353 : vector<32x48xf32> to vector<32x48xbf16>
    %c2_224 = arith.constant 2 : index
    %c0_225 = arith.constant 0 : index
    %c0_226 = arith.constant 0 : index
    %355 = vector.load %arg2[%c2_224, %c0_225, %c0_226] : memref<3x48x128xbf16, #tpu.memory_space<vmem>>, vector<1x48x128xbf16>
    %356 = vector.shape_cast %355 : vector<1x48x128xbf16> to vector<48x128xbf16>
    %cst_227 = arith.constant dense<0.000000e+00> : vector<32x128xf32>
    %357 = tpu.matmul %354, %356, %cst_227 {dimension_numbers = #tpu.dot_dimension_numbers<[1], [0], [0], [1], [0, 0, 1, 1], [], []>} : vector<32x48xbf16>, vector<48x128xbf16>, vector<32x128xf32> -> vector<32x128xf32>
    %358 = arith.addf %349, %357 : vector<32x128xf32>
    %c0_228 = arith.constant 0 : index
    %c0_229 = arith.constant 0 : index
    %359 = vector.load %arg3[%c0_228, %c0_229] : memref<1x128xf32, #tpu.memory_space<vmem>>, vector<1x128xf32>
    %360 = vector.broadcast %359 : vector<1x128xf32> to vector<32x128xf32>
    %361 = arith.addf %358, %360 : vector<32x128xf32>
    %cst_230 = arith.constant 0.000000e+00 : f32
    %362 = vector.broadcast %cst_230 : f32 to vector<32x128xf32>
    %363 = arith.maximumf %361, %362 : vector<32x128xf32>
    %c0_231 = arith.constant 0 : index
    %c0_232 = arith.constant 0 : index
    %c0_233 = arith.constant 0 : index
    %364 = vector.load %arg4[%c0_231, %c0_232, %c0_233] : memref<3x32x64xf32, #tpu.memory_space<vmem>>, vector<1x32x64xf32>
    %365 = vector.shape_cast %364 : vector<1x32x64xf32> to vector<32x64xf32>
    %366 = vector.extract_strided_slice %365 {offsets = [0, 0], sizes = [16, 32], strides = [1, 1]} : vector<32x64xf32> to vector<16x32xf32>
    %cst_234 = arith.constant dense<0.000000e+00> : vector<16x128xf32>
    %367 = tpu.matmul %366, %363, %cst_234 {dimension_numbers = #tpu.dot_dimension_numbers<[1], [0], [0], [1], [0, 0, 1, 1], [], []>} : vector<16x32xf32>, vector<32x128xf32>, vector<16x128xf32> -> vector<16x128xf32>
    %368 = arith.truncf %367 : vector<16x128xf32> to vector<16x128xbf16>
    %c0_235 = arith.constant 0 : index
    %c0_236 = arith.constant 0 : index
    %c0_237 = arith.constant 0 : index
    %369 = vector.load %arg5[%c0_235, %c0_236, %c0_237] : memref<3x128x128xbf16, #tpu.memory_space<vmem>>, vector<1x128x128xbf16>
    %370 = vector.shape_cast %369 : vector<1x128x128xbf16> to vector<128x128xbf16>
    %cst_238 = arith.constant dense<0.000000e+00> : vector<16x128xf32>
    %371 = tpu.matmul %368, %370, %cst_238 {dimension_numbers = #tpu.dot_dimension_numbers<[1], [0], [0], [1], [0, 0, 1, 1], [], []>} : vector<16x128xbf16>, vector<128x128xbf16>, vector<16x128xf32> -> vector<16x128xf32>
    %c1_239 = arith.constant 1 : index
    %c0_240 = arith.constant 0 : index
    %c0_241 = arith.constant 0 : index
    %372 = vector.load %arg4[%c1_239, %c0_240, %c0_241] : memref<3x32x64xf32, #tpu.memory_space<vmem>>, vector<1x32x64xf32>
    %373 = vector.shape_cast %372 : vector<1x32x64xf32> to vector<32x64xf32>
    %374 = vector.extract_strided_slice %373 {offsets = [0, 0], sizes = [16, 32], strides = [1, 1]} : vector<32x64xf32> to vector<16x32xf32>
    %cst_242 = arith.constant dense<0.000000e+00> : vector<16x128xf32>
    %375 = tpu.matmul %374, %363, %cst_242 {dimension_numbers = #tpu.dot_dimension_numbers<[1], [0], [0], [1], [0, 0, 1, 1], [], []>} : vector<16x32xf32>, vector<32x128xf32>, vector<16x128xf32> -> vector<16x128xf32>
    %376 = arith.truncf %375 : vector<16x128xf32> to vector<16x128xbf16>
    %c1_243 = arith.constant 1 : index
    %c0_244 = arith.constant 0 : index
    %c0_245 = arith.constant 0 : index
    %377 = vector.load %arg5[%c1_243, %c0_244, %c0_245] : memref<3x128x128xbf16, #tpu.memory_space<vmem>>, vector<1x128x128xbf16>
    %378 = vector.shape_cast %377 : vector<1x128x128xbf16> to vector<128x128xbf16>
    %cst_246 = arith.constant dense<0.000000e+00> : vector<16x128xf32>
    %379 = tpu.matmul %376, %378, %cst_246 {dimension_numbers = #tpu.dot_dimension_numbers<[1], [0], [0], [1], [0, 0, 1, 1], [], []>} : vector<16x128xbf16>, vector<128x128xbf16>, vector<16x128xf32> -> vector<16x128xf32>
    %380 = arith.addf %371, %379 : vector<16x128xf32>
    %c2_247 = arith.constant 2 : index
    %c0_248 = arith.constant 0 : index
    %c0_249 = arith.constant 0 : index
    %381 = vector.load %arg4[%c2_247, %c0_248, %c0_249] : memref<3x32x64xf32, #tpu.memory_space<vmem>>, vector<1x32x64xf32>
    %382 = vector.shape_cast %381 : vector<1x32x64xf32> to vector<32x64xf32>
    %383 = vector.extract_strided_slice %382 {offsets = [0, 0], sizes = [16, 32], strides = [1, 1]} : vector<32x64xf32> to vector<16x32xf32>
    %cst_250 = arith.constant dense<0.000000e+00> : vector<16x128xf32>
    %384 = tpu.matmul %383, %363, %cst_250 {dimension_numbers = #tpu.dot_dimension_numbers<[1], [0], [0], [1], [0, 0, 1, 1], [], []>} : vector<16x32xf32>, vector<32x128xf32>, vector<16x128xf32> -> vector<16x128xf32>
    %385 = arith.truncf %384 : vector<16x128xf32> to vector<16x128xbf16>
    %c2_251 = arith.constant 2 : index
    %c0_252 = arith.constant 0 : index
    %c0_253 = arith.constant 0 : index
    %386 = vector.load %arg5[%c2_251, %c0_252, %c0_253] : memref<3x128x128xbf16, #tpu.memory_space<vmem>>, vector<1x128x128xbf16>
    %387 = vector.shape_cast %386 : vector<1x128x128xbf16> to vector<128x128xbf16>
    %cst_254 = arith.constant dense<0.000000e+00> : vector<16x128xf32>
    %388 = tpu.matmul %385, %387, %cst_254 {dimension_numbers = #tpu.dot_dimension_numbers<[1], [0], [0], [1], [0, 0, 1, 1], [], []>} : vector<16x128xbf16>, vector<128x128xbf16>, vector<16x128xf32> -> vector<16x128xf32>
    %389 = arith.addf %380, %388 : vector<16x128xf32>
    %c0_255 = arith.constant 0 : index
    %c0_256 = arith.constant 0 : index
    %390 = vector.load %arg6[%c0_255, %c0_256] : memref<1x128xf32, #tpu.memory_space<vmem>>, vector<1x128xf32>
    %391 = vector.broadcast %390 : vector<1x128xf32> to vector<16x128xf32>
    %392 = arith.addf %389, %391 : vector<16x128xf32>
    %cst_257 = arith.constant 0.000000e+00 : f32
    %393 = vector.broadcast %cst_257 : f32 to vector<16x128xf32>
    %394 = arith.maximumf %392, %393 : vector<16x128xf32>
    %c0_258 = arith.constant 0 : index
    %c0_259 = arith.constant 0 : index
    %c0_260 = arith.constant 0 : index
    %395 = vector.load %arg7[%c0_258, %c0_259, %c0_260] : memref<3x16x32xf32, #tpu.memory_space<vmem>>, vector<1x16x32xf32>
    %396 = vector.shape_cast %395 : vector<1x16x32xf32> to vector<16x32xf32>
    %397 = vector.extract_strided_slice %396 {offsets = [0, 0], sizes = [8, 16], strides = [1, 1]} : vector<16x32xf32> to vector<8x16xf32>
    %cst_261 = arith.constant dense<0.000000e+00> : vector<8x128xf32>
    %398 = tpu.matmul %397, %394, %cst_261 {dimension_numbers = #tpu.dot_dimension_numbers<[1], [0], [0], [1], [0, 0, 1, 1], [], []>} : vector<8x16xf32>, vector<16x128xf32>, vector<8x128xf32> -> vector<8x128xf32>
    %399 = arith.truncf %398 : vector<8x128xf32> to vector<8x128xbf16>
    %c0_262 = arith.constant 0 : index
    %c0_263 = arith.constant 0 : index
    %c0_264 = arith.constant 0 : index
    %400 = vector.load %arg8[%c0_262, %c0_263, %c0_264] : memref<3x128x128xbf16, #tpu.memory_space<vmem>>, vector<1x128x128xbf16>
    %401 = vector.shape_cast %400 : vector<1x128x128xbf16> to vector<128x128xbf16>
    %cst_265 = arith.constant dense<0.000000e+00> : vector<8x128xf32>
    %402 = tpu.matmul %399, %401, %cst_265 {dimension_numbers = #tpu.dot_dimension_numbers<[1], [0], [0], [1], [0, 0, 1, 1], [], []>} : vector<8x128xbf16>, vector<128x128xbf16>, vector<8x128xf32> -> vector<8x128xf32>
    %c1_266 = arith.constant 1 : index
    %c0_267 = arith.constant 0 : index
    %c0_268 = arith.constant 0 : index
    %403 = vector.load %arg7[%c1_266, %c0_267, %c0_268] : memref<3x16x32xf32, #tpu.memory_space<vmem>>, vector<1x16x32xf32>
    %404 = vector.shape_cast %403 : vector<1x16x32xf32> to vector<16x32xf32>
    %405 = vector.extract_strided_slice %404 {offsets = [0, 0], sizes = [8, 16], strides = [1, 1]} : vector<16x32xf32> to vector<8x16xf32>
    %cst_269 = arith.constant dense<0.000000e+00> : vector<8x128xf32>
    %406 = tpu.matmul %405, %394, %cst_269 {dimension_numbers = #tpu.dot_dimension_numbers<[1], [0], [0], [1], [0, 0, 1, 1], [], []>} : vector<8x16xf32>, vector<16x128xf32>, vector<8x128xf32> -> vector<8x128xf32>
    %407 = arith.truncf %406 : vector<8x128xf32> to vector<8x128xbf16>
    %c1_270 = arith.constant 1 : index
    %c0_271 = arith.constant 0 : index
    %c0_272 = arith.constant 0 : index
    %408 = vector.load %arg8[%c1_270, %c0_271, %c0_272] : memref<3x128x128xbf16, #tpu.memory_space<vmem>>, vector<1x128x128xbf16>
    %409 = vector.shape_cast %408 : vector<1x128x128xbf16> to vector<128x128xbf16>
    %cst_273 = arith.constant dense<0.000000e+00> : vector<8x128xf32>
    %410 = tpu.matmul %407, %409, %cst_273 {dimension_numbers = #tpu.dot_dimension_numbers<[1], [0], [0], [1], [0, 0, 1, 1], [], []>} : vector<8x128xbf16>, vector<128x128xbf16>, vector<8x128xf32> -> vector<8x128xf32>
    %411 = arith.addf %402, %410 : vector<8x128xf32>
    %c2_274 = arith.constant 2 : index
    %c0_275 = arith.constant 0 : index
    %c0_276 = arith.constant 0 : index
    %412 = vector.load %arg7[%c2_274, %c0_275, %c0_276] : memref<3x16x32xf32, #tpu.memory_space<vmem>>, vector<1x16x32xf32>
    %413 = vector.shape_cast %412 : vector<1x16x32xf32> to vector<16x32xf32>
    %414 = vector.extract_strided_slice %413 {offsets = [0, 0], sizes = [8, 16], strides = [1, 1]} : vector<16x32xf32> to vector<8x16xf32>
    %cst_277 = arith.constant dense<0.000000e+00> : vector<8x128xf32>
    %415 = tpu.matmul %414, %394, %cst_277 {dimension_numbers = #tpu.dot_dimension_numbers<[1], [0], [0], [1], [0, 0, 1, 1], [], []>} : vector<8x16xf32>, vector<16x128xf32>, vector<8x128xf32> -> vector<8x128xf32>
    %416 = arith.truncf %415 : vector<8x128xf32> to vector<8x128xbf16>
    %c2_278 = arith.constant 2 : index
    %c0_279 = arith.constant 0 : index
    %c0_280 = arith.constant 0 : index
    %417 = vector.load %arg8[%c2_278, %c0_279, %c0_280] : memref<3x128x128xbf16, #tpu.memory_space<vmem>>, vector<1x128x128xbf16>
    %418 = vector.shape_cast %417 : vector<1x128x128xbf16> to vector<128x128xbf16>
    %cst_281 = arith.constant dense<0.000000e+00> : vector<8x128xf32>
    %419 = tpu.matmul %416, %418, %cst_281 {dimension_numbers = #tpu.dot_dimension_numbers<[1], [0], [0], [1], [0, 0, 1, 1], [], []>} : vector<8x128xbf16>, vector<128x128xbf16>, vector<8x128xf32> -> vector<8x128xf32>
    %420 = arith.addf %411, %419 : vector<8x128xf32>
    %c0_282 = arith.constant 0 : index
    %c0_283 = arith.constant 0 : index
    %421 = vector.load %arg9[%c0_282, %c0_283] : memref<1x128xf32, #tpu.memory_space<vmem>>, vector<1x128xf32>
    %422 = vector.broadcast %421 : vector<1x128xf32> to vector<8x128xf32>
    %423 = arith.addf %420, %422 : vector<8x128xf32>
    %cst_284 = arith.constant 0.000000e+00 : f32
    %424 = vector.broadcast %cst_284 : f32 to vector<8x128xf32>
    %425 = arith.maximumf %423, %424 : vector<8x128xf32>
    %426 = arith.subf %425, %250 : vector<8x128xf32>
    %427 = arith.mulf %426, %426 : vector<8x128xf32>
    %428 = vector.shape_cast %427 : vector<8x128xf32> to vector<1x8x128xf32>
    %cst_285 = arith.constant dense<0.000000e+00> : vector<1xf32>
    %429 = vector.multi_reduction <add>, %428, %cst_285 [1, 2] : vector<1x8x128xf32> to vector<1xf32>
    %430 = vector.shape_cast %429 : vector<1xf32> to vector<1x1x1xf32>
    %431 = vector.extract %430[0, 0, 0] : f32 from vector<1x1x1xf32>
    %cst_286 = arith.constant 1.024000e+03 : f32
    %432 = arith.divf %431, %cst_286 : f32
    %433 = vector.extract_strided_slice %28 {offsets = [32, 0], sizes = [32, 128], strides = [1, 1]} : vector<64x128xf32> to vector<32x128xf32>
    %434 = tpu.iota {dimensions = array<i32: 0>} : vector<128x8xi32>
    %435 = tpu.iota {dimensions = array<i32: 1>} : vector<128x8xi32>
    %c7_i32 = arith.constant 7 : i32
    %436 = vector.broadcast %c7_i32 : i32 to vector<128x8xi32>
    %437 = arith.andi %434, %436 : vector<128x8xi32>
    %438 = arith.cmpi eq, %437, %435 : vector<128x8xi32>
    %439 = arith.extui %438 : vector<128x8xi1> to vector<128x8xi32>
    %440 = arith.sitofp %439 : vector<128x8xi32> to vector<128x8xf32>
    %441 = tpu.iota {dimensions = array<i32: 1>} : vector<2x32xi32>
    %442 = tpu.iota {dimensions = array<i32: 0>} : vector<2x32xi32>
    %c16_i32 = arith.constant 16 : i32
    %443 = vector.broadcast %c16_i32 : i32 to vector<2x32xi32>
    %444 = arith.muli %442, %443 : vector<2x32xi32>
    %445 = arith.cmpi sge, %441, %444 : vector<2x32xi32>
    %c1_i32_287 = arith.constant 1 : i32
    %446 = vector.broadcast %c1_i32_287 : i32 to vector<2x32xi32>
    %447 = arith.addi %442, %446 : vector<2x32xi32>
    %c16_i32_288 = arith.constant 16 : i32
    %448 = vector.broadcast %c16_i32_288 : i32 to vector<2x32xi32>
    %449 = arith.muli %447, %448 : vector<2x32xi32>
    %450 = arith.cmpi slt, %441, %449 : vector<2x32xi32>
    %451 = arith.andi %445, %450 : vector<2x32xi1>
    %452 = arith.extui %451 : vector<2x32xi1> to vector<2x32xi32>
    %453 = arith.sitofp %452 : vector<2x32xi32> to vector<2x32xf32>
    %cst_289 = arith.constant dense<0.000000e+00> : vector<32x8xf32>
    %454 = tpu.matmul %433, %440, %cst_289 {dimension_numbers = #tpu.dot_dimension_numbers<[1], [0], [0], [1], [0, 0, 1, 1], [], []>} : vector<32x128xf32>, vector<128x8xf32>, vector<32x8xf32> -> vector<32x8xf32>
    %cst_290 = arith.constant dense<0.000000e+00> : vector<2x8xf32>
    %455 = tpu.matmul %453, %454, %cst_290 {dimension_numbers = #tpu.dot_dimension_numbers<[1], [0], [0], [1], [0, 0, 1, 1], [], []>} : vector<2x32xf32>, vector<32x8xf32>, vector<2x8xf32> -> vector<2x8xf32>
    %cst_291 = arith.constant 3.906250e-03 : f32
    %456 = vector.broadcast %cst_291 : f32 to vector<2x8xf32>
    %457 = arith.mulf %456, %455 : vector<2x8xf32>
    %458 = tpu.iota {dimensions = array<i32: 1>} : vector<8x128xi32>
    %459 = tpu.iota {dimensions = array<i32: 0>} : vector<8x128xi32>
    %c7_i32_292 = arith.constant 7 : i32
    %460 = vector.broadcast %c7_i32_292 : i32 to vector<8x128xi32>
    %461 = arith.andi %458, %460 : vector<8x128xi32>
    %462 = arith.cmpi eq, %461, %459 : vector<8x128xi32>
    %463 = arith.extui %462 : vector<8x128xi1> to vector<8x128xi32>
    %464 = arith.sitofp %463 : vector<8x128xi32> to vector<8x128xf32>
    %cst_293 = arith.constant dense<0.000000e+00> : vector<2x128xf32>
    %465 = tpu.matmul %457, %464, %cst_293 {dimension_numbers = #tpu.dot_dimension_numbers<[1], [0], [0], [1], [0, 0, 1, 1], [], []>} : vector<2x8xf32>, vector<8x128xf32>, vector<2x128xf32> -> vector<2x128xf32>
    %466 = tpu.iota {dimensions = array<i32: 0>} : vector<32x2xi32>
    %467 = tpu.iota {dimensions = array<i32: 1>} : vector<32x2xi32>
    %c16_i32_294 = arith.constant 16 : i32
    %468 = vector.broadcast %c16_i32_294 : i32 to vector<32x2xi32>
    %469 = arith.muli %467, %468 : vector<32x2xi32>
    %470 = arith.cmpi sge, %466, %469 : vector<32x2xi32>
    %c1_i32_295 = arith.constant 1 : i32
    %471 = vector.broadcast %c1_i32_295 : i32 to vector<32x2xi32>
    %472 = arith.addi %467, %471 : vector<32x2xi32>
    %c16_i32_296 = arith.constant 16 : i32
    %473 = vector.broadcast %c16_i32_296 : i32 to vector<32x2xi32>
    %474 = arith.muli %472, %473 : vector<32x2xi32>
    %475 = arith.cmpi slt, %466, %474 : vector<32x2xi32>
    %476 = arith.andi %470, %475 : vector<32x2xi1>
    %477 = arith.extui %476 : vector<32x2xi1> to vector<32x2xi32>
    %478 = arith.sitofp %477 : vector<32x2xi32> to vector<32x2xf32>
    %cst_297 = arith.constant dense<0.000000e+00> : vector<32x128xf32>
    %479 = tpu.matmul %478, %465, %cst_297 {dimension_numbers = #tpu.dot_dimension_numbers<[1], [0], [0], [1], [0, 0, 1, 1], [], []>} : vector<32x2xf32>, vector<2x128xf32>, vector<32x128xf32> -> vector<32x128xf32>
    %480 = arith.subf %433, %479 : vector<32x128xf32>
    %481 = arith.mulf %480, %480 : vector<32x128xf32>
    %cst_298 = arith.constant dense<0.000000e+00> : vector<32x8xf32>
    %482 = tpu.matmul %481, %440, %cst_298 {dimension_numbers = #tpu.dot_dimension_numbers<[1], [0], [0], [1], [0, 0, 1, 1], [], []>} : vector<32x128xf32>, vector<128x8xf32>, vector<32x8xf32> -> vector<32x8xf32>
    %cst_299 = arith.constant dense<0.000000e+00> : vector<2x8xf32>
    %483 = tpu.matmul %453, %482, %cst_299 {dimension_numbers = #tpu.dot_dimension_numbers<[1], [0], [0], [1], [0, 0, 1, 1], [], []>} : vector<2x32xf32>, vector<32x8xf32>, vector<2x8xf32> -> vector<2x8xf32>
    %cst_300 = arith.constant 3.906250e-03 : f32
    %484 = vector.broadcast %cst_300 : f32 to vector<2x8xf32>
    %485 = arith.mulf %484, %483 : vector<2x8xf32>
    %486 = tpu.iota {dimensions = array<i32: 0>} : vector<128x8xi32>
    %487 = tpu.iota {dimensions = array<i32: 1>} : vector<128x8xi32>
    %c7_i32_301 = arith.constant 7 : i32
    %488 = vector.broadcast %c7_i32_301 : i32 to vector<128x8xi32>
    %489 = arith.andi %486, %488 : vector<128x8xi32>
    %490 = arith.cmpi eq, %489, %487 : vector<128x8xi32>
    %491 = arith.extui %490 : vector<128x8xi1> to vector<128x8xi32>
    %492 = arith.sitofp %491 : vector<128x8xi32> to vector<128x8xf32>
    %493 = tpu.iota {dimensions = array<i32: 1>} : vector<2x32xi32>
    %494 = tpu.iota {dimensions = array<i32: 0>} : vector<2x32xi32>
    %c16_i32_302 = arith.constant 16 : i32
    %495 = vector.broadcast %c16_i32_302 : i32 to vector<2x32xi32>
    %496 = arith.muli %494, %495 : vector<2x32xi32>
    %497 = arith.cmpi sge, %493, %496 : vector<2x32xi32>
    %c1_i32_303 = arith.constant 1 : i32
    %498 = vector.broadcast %c1_i32_303 : i32 to vector<2x32xi32>
    %499 = arith.addi %494, %498 : vector<2x32xi32>
    %c16_i32_304 = arith.constant 16 : i32
    %500 = vector.broadcast %c16_i32_304 : i32 to vector<2x32xi32>
    %501 = arith.muli %499, %500 : vector<2x32xi32>
    %502 = arith.cmpi slt, %493, %501 : vector<2x32xi32>
    %503 = arith.andi %497, %502 : vector<2x32xi1>
    %504 = arith.extui %503 : vector<2x32xi1> to vector<2x32xi32>
    %505 = arith.sitofp %504 : vector<2x32xi32> to vector<2x32xf32>
    %cst_305 = arith.constant dense<0.000000e+00> : vector<32x8xf32>
    %506 = tpu.matmul %363, %492, %cst_305 {dimension_numbers = #tpu.dot_dimension_numbers<[1], [0], [0], [1], [0, 0, 1, 1], [], []>} : vector<32x128xf32>, vector<128x8xf32>, vector<32x8xf32> -> vector<32x8xf32>
    %cst_306 = arith.constant dense<0.000000e+00> : vector<2x8xf32>
    %507 = tpu.matmul %505, %506, %cst_306 {dimension_numbers = #tpu.dot_dimension_numbers<[1], [0], [0], [1], [0, 0, 1, 1], [], []>} : vector<2x32xf32>, vector<32x8xf32>, vector<2x8xf32> -> vector<2x8xf32>
    %cst_307 = arith.constant 3.906250e-03 : f32
    %508 = vector.broadcast %cst_307 : f32 to vector<2x8xf32>
    %509 = arith.mulf %508, %507 : vector<2x8xf32>
    %510 = tpu.iota {dimensions = array<i32: 1>} : vector<8x128xi32>
    %511 = tpu.iota {dimensions = array<i32: 0>} : vector<8x128xi32>
    %c7_i32_308 = arith.constant 7 : i32
    %512 = vector.broadcast %c7_i32_308 : i32 to vector<8x128xi32>
    %513 = arith.andi %510, %512 : vector<8x128xi32>
    %514 = arith.cmpi eq, %513, %511 : vector<8x128xi32>
    %515 = arith.extui %514 : vector<8x128xi1> to vector<8x128xi32>
    %516 = arith.sitofp %515 : vector<8x128xi32> to vector<8x128xf32>
    %cst_309 = arith.constant dense<0.000000e+00> : vector<2x128xf32>
    %517 = tpu.matmul %509, %516, %cst_309 {dimension_numbers = #tpu.dot_dimension_numbers<[1], [0], [0], [1], [0, 0, 1, 1], [], []>} : vector<2x8xf32>, vector<8x128xf32>, vector<2x128xf32> -> vector<2x128xf32>
    %518 = tpu.iota {dimensions = array<i32: 0>} : vector<32x2xi32>
    %519 = tpu.iota {dimensions = array<i32: 1>} : vector<32x2xi32>
    %c16_i32_310 = arith.constant 16 : i32
    %520 = vector.broadcast %c16_i32_310 : i32 to vector<32x2xi32>
    %521 = arith.muli %519, %520 : vector<32x2xi32>
    %522 = arith.cmpi sge, %518, %521 : vector<32x2xi32>
    %c1_i32_311 = arith.constant 1 : i32
    %523 = vector.broadcast %c1_i32_311 : i32 to vector<32x2xi32>
    %524 = arith.addi %519, %523 : vector<32x2xi32>
    %c16_i32_312 = arith.constant 16 : i32
    %525 = vector.broadcast %c16_i32_312 : i32 to vector<32x2xi32>
    %526 = arith.muli %524, %525 : vector<32x2xi32>
    %527 = arith.cmpi slt, %518, %526 : vector<32x2xi32>
    %528 = arith.andi %522, %527 : vector<32x2xi1>
    %529 = arith.extui %528 : vector<32x2xi1> to vector<32x2xi32>
    %530 = arith.sitofp %529 : vector<32x2xi32> to vector<32x2xf32>
    %cst_313 = arith.constant dense<0.000000e+00> : vector<32x128xf32>
    %531 = tpu.matmul %530, %517, %cst_313 {dimension_numbers = #tpu.dot_dimension_numbers<[1], [0], [0], [1], [0, 0, 1, 1], [], []>} : vector<32x2xf32>, vector<2x128xf32>, vector<32x128xf32> -> vector<32x128xf32>
    %532 = arith.subf %363, %531 : vector<32x128xf32>
    %533 = arith.mulf %532, %532 : vector<32x128xf32>
    %cst_314 = arith.constant dense<0.000000e+00> : vector<32x8xf32>
    %534 = tpu.matmul %533, %492, %cst_314 {dimension_numbers = #tpu.dot_dimension_numbers<[1], [0], [0], [1], [0, 0, 1, 1], [], []>} : vector<32x128xf32>, vector<128x8xf32>, vector<32x8xf32> -> vector<32x8xf32>
    %cst_315 = arith.constant dense<0.000000e+00> : vector<2x8xf32>
    %535 = tpu.matmul %505, %534, %cst_315 {dimension_numbers = #tpu.dot_dimension_numbers<[1], [0], [0], [1], [0, 0, 1, 1], [], []>} : vector<2x32xf32>, vector<32x8xf32>, vector<2x8xf32> -> vector<2x8xf32>
    %cst_316 = arith.constant 3.906250e-03 : f32
    %536 = vector.broadcast %cst_316 : f32 to vector<2x8xf32>
    %537 = arith.mulf %536, %535 : vector<2x8xf32>
    %538 = arith.subf %509, %457 : vector<2x8xf32>
    %539 = arith.mulf %538, %538 : vector<2x8xf32>
    %540 = vector.shape_cast %539 : vector<2x8xf32> to vector<1x2x8xf32>
    %cst_317 = arith.constant dense<0.000000e+00> : vector<1xf32>
    %541 = vector.multi_reduction <add>, %540, %cst_317 [1, 2] : vector<1x2x8xf32> to vector<1xf32>
    %542 = vector.shape_cast %541 : vector<1xf32> to vector<1x1x1xf32>
    %543 = vector.extract %542[0, 0, 0] : f32 from vector<1x1x1xf32>
    %cst_318 = arith.constant 1.600000e+01 : f32
    %544 = arith.divf %543, %cst_318 : f32
    %cst_319 = arith.constant 0.000000e+00 : f32
    %545 = arith.addf %cst_319, %544 : f32
    %cst_320 = arith.constant 9.99999974E-6 : f32
    %546 = vector.broadcast %cst_320 : f32 to vector<2x8xf32>
    %547 = arith.addf %537, %546 : vector<2x8xf32>
    %548 = math.sqrt %547 : vector<2x8xf32>
    %cst_321 = arith.constant 9.99999974E-6 : f32
    %549 = vector.broadcast %cst_321 : f32 to vector<2x8xf32>
    %550 = arith.addf %485, %549 : vector<2x8xf32>
    %551 = math.sqrt %550 : vector<2x8xf32>
    %552 = arith.subf %548, %551 : vector<2x8xf32>
    %553 = arith.mulf %552, %552 : vector<2x8xf32>
    %554 = vector.shape_cast %553 : vector<2x8xf32> to vector<1x2x8xf32>
    %cst_322 = arith.constant dense<0.000000e+00> : vector<1xf32>
    %555 = vector.multi_reduction <add>, %554, %cst_322 [1, 2] : vector<1x2x8xf32> to vector<1xf32>
    %556 = vector.shape_cast %555 : vector<1xf32> to vector<1x1x1xf32>
    %557 = vector.extract %556[0, 0, 0] : f32 from vector<1x1x1xf32>
    %cst_323 = arith.constant 1.600000e+01 : f32
    %558 = arith.divf %557, %cst_323 : f32
    %559 = arith.addf %545, %558 : f32
    %560 = vector.extract_strided_slice %56 {offsets = [16, 0], sizes = [16, 128], strides = [1, 1]} : vector<32x128xf32> to vector<16x128xf32>
    %561 = tpu.iota {dimensions = array<i32: 0>} : vector<128x16xi32>
    %562 = tpu.iota {dimensions = array<i32: 1>} : vector<128x16xi32>
    %c15_i32 = arith.constant 15 : i32
    %563 = vector.broadcast %c15_i32 : i32 to vector<128x16xi32>
    %564 = arith.andi %561, %563 : vector<128x16xi32>
    %565 = arith.cmpi eq, %564, %562 : vector<128x16xi32>
    %566 = arith.extui %565 : vector<128x16xi1> to vector<128x16xi32>
    %567 = arith.sitofp %566 : vector<128x16xi32> to vector<128x16xf32>
    %568 = tpu.iota {dimensions = array<i32: 1>} : vector<2x16xi32>
    %569 = tpu.iota {dimensions = array<i32: 0>} : vector<2x16xi32>
    %c8_i32 = arith.constant 8 : i32
    %570 = vector.broadcast %c8_i32 : i32 to vector<2x16xi32>
    %571 = arith.muli %569, %570 : vector<2x16xi32>
    %572 = arith.cmpi sge, %568, %571 : vector<2x16xi32>
    %c1_i32_324 = arith.constant 1 : i32
    %573 = vector.broadcast %c1_i32_324 : i32 to vector<2x16xi32>
    %574 = arith.addi %569, %573 : vector<2x16xi32>
    %c8_i32_325 = arith.constant 8 : i32
    %575 = vector.broadcast %c8_i32_325 : i32 to vector<2x16xi32>
    %576 = arith.muli %574, %575 : vector<2x16xi32>
    %577 = arith.cmpi slt, %568, %576 : vector<2x16xi32>
    %578 = arith.andi %572, %577 : vector<2x16xi1>
    %579 = arith.extui %578 : vector<2x16xi1> to vector<2x16xi32>
    %580 = arith.sitofp %579 : vector<2x16xi32> to vector<2x16xf32>
    %cst_326 = arith.constant dense<0.000000e+00> : vector<16x16xf32>
    %581 = tpu.matmul %560, %567, %cst_326 {dimension_numbers = #tpu.dot_dimension_numbers<[1], [0], [0], [1], [0, 0, 1, 1], [], []>} : vector<16x128xf32>, vector<128x16xf32>, vector<16x16xf32> -> vector<16x16xf32>
    %cst_327 = arith.constant dense<0.000000e+00> : vector<2x16xf32>
    %582 = tpu.matmul %580, %581, %cst_327 {dimension_numbers = #tpu.dot_dimension_numbers<[1], [0], [0], [1], [0, 0, 1, 1], [], []>} : vector<2x16xf32>, vector<16x16xf32>, vector<2x16xf32> -> vector<2x16xf32>
    %cst_328 = arith.constant 1.562500e-02 : f32
    %583 = vector.broadcast %cst_328 : f32 to vector<2x16xf32>
    %584 = arith.mulf %583, %582 : vector<2x16xf32>
    %585 = tpu.iota {dimensions = array<i32: 1>} : vector<16x128xi32>
    %586 = tpu.iota {dimensions = array<i32: 0>} : vector<16x128xi32>
    %c15_i32_329 = arith.constant 15 : i32
    %587 = vector.broadcast %c15_i32_329 : i32 to vector<16x128xi32>
    %588 = arith.andi %585, %587 : vector<16x128xi32>
    %589 = arith.cmpi eq, %588, %586 : vector<16x128xi32>
    %590 = arith.extui %589 : vector<16x128xi1> to vector<16x128xi32>
    %591 = arith.sitofp %590 : vector<16x128xi32> to vector<16x128xf32>
    %cst_330 = arith.constant dense<0.000000e+00> : vector<2x128xf32>
    %592 = tpu.matmul %584, %591, %cst_330 {dimension_numbers = #tpu.dot_dimension_numbers<[1], [0], [0], [1], [0, 0, 1, 1], [], []>} : vector<2x16xf32>, vector<16x128xf32>, vector<2x128xf32> -> vector<2x128xf32>
    %593 = tpu.iota {dimensions = array<i32: 0>} : vector<16x2xi32>
    %594 = tpu.iota {dimensions = array<i32: 1>} : vector<16x2xi32>
    %c8_i32_331 = arith.constant 8 : i32
    %595 = vector.broadcast %c8_i32_331 : i32 to vector<16x2xi32>
    %596 = arith.muli %594, %595 : vector<16x2xi32>
    %597 = arith.cmpi sge, %593, %596 : vector<16x2xi32>
    %c1_i32_332 = arith.constant 1 : i32
    %598 = vector.broadcast %c1_i32_332 : i32 to vector<16x2xi32>
    %599 = arith.addi %594, %598 : vector<16x2xi32>
    %c8_i32_333 = arith.constant 8 : i32
    %600 = vector.broadcast %c8_i32_333 : i32 to vector<16x2xi32>
    %601 = arith.muli %599, %600 : vector<16x2xi32>
    %602 = arith.cmpi slt, %593, %601 : vector<16x2xi32>
    %603 = arith.andi %597, %602 : vector<16x2xi1>
    %604 = arith.extui %603 : vector<16x2xi1> to vector<16x2xi32>
    %605 = arith.sitofp %604 : vector<16x2xi32> to vector<16x2xf32>
    %cst_334 = arith.constant dense<0.000000e+00> : vector<16x128xf32>
    %606 = tpu.matmul %605, %592, %cst_334 {dimension_numbers = #tpu.dot_dimension_numbers<[1], [0], [0], [1], [0, 0, 1, 1], [], []>} : vector<16x2xf32>, vector<2x128xf32>, vector<16x128xf32> -> vector<16x128xf32>
    %607 = arith.subf %560, %606 : vector<16x128xf32>
    %608 = arith.mulf %607, %607 : vector<16x128xf32>
    %cst_335 = arith.constant dense<0.000000e+00> : vector<16x16xf32>
    %609 = tpu.matmul %608, %567, %cst_335 {dimension_numbers = #tpu.dot_dimension_numbers<[1], [0], [0], [1], [0, 0, 1, 1], [], []>} : vector<16x128xf32>, vector<128x16xf32>, vector<16x16xf32> -> vector<16x16xf32>
    %cst_336 = arith.constant dense<0.000000e+00> : vector<2x16xf32>
    %610 = tpu.matmul %580, %609, %cst_336 {dimension_numbers = #tpu.dot_dimension_numbers<[1], [0], [0], [1], [0, 0, 1, 1], [], []>} : vector<2x16xf32>, vector<16x16xf32>, vector<2x16xf32> -> vector<2x16xf32>
    %cst_337 = arith.constant 1.562500e-02 : f32
    %611 = vector.broadcast %cst_337 : f32 to vector<2x16xf32>
    %612 = arith.mulf %611, %610 : vector<2x16xf32>
    %613 = tpu.iota {dimensions = array<i32: 0>} : vector<128x16xi32>
    %614 = tpu.iota {dimensions = array<i32: 1>} : vector<128x16xi32>
    %c15_i32_338 = arith.constant 15 : i32
    %615 = vector.broadcast %c15_i32_338 : i32 to vector<128x16xi32>
    %616 = arith.andi %613, %615 : vector<128x16xi32>
    %617 = arith.cmpi eq, %616, %614 : vector<128x16xi32>
    %618 = arith.extui %617 : vector<128x16xi1> to vector<128x16xi32>
    %619 = arith.sitofp %618 : vector<128x16xi32> to vector<128x16xf32>
    %620 = tpu.iota {dimensions = array<i32: 1>} : vector<2x16xi32>
    %621 = tpu.iota {dimensions = array<i32: 0>} : vector<2x16xi32>
    %c8_i32_339 = arith.constant 8 : i32
    %622 = vector.broadcast %c8_i32_339 : i32 to vector<2x16xi32>
    %623 = arith.muli %621, %622 : vector<2x16xi32>
    %624 = arith.cmpi sge, %620, %623 : vector<2x16xi32>
    %c1_i32_340 = arith.constant 1 : i32
    %625 = vector.broadcast %c1_i32_340 : i32 to vector<2x16xi32>
    %626 = arith.addi %621, %625 : vector<2x16xi32>
    %c8_i32_341 = arith.constant 8 : i32
    %627 = vector.broadcast %c8_i32_341 : i32 to vector<2x16xi32>
    %628 = arith.muli %626, %627 : vector<2x16xi32>
    %629 = arith.cmpi slt, %620, %628 : vector<2x16xi32>
    %630 = arith.andi %624, %629 : vector<2x16xi1>
    %631 = arith.extui %630 : vector<2x16xi1> to vector<2x16xi32>
    %632 = arith.sitofp %631 : vector<2x16xi32> to vector<2x16xf32>
    %cst_342 = arith.constant dense<0.000000e+00> : vector<16x16xf32>
    %633 = tpu.matmul %394, %619, %cst_342 {dimension_numbers = #tpu.dot_dimension_numbers<[1], [0], [0], [1], [0, 0, 1, 1], [], []>} : vector<16x128xf32>, vector<128x16xf32>, vector<16x16xf32> -> vector<16x16xf32>
    %cst_343 = arith.constant dense<0.000000e+00> : vector<2x16xf32>
    %634 = tpu.matmul %632, %633, %cst_343 {dimension_numbers = #tpu.dot_dimension_numbers<[1], [0], [0], [1], [0, 0, 1, 1], [], []>} : vector<2x16xf32>, vector<16x16xf32>, vector<2x16xf32> -> vector<2x16xf32>
    %cst_344 = arith.constant 1.562500e-02 : f32
    %635 = vector.broadcast %cst_344 : f32 to vector<2x16xf32>
    %636 = arith.mulf %635, %634 : vector<2x16xf32>
    %637 = tpu.iota {dimensions = array<i32: 1>} : vector<16x128xi32>
    %638 = tpu.iota {dimensions = array<i32: 0>} : vector<16x128xi32>
    %c15_i32_345 = arith.constant 15 : i32
    %639 = vector.broadcast %c15_i32_345 : i32 to vector<16x128xi32>
    %640 = arith.andi %637, %639 : vector<16x128xi32>
    %641 = arith.cmpi eq, %640, %638 : vector<16x128xi32>
    %642 = arith.extui %641 : vector<16x128xi1> to vector<16x128xi32>
    %643 = arith.sitofp %642 : vector<16x128xi32> to vector<16x128xf32>
    %cst_346 = arith.constant dense<0.000000e+00> : vector<2x128xf32>
    %644 = tpu.matmul %636, %643, %cst_346 {dimension_numbers = #tpu.dot_dimension_numbers<[1], [0], [0], [1], [0, 0, 1, 1], [], []>} : vector<2x16xf32>, vector<16x128xf32>, vector<2x128xf32> -> vector<2x128xf32>
    %645 = tpu.iota {dimensions = array<i32: 0>} : vector<16x2xi32>
    %646 = tpu.iota {dimensions = array<i32: 1>} : vector<16x2xi32>
    %c8_i32_347 = arith.constant 8 : i32
    %647 = vector.broadcast %c8_i32_347 : i32 to vector<16x2xi32>
    %648 = arith.muli %646, %647 : vector<16x2xi32>
    %649 = arith.cmpi sge, %645, %648 : vector<16x2xi32>
    %c1_i32_348 = arith.constant 1 : i32
    %650 = vector.broadcast %c1_i32_348 : i32 to vector<16x2xi32>
    %651 = arith.addi %646, %650 : vector<16x2xi32>
    %c8_i32_349 = arith.constant 8 : i32
    %652 = vector.broadcast %c8_i32_349 : i32 to vector<16x2xi32>
    %653 = arith.muli %651, %652 : vector<16x2xi32>
    %654 = arith.cmpi slt, %645, %653 : vector<16x2xi32>
    %655 = arith.andi %649, %654 : vector<16x2xi1>
    %656 = arith.extui %655 : vector<16x2xi1> to vector<16x2xi32>
    %657 = arith.sitofp %656 : vector<16x2xi32> to vector<16x2xf32>
    %cst_350 = arith.constant dense<0.000000e+00> : vector<16x128xf32>
    %658 = tpu.matmul %657, %644, %cst_350 {dimension_numbers = #tpu.dot_dimension_numbers<[1], [0], [0], [1], [0, 0, 1, 1], [], []>} : vector<16x2xf32>, vector<2x128xf32>, vector<16x128xf32> -> vector<16x128xf32>
    %659 = arith.subf %394, %658 : vector<16x128xf32>
    %660 = arith.mulf %659, %659 : vector<16x128xf32>
    %cst_351 = arith.constant dense<0.000000e+00> : vector<16x16xf32>
    %661 = tpu.matmul %660, %619, %cst_351 {dimension_numbers = #tpu.dot_dimension_numbers<[1], [0], [0], [1], [0, 0, 1, 1], [], []>} : vector<16x128xf32>, vector<128x16xf32>, vector<16x16xf32> -> vector<16x16xf32>
    %cst_352 = arith.constant dense<0.000000e+00> : vector<2x16xf32>
    %662 = tpu.matmul %632, %661, %cst_352 {dimension_numbers = #tpu.dot_dimension_numbers<[1], [0], [0], [1], [0, 0, 1, 1], [], []>} : vector<2x16xf32>, vector<16x16xf32>, vector<2x16xf32> -> vector<2x16xf32>
    %cst_353 = arith.constant 1.562500e-02 : f32
    %663 = vector.broadcast %cst_353 : f32 to vector<2x16xf32>
    %664 = arith.mulf %663, %662 : vector<2x16xf32>
    %665 = arith.subf %636, %584 : vector<2x16xf32>
    %666 = arith.mulf %665, %665 : vector<2x16xf32>
    %667 = vector.shape_cast %666 : vector<2x16xf32> to vector<1x2x16xf32>
    %cst_354 = arith.constant dense<0.000000e+00> : vector<1xf32>
    %668 = vector.multi_reduction <add>, %667, %cst_354 [1, 2] : vector<1x2x16xf32> to vector<1xf32>
    %669 = vector.shape_cast %668 : vector<1xf32> to vector<1x1x1xf32>
    %670 = vector.extract %669[0, 0, 0] : f32 from vector<1x1x1xf32>
    %cst_355 = arith.constant 3.200000e+01 : f32
    %671 = arith.divf %670, %cst_355 : f32
    %672 = arith.addf %559, %671 : f32
    %cst_356 = arith.constant 9.99999974E-6 : f32
    %673 = vector.broadcast %cst_356 : f32 to vector<2x16xf32>
    %674 = arith.addf %664, %673 : vector<2x16xf32>
    %675 = math.sqrt %674 : vector<2x16xf32>
    %cst_357 = arith.constant 9.99999974E-6 : f32
    %676 = vector.broadcast %cst_357 : f32 to vector<2x16xf32>
    %677 = arith.addf %612, %676 : vector<2x16xf32>
    %678 = math.sqrt %677 : vector<2x16xf32>
    %679 = arith.subf %675, %678 : vector<2x16xf32>
    %680 = arith.mulf %679, %679 : vector<2x16xf32>
    %681 = vector.shape_cast %680 : vector<2x16xf32> to vector<1x2x16xf32>
    %cst_358 = arith.constant dense<0.000000e+00> : vector<1xf32>
    %682 = vector.multi_reduction <add>, %681, %cst_358 [1, 2] : vector<1x2x16xf32> to vector<1xf32>
    %683 = vector.shape_cast %682 : vector<1xf32> to vector<1x1x1xf32>
    %684 = vector.extract %683[0, 0, 0] : f32 from vector<1x1x1xf32>
    %cst_359 = arith.constant 3.200000e+01 : f32
    %685 = arith.divf %684, %cst_359 : f32
    %686 = arith.addf %672, %685 : f32
    %687 = tpu.iota {dimensions = array<i32: 0>} : vector<128x32xi32>
    %688 = tpu.iota {dimensions = array<i32: 1>} : vector<128x32xi32>
    %c31_i32_360 = arith.constant 31 : i32
    %689 = vector.broadcast %c31_i32_360 : i32 to vector<128x32xi32>
    %690 = arith.andi %687, %689 : vector<128x32xi32>
    %691 = arith.cmpi eq, %690, %688 : vector<128x32xi32>
    %692 = arith.extui %691 : vector<128x32xi1> to vector<128x32xi32>
    %693 = arith.sitofp %692 : vector<128x32xi32> to vector<128x32xf32>
    %694 = tpu.iota {dimensions = array<i32: 1>} : vector<2x8xi32>
    %695 = tpu.iota {dimensions = array<i32: 0>} : vector<2x8xi32>
    %c4_i32_361 = arith.constant 4 : i32
    %696 = vector.broadcast %c4_i32_361 : i32 to vector<2x8xi32>
    %697 = arith.muli %695, %696 : vector<2x8xi32>
    %698 = arith.cmpi sge, %694, %697 : vector<2x8xi32>
    %c1_i32_362 = arith.constant 1 : i32
    %699 = vector.broadcast %c1_i32_362 : i32 to vector<2x8xi32>
    %700 = arith.addi %695, %699 : vector<2x8xi32>
    %c4_i32_363 = arith.constant 4 : i32
    %701 = vector.broadcast %c4_i32_363 : i32 to vector<2x8xi32>
    %702 = arith.muli %700, %701 : vector<2x8xi32>
    %703 = arith.cmpi slt, %694, %702 : vector<2x8xi32>
    %704 = arith.andi %698, %703 : vector<2x8xi1>
    %705 = arith.extui %704 : vector<2x8xi1> to vector<2x8xi32>
    %706 = arith.sitofp %705 : vector<2x8xi32> to vector<2x8xf32>
    %cst_364 = arith.constant dense<0.000000e+00> : vector<8x32xf32>
    %707 = tpu.matmul %425, %693, %cst_364 {dimension_numbers = #tpu.dot_dimension_numbers<[1], [0], [0], [1], [0, 0, 1, 1], [], []>} : vector<8x128xf32>, vector<128x32xf32>, vector<8x32xf32> -> vector<8x32xf32>
    %cst_365 = arith.constant dense<0.000000e+00> : vector<2x32xf32>
    %708 = tpu.matmul %706, %707, %cst_365 {dimension_numbers = #tpu.dot_dimension_numbers<[1], [0], [0], [1], [0, 0, 1, 1], [], []>} : vector<2x8xf32>, vector<8x32xf32>, vector<2x32xf32> -> vector<2x32xf32>
    %cst_366 = arith.constant 6.250000e-02 : f32
    %709 = vector.broadcast %cst_366 : f32 to vector<2x32xf32>
    %710 = arith.mulf %709, %708 : vector<2x32xf32>
    %711 = tpu.iota {dimensions = array<i32: 1>} : vector<32x128xi32>
    %712 = tpu.iota {dimensions = array<i32: 0>} : vector<32x128xi32>
    %c31_i32_367 = arith.constant 31 : i32
    %713 = vector.broadcast %c31_i32_367 : i32 to vector<32x128xi32>
    %714 = arith.andi %711, %713 : vector<32x128xi32>
    %715 = arith.cmpi eq, %714, %712 : vector<32x128xi32>
    %716 = arith.extui %715 : vector<32x128xi1> to vector<32x128xi32>
    %717 = arith.sitofp %716 : vector<32x128xi32> to vector<32x128xf32>
    %cst_368 = arith.constant dense<0.000000e+00> : vector<2x128xf32>
    %718 = tpu.matmul %710, %717, %cst_368 {dimension_numbers = #tpu.dot_dimension_numbers<[1], [0], [0], [1], [0, 0, 1, 1], [], []>} : vector<2x32xf32>, vector<32x128xf32>, vector<2x128xf32> -> vector<2x128xf32>
    %719 = tpu.iota {dimensions = array<i32: 0>} : vector<8x2xi32>
    %720 = tpu.iota {dimensions = array<i32: 1>} : vector<8x2xi32>
    %c4_i32_369 = arith.constant 4 : i32
    %721 = vector.broadcast %c4_i32_369 : i32 to vector<8x2xi32>
    %722 = arith.muli %720, %721 : vector<8x2xi32>
    %723 = arith.cmpi sge, %719, %722 : vector<8x2xi32>
    %c1_i32_370 = arith.constant 1 : i32
    %724 = vector.broadcast %c1_i32_370 : i32 to vector<8x2xi32>
    %725 = arith.addi %720, %724 : vector<8x2xi32>
    %c4_i32_371 = arith.constant 4 : i32
    %726 = vector.broadcast %c4_i32_371 : i32 to vector<8x2xi32>
    %727 = arith.muli %725, %726 : vector<8x2xi32>
    %728 = arith.cmpi slt, %719, %727 : vector<8x2xi32>
    %729 = arith.andi %723, %728 : vector<8x2xi1>
    %730 = arith.extui %729 : vector<8x2xi1> to vector<8x2xi32>
    %731 = arith.sitofp %730 : vector<8x2xi32> to vector<8x2xf32>
    %cst_372 = arith.constant dense<0.000000e+00> : vector<8x128xf32>
    %732 = tpu.matmul %731, %718, %cst_372 {dimension_numbers = #tpu.dot_dimension_numbers<[1], [0], [0], [1], [0, 0, 1, 1], [], []>} : vector<8x2xf32>, vector<2x128xf32>, vector<8x128xf32> -> vector<8x128xf32>
    %733 = arith.subf %425, %732 : vector<8x128xf32>
    %734 = arith.mulf %733, %733 : vector<8x128xf32>
    %cst_373 = arith.constant dense<0.000000e+00> : vector<8x32xf32>
    %735 = tpu.matmul %734, %693, %cst_373 {dimension_numbers = #tpu.dot_dimension_numbers<[1], [0], [0], [1], [0, 0, 1, 1], [], []>} : vector<8x128xf32>, vector<128x32xf32>, vector<8x32xf32> -> vector<8x32xf32>
    %cst_374 = arith.constant dense<0.000000e+00> : vector<2x32xf32>
    %736 = tpu.matmul %706, %735, %cst_374 {dimension_numbers = #tpu.dot_dimension_numbers<[1], [0], [0], [1], [0, 0, 1, 1], [], []>} : vector<2x8xf32>, vector<8x32xf32>, vector<2x32xf32> -> vector<2x32xf32>
    %cst_375 = arith.constant 6.250000e-02 : f32
    %737 = vector.broadcast %cst_375 : f32 to vector<2x32xf32>
    %738 = arith.mulf %737, %736 : vector<2x32xf32>
    %739 = arith.subf %710, %162 : vector<2x32xf32>
    %740 = arith.mulf %739, %739 : vector<2x32xf32>
    %741 = vector.shape_cast %740 : vector<2x32xf32> to vector<1x2x32xf32>
    %cst_376 = arith.constant dense<0.000000e+00> : vector<1xf32>
    %742 = vector.multi_reduction <add>, %741, %cst_376 [1, 2] : vector<1x2x32xf32> to vector<1xf32>
    %743 = vector.shape_cast %742 : vector<1xf32> to vector<1x1x1xf32>
    %744 = vector.extract %743[0, 0, 0] : f32 from vector<1x1x1xf32>
    %cst_377 = arith.constant 6.400000e+01 : f32
    %745 = arith.divf %744, %cst_377 : f32
    %746 = arith.addf %686, %745 : f32
    %cst_378 = arith.constant 9.99999974E-6 : f32
    %747 = vector.broadcast %cst_378 : f32 to vector<2x32xf32>
    %748 = arith.addf %738, %747 : vector<2x32xf32>
    %749 = math.sqrt %748 : vector<2x32xf32>
    %cst_379 = arith.constant 9.99999974E-6 : f32
    %750 = vector.broadcast %cst_379 : f32 to vector<2x32xf32>
    %751 = arith.addf %190, %750 : vector<2x32xf32>
    %752 = math.sqrt %751 : vector<2x32xf32>
    %753 = arith.subf %749, %752 : vector<2x32xf32>
    %754 = arith.mulf %753, %753 : vector<2x32xf32>
    %755 = vector.shape_cast %754 : vector<2x32xf32> to vector<1x2x32xf32>
    %cst_380 = arith.constant dense<0.000000e+00> : vector<1xf32>
    %756 = vector.multi_reduction <add>, %755, %cst_380 [1, 2] : vector<1x2x32xf32> to vector<1xf32>
    %757 = vector.shape_cast %756 : vector<1xf32> to vector<1x1x1xf32>
    %758 = vector.extract %757[0, 0, 0] : f32 from vector<1x1x1xf32>
    %cst_381 = arith.constant 6.400000e+01 : f32
    %759 = arith.divf %758, %cst_381 : f32
    %760 = arith.addf %746, %759 : f32
    %cst_382 = arith.constant 1.000000e+01 : f32
    %761 = arith.mulf %cst_382, %760 : f32
    %762 = arith.addf %432, %761 : f32
    %c0_383 = arith.constant 0 : index
    %c0_384 = arith.constant 0 : index
    %763 = memref.load %arg19[%c0_383, %c0_384] : memref<1x1xf32, #tpu.memory_space<smem>>
    memref.store %762, %arg19[%c0_383, %c0_384] : memref<1x1xf32, #tpu.memory_space<smem>>
    return
  }
}

</mosaic_0001>

<bundles_post_ra>
// kernel: forward.1
= control target key start
LH: loop header
LB: loop body
LE: loop exit
PB: predicated region body
PF: predicated region fallthrough
CT: control target
= control target key end

     0   :  { %s15529_s0 = inlined_call_operand.vmem [shape: f32[64,48], index: 0, kind: input, shape index: {}]   ;;  %s15530_s1 = inlined_call_operand.vmem [shape: f32[3,64,64], index: 1, kind: input, shape index: {}]   ;;  %s15531_s2 = inlined_call_operand.hbm [shape: bf16[3,48,128], index: 2, kind: input, shape index: {}]   ;;  %s15532_s3 = inlined_call_operand.vmem [shape: f32[1,128], index: 3, kind: input, shape index: {}]   ;;  %s15533_s4 = inlined_call_operand.vmem [shape: f32[3,32,64], index: 4, kind: input, shape index: {}]   ;;  %s15534_s5 = inlined_call_operand.vmem [shape: bf16[3,128,128], index: 5, kind: input, shape index: {}]   ;;  %s15535_s6 = inlined_call_operand.hbm [shape: f32[1,128], index: 6, kind: input, shape index: {}]   ;;  %s15536_s7 = inlined_call_operand.vmem [shape: f32[3,16,32], index: 7, kind: input, shape index: {}]   ;;  %s15537_s8 = inlined_call_operand.vmem [shape: bf16[3,128,128], index: 8, kind: input, shape index: {}]   ;;  %s15538_s9 = inlined_call_operand.vmem [shape: f32[1,128], index: 9, kind: input, shape index: {}]   ;;  %s15539_s10 = inlined_call_operand.hbm [shape: f32[3,8,8], index: 10, kind: input, shape index: {}]   ;;  %s15540_s11 = inlined_call_operand.vmem [shape: bf16[3,128,64], index: 11, kind: input, shape index: {}]   ;;  %s15541_s12 = inlined_call_operand.hbm [shape: f32[1,64], index: 12, kind: input, shape index: {}]   ;;  %s15542_s13 = inlined_call_operand.vmem [shape: f32[3,16,8], index: 13, kind: input, shape index: {}]   ;;  %s15543_s14 = inlined_call_operand.vmem [shape: bf16[3,64,64], index: 14, kind: input, shape index: {}]   ;;  %s15544_s15 = inlined_call_operand.hbm [shape: f32[1,64], index: 15, kind: input, shape index: {}]   ;;  %s15545_s16 = inlined_call_operand.vmem [shape: f32[3,32,16], index: 16, kind: input, shape index: {}]   ;;  %s15546_s17 = inlined_call_operand.vmem [shape: bf16[3,64,48], index: 17, kind: input, shape index: {}]   ;;  %s15547_s18 = inlined_call_operand.hbm [shape: f32[1,48], index: 18, kind: input, shape index: {}]   ;;  %s15548_s19 = inlined_call_operand.hbm [shape: f32[1,1], index: 19, kind: output, shape index: {}]  }
   0x1   :  { %15618 = sst [smem:[#allocation30_spill]] %s15529_s0 }
   0x2   :  { %15619 = sst [smem:[#allocation31_spill]] %s15530_s1 }
   0x3   :  { %15620 = sst [smem:[#allocation32_spill]] %s15531_s2 }
   0x4   :  { %15621 = sst [smem:[#allocation33_spill]] %s15532_s3 }
   0x5   :  { %24 = vsyncpa [#allocation3], 0 }
   0x6   :  { %25 = vsyncpa [#allocation6], 0 }
   0x7   :  { %26 = vsyncpa [#allocation9], 0 }
   0x8   :  { %27 = vsyncpa [#allocation12], 0 }
   0x9   :  { %28 = vsyncpa [#allocation4], 0  ;;  %s13043_s0 = smov [#allocation5]   ;;  %s13044_s20 = smov [#allocation8]  }
   0xa   :  { %s57_s30 = sshll.u32 %s13043_s0, 4  ;;  %s87_s21 = sshll.u32 %s13044_s20, 4  ;;  %s58_s30 = int_to_ptr.vmem [resolvable:$true] %s57_s30  ;;  %s88_s21 = int_to_ptr.vmem [resolvable:$true] %s87_s21 }
   0xb   :  { %s12891_s2 = scalar_lea.hbm %s15535_s6, 16 }
   0xc   :  { %p12892_p0 = scmp.ne.s32.totalorder %s15535_s6, %s12891_s2  ;;  %p12895_p1 = scmp.lt.u32.totalorder %s12891_s2, %s15535_s6 }
   0xe   :  { %p12897_p2 = pnand %p12895_p1, %p12892_p0 }
  0x10   :  { %12900 = shalt.err (!%p12897_p2)
}
  0x11   :  { %s12901_s26 = scalar_lea.vmem %s58_s30, 16  ;;  %s12905_s27 = scalar_lea.vmem %s58_s30, 32 }
  0x12   :  { %p12902_p3 = scmp.ne.s32.totalorder %s58_s30, %s12901_s26  ;;  %p12906_p4 = scmp.lt.s32.totalorder %s58_s30, %s58_s30 }
  0x13   :  { %p12907_p5 = scmp.lt.s32.totalorder %s12905_s27, %s12901_s26 }
  0x15   :  { %p12908_p6 = por %p12907_p5, %p12906_p4 }
  0x17   :  { %p12909_p7 = pnand %p12908_p6, %p12902_p3 }
  0x19   :  { %12912 = shalt.err (!%p12909_p7)
}
  0x1a   :  { %60 = dma.hbm_to_vmem [thread:$0]  %s15535_s6, 16, %s58_s30, [#allocation6]  }
  0x1b   :  { %s12913_s1 = scalar_lea.hbm %s15541_s12, 16 }
  0x1c   :  { %p12914_p8 = scmp.ne.s32.totalorder %s15541_s12, %s12913_s1  ;;  %p12917_p9 = scmp.lt.u32.totalorder %s12913_s1, %s15541_s12 }
  0x1e   :  { %p12919_p10 = pnand %p12917_p9, %p12914_p8 }
  0x20   :  { %12922 = shalt.err (!%p12919_p10)
}
  0x21   :  { %s12923_s25 = scalar_lea.vmem %s88_s21, 16  ;;  %s12927_s3 = scalar_lea.vmem %s88_s21, 32 }
  0x22   :  { %p12924_p11 = scmp.ne.s32.totalorder %s88_s21, %s12923_s25  ;;  %p12928_p12 = scmp.lt.s32.totalorder %s88_s21, %s88_s21 }
  0x23   :  { %p12929_p13 = scmp.lt.s32.totalorder %s12927_s3, %s12923_s25 }
  0x25   :  { %p12930_p0 = por %p12929_p13, %p12928_p12 }
  0x27   :  { %p12931_p1 = pnand %p12930_p0, %p12924_p11 }
  0x29   :  { %12934 = shalt.err (!%p12931_p1)
}
  0x2a   :  { %90 = dma.hbm_to_vmem [thread:$0]  %s15541_s12, 16, %s88_s21, [#allocation9]  }
  0x2b   :  { %s13045_s26 = smov [#allocation2]   ;;  %s15622_s0 = sld [smem:[#allocation32_spill]] }
  0x2c   :  { %s38_s27 = sshll.u32 %s13045_s26, 4  ;;  %s39_s27 = int_to_ptr.vmem [resolvable:$true] %s38_s27 }
  0x31   :  { %s12935_s20 = scalar_lea.hbm %s15622_s0, 1152 }
  0x32   :  { %p12936_p2 = scmp.ne.s32.totalorder %s15622_s0, %s12935_s20  ;;  %p12939_p3 = scmp.lt.u32.totalorder %s12935_s20, %s15622_s0 }
  0x34   :  { %p12941_p4 = pnand %p12939_p3, %p12936_p2 }
  0x36   :  { %12944 = shalt.err (!%p12941_p4)
}
  0x37   :  { %s12945_s24 = scalar_lea.vmem %s39_s27, 1152  ;;  %p12950_p6 = scmp.lt.s32.totalorder %s39_s27, %s39_s27 }
  0x38   :  { %p12946_p5 = scmp.ne.s32.totalorder %s39_s27, %s12945_s24  ;;  %p12951_p7 = scmp.lt.s32.totalorder %s12945_s24, %s12945_s24 }
  0x3a   :  { %p12952_p8 = por %p12951_p7, %p12950_p6 }
  0x3c   :  { %p12953_p9 = pnand %p12952_p8, %p12946_p5 }
  0x3e   :  { %12956 = shalt.err (!%p12953_p9)
}
  0x3f   :  { %s13046_s12 = smov 64   ;;  %s13047_s21 = smov 4  }
  0x40   :  { %44 = dma.hbm_to_vmem [thread:$0]  %s15622_s0, 1152, %s39_s27, [#allocation3], %s13046_s12, %s13046_s12, %s13047_s21  }
  0x41   :  { %s13048_s6 = smov [#allocation7]   ;;  %s12957_s29 = scalar_lea.hbm %s15539_s10, 384 }
  0x42   :  { %s72_s30 = sshll.u32 %s13048_s6, 4  ;;  %p12958_p10 = scmp.ne.s32.totalorder %s15539_s10, %s12957_s29  ;;  %s73_s30 = int_to_ptr.vmem [resolvable:$true] %s72_s30 }
  0x43   :  { %p12961_p11 = scmp.lt.u32.totalorder %s12957_s29, %s15539_s10 }
  0x45   :  { %p12963_p12 = pnand %p12961_p11, %p12958_p10 }
  0x47   :  { %12966 = shalt.err (!%p12963_p12)
}
  0x48   :  { %s12967_s23 = scalar_lea.vmem %s73_s30, 384  ;;  %p12972_p0 = scmp.lt.s32.totalorder %s73_s30, %s73_s30 }
  0x49   :  { %p12968_p13 = scmp.ne.s32.totalorder %s73_s30, %s12967_s23  ;;  %p12973_p1 = scmp.lt.s32.totalorder %s12967_s23, %s12967_s23 }
  0x4b   :  { %p12974_p2 = por %p12973_p1, %p12972_p0 }
  0x4d   :  { %p12975_p3 = pnand %p12974_p2, %p12968_p13 }
  0x4f   :  { %12978 = shalt.err (!%p12975_p3)
}
  0x50   :  { %s13049_s27 = smov 128   ;;  %s13050_s0 = smov 8  }
  0x51   :  { %78 = dma.hbm_to_vmem [thread:$0]  %s15539_s10, 384, %s73_s30, [#allocation6], %s13049_s27, %s13049_s27, %s13050_s0  }
  0x52   :  { %s13051_s21 = smov [#allocation10]   ;;  %s13052_s3 = smov [#allocation11]  }
  0x53   :  { %s101_s25 = sshll.u32 %s13051_s21, 4  ;;  %s115_s6 = sshll.u32 %s13052_s3, 4  ;;  %s102_s25 = int_to_ptr.vmem [resolvable:$true] %s101_s25  ;;  %s116_s6 = int_to_ptr.vmem [resolvable:$true] %s115_s6 }
  0x54   :  { %s12979_s29 = scalar_lea.hbm %s15544_s15, 16 }
  0x55   :  { %p12980_p4 = scmp.ne.s32.totalorder %s15544_s15, %s12979_s29  ;;  %p12983_p5 = scmp.lt.u32.totalorder %s12979_s29, %s15544_s15 }
  0x57   :  { %p12985_p6 = pnand %p12983_p5, %p12980_p4 }
  0x59   :  { %12988 = shalt.err (!%p12985_p6)
}
  0x5a   :  { %s12989_s10 = scalar_lea.vmem %s102_s25, 16  ;;  %s12993_s30 = scalar_lea.vmem %s102_s25, 32 }
  0x5b   :  { %p12990_p7 = scmp.ne.s32.totalorder %s102_s25, %s12989_s10  ;;  %p12994_p8 = scmp.lt.s32.totalorder %s102_s25, %s102_s25 }
  0x5c   :  { %p12995_p9 = scmp.lt.s32.totalorder %s12993_s30, %s12989_s10 }
  0x5e   :  { %p12996_p10 = por %p12995_p9, %p12994_p8 }
  0x60   :  { %p12997_p11 = pnand %p12996_p10, %p12990_p7 }
  0x62   :  { %13000 = shalt.err (!%p12997_p11)
}
  0x63   :  { %104 = dma.hbm_to_vmem [thread:$0]  %s15544_s15, 16, %s102_s25, [#allocation9]  }
  0x64   :  { %s13001_s12 = scalar_lea.hbm %s15547_s18, 16 }
  0x65   :  { %p13002_p12 = scmp.ne.s32.totalorder %s15547_s18, %s13001_s12  ;;  %p13005_p13 = scmp.lt.u32.totalorder %s13001_s12, %s15547_s18 }
  0x67   :  { %p13007_p0 = pnand %p13005_p13, %p13002_p12 }
  0x69   :  { %13010 = shalt.err (!%p13007_p0)
}
  0x6a   :  { %s13011_s29 = scalar_lea.vmem %s116_s6, 16  ;;  %s13015_s20 = scalar_lea.vmem %s116_s6, 32 }
  0x6b   :  { %p13012_p1 = scmp.ne.s32.totalorder %s116_s6, %s13011_s29  ;;  %p13016_p2 = scmp.lt.s32.totalorder %s116_s6, %s116_s6 }
  0x6c   :  { %p13017_p3 = scmp.lt.s32.totalorder %s13015_s20, %s13011_s29 }
  0x6e   :  { %p13018_p4 = por %p13017_p3, %p13016_p2 }
  0x70   :  { %p13019_p5 = pnand %p13018_p4, %p13012_p1 }
  0x72   :  { %13022 = shalt.err (!%p13019_p5)
}
  0x73   :  { %118 = dma.hbm_to_vmem [thread:$0]  %s15547_s18, 16, %s116_s6, [#allocation12]  }
  0x74   :  { %13033 = dma.done.wait [#allocation3], 1152  }
  0x75   :  { %13034 = vsyncadd [#allocation3], 4294966144 }
  0x76   :  { %13035 = dma.done.wait [#allocation6], 400  }
  0x77   :  { %13036 = vsyncadd [#allocation6], 4294966896 }
  0x78   :  { %13037 = dma.done.wait [#allocation9], 32  }
  0x79   :  { %13038 = vsyncadd [#allocation9], 4294967264 }
  0x7a   :  { %13039 = dma.done.wait [#allocation12], 16  }
  0x7b   :  { %13040 = vsyncadd [#allocation12], 4294967280  ;;  %s15623_s2 = sld [smem:[#allocation30_spill]]  ;;  %vm15554_vm0 = vcmask 523264   ;;  %s15624_s28 = sld [smem:[#allocation31_spill]]  ;;  %v12691_v14 = vld [vmem:[#allocation2 + $0x18] sm:$0xff]  }
  0x7c   :  { %v12692_v37 = vld [vmem:[#allocation2 + $0x20] sm:$0xff]   ;;  %v12693_v38 = vld [vmem:[#allocation2 + $0x28] sm:$0xff]   ;;  %vm15553_vm1 = vcmask 392192   ;;  %v12696_v57 = vld [vmem:[#allocation2 + $0x10] sm:$0xff]   ;;  %s15625_s25 = sld [smem:[#allocation33_spill]]  ;;  %vm15555_vm2 = vcmask 261120  }
  0x7d   :  { %v12694_v39 = vld [vmem:[#allocation2] sm:$0xff]   ;;  %v12695_v50 = vld [vmem:[#allocation2 + $0x8] sm:$0xff]   ;;  %vm15560_vm3 = vmmov 0   ;;  %s13023_s20 = scalar_lea.hbm %s15548_s19, 16 }
  0x7e   :  { %p13024_p6 = scmp.ne.s32.totalorder %s15548_s19, %s13023_s20  ;;  %p13027_p7 = scmp.lt.u32.totalorder %s13023_s20, %s15548_s19 }
  0x80   :  { %p13029_p8 = pnand %p13027_p7, %p13024_p6 }
  0x81   :  { %v138_v0 = vld [vmem:[%s15623_s2] sm:$0xff]  ;;  %v139_v1 = vld [vmem:[%s15623_s2 + $0x8] sm:$0xff]  ;;  %v140_v2 = vld [vmem:[%s15623_s2 + $0x10] sm:$0xff] }
  0x82   :  { %v11960_v3 = vpack.c.bf16 %v139_v1, %v138_v0  ;;  %v141_v4 = vld [vmem:[%s15623_s2 + $0x18] sm:$0xff]  ;;  %v142_v6 = vld [vmem:[%s15623_s2 + $0x20] sm:$0xff]  ;;  %v143_v7 = vld [vmem:[%s15623_s2 + $0x28] sm:$0xff] }
  0x83   :  { %v11964_v5 = vpack.c.bf16 %v141_v4, %v140_v2  ;;  %v8945_v8 = vld [vmem:[%s15624_s28 + $0x40] sm:$0xff]  ;;  %v11968_v9 = vpack.c.bf16 %v143_v7, %v142_v6  ;;  %v144_v11 = vld [vmem:[%s15623_s2 + $0x30] sm:$0xff]  ;;  %v145_v12 = vld [vmem:[%s15623_s2 + $0x38] sm:$0xff] }
  0x84   :  { %11977 = vmatprep.subr.bf16.mxu1 %v11960_v3  ;;  %11961 = vmatprep.subr.bf16.mxu0 %v11960_v3  ;;  %v146_v10 = vld [vmem:[%s15624_s28] sm:$0xff]  ;;  %v11972_v13 = vpack.c.bf16 %v145_v12, %v144_v11  ;;  %v8946_v15 = vld [vmem:[%s15624_s28 + $0x48] sm:$0xff]  ;;  %v8947_v16 = vld [vmem:[%s15624_s28 + $0x50] sm:$0xff] }
  0x85   :  { %11979 = vmatpush3.bf16.msra.mxu1 %v11960_v3  ;;  %10487 = vmatprep.mubr.msk.f32.mxu1 %vm15554_vm0, %v8945_v8  ;;  %v147_v17 = vld [vmem:[%s15624_s28 + $0x8] sm:$0xff]  ;;  %v148_v18 = vld [vmem:[%s15624_s28 + $0x10] sm:$0xff]  ;;  %v8948_v19 = vld [vmem:[%s15624_s28 + $0x58] sm:$0xff] }
  0x86   :  { %11981 = vmatprep.subr.bf16.mxu1 %v11964_v5  ;;  %11963 = vmatpush3.bf16.msra.mxu0 %v11960_v3  ;;  %v8949_v20 = vld [vmem:[%s15624_s28 + $0x60] sm:$0xff]  ;;  %v149_v21 = vld [vmem:[%s15624_s28 + $0x18] sm:$0xff]  ;;  %v8950_v23 = vld [vmem:[%s15624_s28 + $0x68] sm:$0xff] }
  0x87   :  { %11965 = vmatprep.subr.bf16.mxu0 %v11964_v5  ;;  %10459 = vmatprep.mubr.msk.f32.mxu0 %vm15554_vm0, %v146_v10  ;;  %v150_v22 = vld [vmem:[%s15624_s28 + $0x20] sm:$0xff]  ;;  %v8951_v24 = vld [vmem:[%s15624_s28 + $0x70] sm:$0xff]  ;;  %v151_v25 = vld [vmem:[%s15624_s28 + $0x28] sm:$0xff] }
  0x88   :  { %v152_v26 = vld [vmem:[%s15624_s28 + $0x30] sm:$0xff]  ;;  %v8952_v27 = vld [vmem:[%s15624_s28 + $0x78] sm:$0xff]  ;;  %v8975_v29 = vld [vmem:[%s15624_s28 + $0x80] sm:$0xff] }
  0x89   :  { %11983 = vmatpush3.bf16.msra.mxu1 %v11964_v5  ;;  %v153_v28 = vld [vmem:[%s15624_s28 + $0x38] sm:$0xff]  ;;  %v8976_v30 = vld [vmem:[%s15624_s28 + $0x88] sm:$0xff]  ;;  %v8977_v31 = vld [vmem:[%s15624_s28 + $0x90] sm:$0xff] }
  0x8a   :  { %11985 = vmatprep.subr.bf16.mxu1 %v11968_v9  ;;  %11967 = vmatpush3.bf16.msra.mxu0 %v11964_v5  ;;  %v8978_v32 = vld [vmem:[%s15624_s28 + $0x98] sm:$0xff]  ;;  %v8979_v33 = vld [vmem:[%s15624_s28 + $0xa0] sm:$0xff]  ;;  %v8980_v34 = vld [vmem:[%s15624_s28 + $0xa8] sm:$0xff] }
  0x8b   :  { %11969 = vmatprep.subr.bf16.mxu0 %v11968_v9  ;;  %v8981_v35 = vld [vmem:[%s15624_s28 + $0xb0] sm:$0xff]  ;;  %v8982_v36 = vld [vmem:[%s15624_s28 + $0xb8] sm:$0xff]  ;;  %v12699_v11 = vld [vmem:[#allocation2 + $0x40] sm:$0xff]  }
  0x8c   :  { %v12697_v1 = vld [vmem:[#allocation2 + $0x30] sm:$0xff]   ;;  %v12698_v7 = vld [vmem:[#allocation2 + $0x38] sm:$0xff]  }
  0x8d   :  { %11987 = vmatpush3.bf16.msra.mxu1 %v11968_v9 }
  0x8e   :  { %11989 = vmatprep.subr.bf16.mxu1 %v11972_v13  ;;  %11971 = vmatpush3.bf16.msra.mxu0 %v11968_v9 }
  0x8f   :  { %11973 = vmatprep.subr.bf16.mxu0 %v11972_v13 }
  0x91   :  { %11991 = vmatpush3.bf16.msra.mxu1 %v11972_v13 }
  0x92   :  { %11975 = vmatpush3.bf16.msra.mxu0 %v11972_v13  ;;  %11993 = vmatprep.subr.bf16.mxu1 %v11960_v3 }
  0x93   :  { %10499 = vmatprep.subr.bf16.mxu0 %v12691_v14 }
  0x94   :  { %10488 = vmatmul.mubr.msk.f32.vlgmr.msra.gmra.mrb[0].mxu1 %vm15554_vm0, %v8946_v15 }
  0x95   :  { %10490 = vmatprep.mubr.msk.f32.mxu1 %vm15554_vm0, %v8947_v16  ;;  %10460 = vmatmul.mubr.msk.f32.vlgmr.msra.gmra.mrb[0].mxu0 %vm15554_vm0, %v147_v17  ;;  %v909_v17 = vld [vmem:[%s15533_s4] sm:$0xff] }
  0x96   :  { %11995 = vmatpush3.bf16.msra.mxu1 %v11960_v3  ;;  %10462 = vmatprep.mubr.msk.f32.mxu0 %vm15554_vm0, %v148_v18  ;;  %v12700_v18 = vld [vmem:[%s15534_s5 + $0x40] sm:$0xff]  }
  0x97   :  { %11997 = vmatprep.subr.bf16.mxu1 %v11964_v5  ;;  %10500 = vmatpush3.bf16.msra.mxu0 %v12691_v14 }
  0x98   :  { %10491 = vmatmul.mubr.msk.f32.gmra.mrb[2].mxu1 %vm15554_vm0, %v8948_v19  ;;  %10501 = vmatprep.subr.bf16.mxu0 %v12692_v37  ;;  %v12701_v19 = vld [vmem:[%s15534_s5 + $0x48] sm:$0xff]  }
  0x99   :  { %10493 = vmatprep.mubr.msk.f32.mxu1 %vm15554_vm0, %v8949_v20  ;;  %10463 = vmatmul.mubr.msk.f32.gmra.mrb[2].mxu0 %vm15554_vm0, %v149_v21  ;;  %v12702_v20 = vld [vmem:[%s15534_s5 + $0x50] sm:$0xff]   ;;  %v8998_v21 = vld [vmem:[%s15625_s25] ss:$0 sm:$0xff] }
  0x9a   :  { %11999 = vmatpush3.bf16.msra.mxu1 %v11964_v5  ;;  %10465 = vmatprep.mubr.msk.f32.mxu0 %vm15554_vm0, %v150_v22 }
  0x9b   :  { %12001 = vmatprep.subr.bf16.mxu1 %v11968_v9  ;;  %10502 = vmatpush3.bf16.msra.mxu0 %v12692_v37 }
  0x9c   :  { %10494 = vmatmul.mubr.msk.f32.gmra.mrb[4].mxu1 %vm15554_vm0, %v8950_v23  ;;  %10503 = vmatprep.subr.bf16.mxu0 %v12693_v38 }
  0x9d   :  { %10496 = vmatprep.mubr.msk.f32.mxu1 %vm15554_vm0, %v8951_v24  ;;  %10466 = vmatmul.mubr.msk.f32.gmra.mrb[4].mxu0 %vm15554_vm0, %v151_v25 }
  0x9e   :  { %12003 = vmatpush3.bf16.msra.mxu1 %v11968_v9  ;;  %10468 = vmatprep.mubr.msk.f32.mxu0 %vm15554_vm0, %v152_v26 }
  0x9f   :  { %12005 = vmatprep.subr.bf16.mxu1 %v11972_v13  ;;  %10504 = vmatpush3.bf16.msra.mxu0 %v12693_v38 }
  0xa0   :  { %10497 = vmatmul.mubr.msk.f32.gmra.mrb[6].mxu1 %vm15554_vm0, %v8952_v27  ;;  %10513 = vmatprep.subr.bf16.mxu0 %v12694_v39 }
  0xa1   :  { %10469 = vmatmul.mubr.msk.f32.gmra.mrb[6].mxu0 %vm15554_vm0, %v153_v28  ;;  %10543 = vmatprep.mubr.msk.f32.mxu1 %vm15554_vm0, %v8975_v29 }
  0xa2   :  { %12007 = vmatpush3.bf16.msra.mxu1 %v11972_v13 }
  0xa5   :  { %10544 = vmatmul.mubr.msk.f32.vlgmr.msra.gmra.mrb[8].mxu1 %vm15554_vm0, %v8976_v30 }
  0xa6   :  { %10546 = vmatprep.mubr.msk.f32.mxu1 %vm15554_vm0, %v8977_v31 }
  0xa9   :  { %10547 = vmatmul.mubr.msk.f32.gmra.mrb[10].mxu1 %vm15554_vm0, %v8978_v32 }
  0xaa   :  { %10549 = vmatprep.mubr.msk.f32.mxu1 %vm15554_vm0, %v8979_v33 }
  0xad   :  { %10550 = vmatmul.mubr.msk.f32.gmra.mrb[12].mxu1 %vm15554_vm0, %v8980_v34 }
  0xae   :  { %10552 = vmatprep.mubr.msk.f32.mxu1 %vm15554_vm0, %v8981_v35 }
  0xb1   :  { %10553 = vmatmul.mubr.msk.f32.gmra.mrb[14].mxu1 %vm15554_vm0, %v8982_v36 }
  0xb2   :  { %10585 = vmatprep.mubr.msk.f32.mxu1 %vm15554_vm0, %v909_v17  ;;  %v12711_v17 = vld [vmem:[%s15534_s5 + $0x18] sm:$0xff]  }
 0x167   :  { %v10489_v40 = vpop.f32.mrb[0].mxu1 }
 0x168   :  { %v393_v41 = vpop.f32.mrb[1].mxu1  ;;  %v10461_v42 = vpop.f32.mrb[0].mxu0 }
 0x169   :  { %v432_v43 = vpack.c.bf16 %v10489_v40, %v393_v41  ;;  %v245_v44 = vpop.f32.mrb[1].mxu0 }
 0x16a   :  { %v284_v45 = vpack.c.bf16 %v10461_v42, %v245_v44 }
 0x16b   :  { %v10492_v46 = vpop.f32.mrb[2].mxu1  ;;  %10505 = vmatprep.mubr.msk.bf16.mxu0 %vm15553_vm1, %v432_v43 }
 0x16c   :  { %v403_v47 = vpop.f32.mrb[3].mxu1  ;;  %v10464_v48 = vpop.f32.mrb[2].mxu0 }
 0x16d   :  { %v433_v49 = vpack.c.bf16 %v10492_v46, %v403_v47  ;;  %v255_v51 = vpop.f32.mrb[3].mxu0 }
 0x16e   :  { %v285_v52 = vpack.c.bf16 %v10464_v48, %v255_v51  ;;  %v911_v51 = vld [vmem:[%s15533_s4 + $0x10] sm:$0xff] }
 0x16f   :  { %v10495_v53 = vpop.f32.mrb[4].mxu1  ;;  %10506 = vmatmul.mubr.msk.bf16.vlgmr.msra.gmra.mrb[8].mxu0 %vm15553_vm1, %v433_v49 }
 0x170   :  { %v413_v54 = vpop.f32.mrb[5].mxu1  ;;  %10514 = vmatpush3.bf16.msra.mxu0 %v12694_v39  ;;  %v10467_v55 = vpop.f32.mrb[4].mxu0 }
 0x171   :  { %v434_v56 = vpack.c.bf16 %v10495_v53, %v413_v54  ;;  %10515 = vmatprep.subr.bf16.mxu0 %v12695_v50  ;;  %v265_v58 = vpop.f32.mrb[5].mxu0  ;;  %v9003_v53 = vld [vmem:[%s15533_s4 + $0x20] sm:$0xff]  ;;  %v9004_v54 = vld [vmem:[%s15533_s4 + $0x28] sm:$0xff] }
 0x172   :  { %v286_v59 = vpack.c.bf16 %v10467_v55, %v265_v58  ;;  %v9005_v55 = vld [vmem:[%s15533_s4 + $0x30] sm:$0xff]  ;;  %v9044_v58 = vld [vmem:[%s15533_s4 + $0x48] sm:$0xff] }
 0x173   :  { %v10498_v60 = vpop.f32.mrb[6].mxu1  ;;  %10509 = vmatprep.mubr.msk.bf16.mxu0 %vm15553_vm1, %v434_v56  ;;  %v9006_v56 = vld [vmem:[%s15533_s4 + $0x38] sm:$0xff] }
 0x174   :  { %v423_v61 = vpop.f32.mrb[7].mxu1  ;;  %10516 = vmatpush3.bf16.msra.mxu0 %v12695_v50  ;;  %v10470_v62 = vpop.f32.mrb[6].mxu0  ;;  %v910_v50 = vld [vmem:[%s15533_s4 + $0x8] sm:$0xff] }
 0x175   :  { %v435_v63 = vpack.c.bf16 %v10498_v60, %v423_v61  ;;  %10517 = vmatprep.subr.bf16.mxu0 %v12696_v57  ;;  %v275_v0 = vpop.f32.mrb[7].mxu0  ;;  %v9046_v60 = vld [vmem:[%s15533_s4 + $0x58] sm:$0xff] }
 0x176   :  { %v287_v2 = vpack.c.bf16 %v10470_v62, %v275_v0  ;;  %v12703_v61 = vld [vmem:[%s15534_s5 + $0x58] sm:$0xff]   ;;  %v12704_v62 = vld [vmem:[%s15534_s5 + $0x60] sm:$0xff]   ;;  %v12706_v0 = vld [vmem:[%s15534_s5 + $0x70] sm:$0xff]  }
 0x177   :  { %10510 = vmatmul.mubr.msk.bf16.gmra.mrb[12].mxu0 %vm15553_vm1, %v435_v63  ;;  %v12705_v63 = vld [vmem:[%s15534_s5 + $0x68] sm:$0xff]  }
 0x178   :  { %10519 = vmatprep.mubr.msk.bf16.mxu0 %vm15553_vm1, %v284_v45  ;;  %10518 = vmatpush3.bf16.msra.mxu0 %v12696_v57  ;;  %v10545_v3 = vpop.f32.mrb[8].mxu1  ;;  %v9043_v57 = vld [vmem:[%s15533_s4 + $0x40] sm:$0xff] }
 0x179   :  { %10555 = vmatprep.subr.bf16.mxu0 %v12697_v1  ;;  %v733_v4 = vpop.f32.mrb[9].mxu1 }
 0x17a   :  { %v772_v5 = vpack.c.bf16 %v10545_v3, %v733_v4 }
 0x17c   :  { %v10548_v6 = vpop.f32.mrb[10].mxu1 }
 0x17d   :  { %v743_v8 = vpop.f32.mrb[11].mxu1 }
 0x17e   :  { %v773_v9 = vpack.c.bf16 %v10548_v6, %v743_v8 }
 0x17f   :  { %10520 = vmatmul.mubr.msk.bf16.vlgmr.msra.gmra.mrb[8].mxu0 %vm15553_vm1, %v285_v52  ;;  %v912_v52 = vld [vmem:[%s15533_s4 + $0x18] sm:$0xff] }
 0x180   :  { %10523 = vmatprep.mubr.msk.bf16.mxu0 %vm15553_vm1, %v286_v59  ;;  %10556 = vmatpush3.bf16.msra.mxu0 %v12697_v1  ;;  %v10551_v10 = vpop.f32.mrb[12].mxu1  ;;  %v9045_v59 = vld [vmem:[%s15533_s4 + $0x50] sm:$0xff]  ;;  %v12707_v1 = vld [vmem:[%s15534_s5 + $0x78] sm:$0xff]  }
 0x181   :  { %10557 = vmatprep.subr.bf16.mxu0 %v12698_v7  ;;  %v753_v12 = vpop.f32.mrb[13].mxu1 }
 0x182   :  { %v774_v13 = vpack.c.bf16 %v10551_v10, %v753_v12 }
 0x184   :  { %10558 = vmatpush3.bf16.msra.mxu0 %v12698_v7  ;;  %v10554_v14 = vpop.f32.mrb[14].mxu1 }
 0x185   :  { %10559 = vmatprep.subr.bf16.mxu0 %v12699_v11  ;;  %v763_v15 = vpop.f32.mrb[15].mxu1 }
 0x186   :  { %v775_v16 = vpack.c.bf16 %v10554_v14, %v763_v15  ;;  %v12709_v15 = vld [vmem:[%s15534_s5 + $0x8] sm:$0xff]  }
 0x187   :  { %10524 = vmatmul.mubr.msk.bf16.gmra.mrb[12].mxu0 %vm15553_vm1, %v287_v2  ;;  %v12708_v2 = vld [vmem:[%s15534_s5] sm:$0xff]  }
 0x188   :  { %10561 = vmatprep.mubr.msk.bf16.mxu0 %vm15553_vm1, %v772_v5  ;;  %10560 = vmatpush3.bf16.msra.mxu0 %v12699_v11 }
 0x189   :  { %10613 = vmatprep.subr.bf16.mxu0 %v12700_v18 }
 0x18f   :  { %10562 = vmatmul.mubr.msk.bf16.vlgmr.msra.gmra.mrb[8].mxu0 %vm15553_vm1, %v773_v9 }
 0x190   :  { %10565 = vmatprep.mubr.msk.bf16.mxu0 %vm15553_vm1, %v774_v13  ;;  %10614 = vmatpush3.bf16.msra.mxu0 %v12700_v18 }
 0x191   :  { %10615 = vmatprep.subr.bf16.mxu0 %v12701_v19 }
 0x194   :  { %10616 = vmatpush3.bf16.msra.mxu0 %v12701_v19 }
 0x195   :  { %10617 = vmatprep.subr.bf16.mxu0 %v12702_v20 }
 0x197   :  { %10566 = vmatmul.mubr.msk.bf16.gmra.mrb[12].mxu0 %vm15553_vm1, %v775_v16  ;;  %v12710_v16 = vld [vmem:[%s15534_s5 + $0x10] sm:$0xff]   ;;  %vm15556_vm1 = vcmask 64512  }
 0x198   :  { %10618 = vmatpush3.bf16.msra.mxu0 %v12702_v20  ;;  %v12712_v20 = vld [vmem:[%s15534_s5 + $0x20] sm:$0xff]  }
 0x199   :  { %10619 = vmatprep.subr.bf16.mxu0 %v12703_v61 }
 0x19c   :  { %10620 = vmatpush3.bf16.msra.mxu0 %v12703_v61  ;;  %v12724_v61 = vld [vmem:[%s15537_s8 + $0x40] sm:$0xff]  }
 0x19d   :  { %10621 = vmatprep.subr.bf16.mxu0 %v12704_v62 }
 0x1a0   :  { %10622 = vmatpush3.bf16.msra.mxu0 %v12704_v62  ;;  %v15572_v62 = vmov 0.0  }
 0x1a1   :  { %10623 = vmatprep.subr.bf16.mxu0 %v12705_v63 }
 0x1a4   :  { %10624 = vmatpush3.bf16.msra.mxu0 %v12705_v63  ;;  %v12725_v63 = vld [vmem:[%s15537_s8 + $0x48] sm:$0xff]  }
 0x1a5   :  { %10625 = vmatprep.subr.bf16.mxu0 %v12706_v0 }
 0x1a8   :  { %10626 = vmatpush3.bf16.msra.mxu0 %v12706_v0  ;;  %v12726_v0 = vld [vmem:[%s15537_s8 + $0x50] sm:$0xff]  }
 0x1a9   :  { %10627 = vmatprep.subr.bf16.mxu0 %v12707_v1 }
 0x1ac   :  { %10628 = vmatpush3.bf16.msra.mxu0 %v12707_v1  ;;  %v12727_v1 = vld [vmem:[%s15537_s8 + $0x58] sm:$0xff]  }
 0x1ad   :  { %10633 = vmatprep.subr.bf16.mxu0 %v12708_v2 }
 0x262   :  { %v10563_v22 = vpop.f32.mrb[8].mxu0 }
 0x263   :  { %v895_v23 = vadd.f32 %v10563_v22, %v8998_v21  ;;  %v847_v24 = vpop.f32.mrb[9].mxu0 }
 0x264   :  { %v893_v25 = vadd.f32 %v8998_v21, %v847_v24  ;;  %v10564_v26 = vpop.f32.mrb[10].mxu0  ;;  %v12713_v24 = vld [vmem:[%s15534_s5 + $0x28] sm:$0xff]  }
 0x265   :  { %v896_v27 = vadd.f32 %v10564_v26, %v8998_v21  ;;  %v850_v28 = vpop.f32.mrb[11].mxu0  ;;  %v903_v30 = vmax.f32 %v895_v23, 0.0  ;;  %v12714_v26 = vld [vmem:[%s15534_s5 + $0x30] sm:$0xff]  }
 0x266   :  { %v894_v29 = vadd.f32 %v8998_v21, %v850_v28  ;;  %v901_v32 = vmax.f32 %v893_v25, 0.0  ;;  %v12716_v28 = vld [vmem:[%s15534_s5 + $0x80] sm:$0xff]  }
 0x267   :  { %v904_v31 = vmax.f32 %v896_v27, 0.0  ;;  %v12715_v27 = vld [vmem:[%s15534_s5 + $0x38] sm:$0xff]  }
 0x268   :  { %v902_v33 = vmax.f32 %v894_v29, 0.0  ;;  %v12717_v29 = vld [vmem:[%s15534_s5 + $0x88] sm:$0xff]  }
 0x269   :  { %v12012_v34 = vpack.c.bf16 %v904_v31, %v903_v30  ;;  %v12718_v30 = vld [vmem:[%s15534_s5 + $0x90] sm:$0xff]   ;;  %v12719_v31 = vld [vmem:[%s15534_s5 + $0x98] sm:$0xff]  }
 0x26a   :  { %v12008_v35 = vpack.c.bf16 %v902_v33, %v901_v32  ;;  %v10567_v36 = vpop.f32.mrb[12].mxu0  ;;  %v12720_v32 = vld [vmem:[%s15534_s5 + $0xa0] sm:$0xff]   ;;  %v12721_v33 = vld [vmem:[%s15534_s5 + $0xa8] sm:$0xff]  }
 0x26b   :  { %v863_v37 = vpop.f32.mrb[13].mxu0  ;;  %v899_v42 = vadd.f32 %v10567_v36, %v8998_v21  ;;  %v1580_v36 = vld [vmem:[%s15536_s7] sm:$0xff] }
 0x26c   :  { %v897_v38 = vadd.f32 %v8998_v21, %v863_v37  ;;  %v10568_v39 = vpop.f32.mrb[14].mxu0  ;;  %12009 = vmatprep.subr.bf16.mxu1 %v12008_v35  ;;  %v9114_v37 = vld [vmem:[%s15536_s7 + $0x20] sm:$0xff] }
 0x26d   :  { %v900_v40 = vadd.f32 %v10568_v39, %v8998_v21  ;;  %v866_v41 = vpop.f32.mrb[15].mxu0  ;;  %12011 = vmatpush3.bf16.msra.mxu1 %v12008_v35  ;;  %v13385_v47 = vmax.f32 %v899_v42, 0.0 }
 0x26e   :  { %v898_v43 = vadd.f32 %v8998_v21, %v866_v41  ;;  %12013 = vmatprep.subr.bf16.mxu1 %v12012_v34  ;;  %v13379_v44 = vmax.f32 %v897_v38, 0.0  ;;  %v9075_v38 = vld [vmem:[#allocation5] ss:$0 sm:$0xff] }
 0x26f   :  { %v13381_v45 = vmax.f32 %v900_v40, 0.0 }
 0x270   :  { %v13383_v46 = vmax.f32 %v898_v43, 0.0 }
 0x271   :  { %12015 = vmatpush3.bf16.msra.mxu1 %v12012_v34  ;;  %v12020_v49 = vpack.c.bf16 %v13381_v45, %v13385_v47 }
 0x272   :  { %v12016_v48 = vpack.c.bf16 %v13383_v46, %v13379_v44 }
 0x274   :  { %12017 = vmatprep.subr.bf16.mxu1 %v12016_v48 }
 0x275   :  { %12019 = vmatpush3.bf16.msra.mxu1 %v12016_v48 }
 0x276   :  { %12021 = vmatprep.subr.bf16.mxu1 %v12020_v49 }
 0x279   :  { %12023 = vmatpush3.bf16.msra.mxu1 %v12020_v49 }
 0x27a   :  { %12025 = vmatprep.subr.bf16.mxu1 %v12008_v35 }
 0x27c   :  { %10586 = vmatmul.mubr.msk.f32.vlgmr.msra.gmra.mrb[16].mxu1 %vm15554_vm0, %v910_v50 }
 0x27d   :  { %12027 = vmatpush3.bf16.msra.mxu1 %v12008_v35  ;;  %10588 = vmatprep.mubr.msk.f32.mxu1 %vm15554_vm0, %v911_v51 }
 0x27e   :  { %12029 = vmatprep.subr.bf16.mxu1 %v12012_v34 }
 0x280   :  { %10589 = vmatmul.mubr.msk.f32.gmra.mrb[18].mxu1 %vm15554_vm0, %v912_v52 }
 0x281   :  { %12031 = vmatpush3.bf16.msra.mxu1 %v12012_v34  ;;  %10607 = vmatprep.mubr.msk.f32.mxu1 %vm15554_vm0, %v9003_v53 }
 0x282   :  { %12033 = vmatprep.subr.bf16.mxu1 %v12016_v48 }
 0x285   :  { %12035 = vmatpush3.bf16.msra.mxu1 %v12016_v48 }
 0x286   :  { %12037 = vmatprep.subr.bf16.mxu1 %v12020_v49 }
 0x289   :  { %12039 = vmatpush3.bf16.msra.mxu1 %v12020_v49 }
 0x28a   :  { %12041 = vmatprep.subr.bf16.mxu1 %v12008_v35 }
 0x28c   :  { %10608 = vmatmul.mubr.msk.f32.vlgmr.msra.gmra.mrb[20].mxu1 %vm15554_vm0, %v9004_v54 }
 0x28d   :  { %12043 = vmatpush3.bf16.msra.mxu1 %v12008_v35  ;;  %10610 = vmatprep.mubr.msk.f32.mxu1 %vm15554_vm0, %v9005_v55  ;;  %v12723_v35 = vld [vmem:[%s15534_s5 + $0xb8] sm:$0xff]  }
 0x28e   :  { %12045 = vmatprep.subr.bf16.mxu1 %v12012_v34 }
 0x290   :  { %10611 = vmatmul.mubr.msk.f32.gmra.mrb[22].mxu1 %vm15554_vm0, %v9006_v56 }
 0x291   :  { %12047 = vmatpush3.bf16.msra.mxu1 %v12012_v34  ;;  %10669 = vmatprep.mubr.msk.f32.mxu1 %vm15554_vm0, %v9043_v57  ;;  %v12722_v34 = vld [vmem:[%s15534_s5 + $0xb0] sm:$0xff]   ;;  %v1581_v57 = vld [vmem:[%s15536_s7 + $0x8] sm:$0xff] }
 0x292   :  { %12049 = vmatprep.subr.bf16.mxu1 %v12016_v48 }
 0x295   :  { %12051 = vmatpush3.bf16.msra.mxu1 %v12016_v48 }
 0x296   :  { %12053 = vmatprep.subr.bf16.mxu1 %v12020_v49 }
 0x299   :  { %12055 = vmatpush3.bf16.msra.mxu1 %v12020_v49 }
 0x29c   :  { %10670 = vmatmul.mubr.msk.f32.vlgmr.msra.gmra.mrb[24].mxu1 %vm15554_vm0, %v9044_v58  ;;  %v9115_v58 = vld [vmem:[%s15536_s7 + $0x28] sm:$0xff] }
 0x29d   :  { %10672 = vmatprep.mubr.msk.f32.mxu1 %vm15554_vm0, %v9045_v59  ;;  %v9078_v59 = vld [vmem:[%s15536_s7 + $0x10] sm:$0xff] }
 0x2a0   :  { %10673 = vmatmul.mubr.msk.f32.gmra.mrb[26].mxu1 %vm15554_vm0, %v9046_v60  ;;  %v9079_v60 = vld [vmem:[%s15536_s7 + $0x18] sm:$0xff] }
 0x2a1   :  { %10703 = vmatprep.mubr.msk.f32.mxu1 %vm15555_vm2, %v1580_v36  ;;  %v15581_v36 = vmov 0.0|0.0  }
 0x34f   :  { %v10587_v3 = vpop.f32.mrb[16].mxu1 }
 0x350   :  { %v991_v4 = vpop.f32.mrb[17].mxu1 }
 0x351   :  { %v1010_v5 = vpack.c.bf16 %v10587_v3, %v991_v4  ;;  %v12729_v3 = vld [vmem:[%s15537_s8 + $0x68] sm:$0xff]   ;;  %v12730_v4 = vld [vmem:[%s15537_s8 + $0x70] sm:$0xff]  }
 0x353   :  { %v10590_v6 = vpop.f32.mrb[18].mxu1 }
 0x354   :  { %v1001_v7 = vpop.f32.mrb[19].mxu1 }
 0x355   :  { %v1011_v8 = vpack.c.bf16 %v10590_v6, %v1001_v7 }
 0x35f   :  { %v10609_v9 = vpop.f32.mrb[20].mxu1 }
 0x360   :  { %v1111_v10 = vpop.f32.mrb[21].mxu1 }
 0x361   :  { %v1130_v11 = vpack.c.bf16 %v10609_v9, %v1111_v10 }
 0x363   :  { %v10612_v12 = vpop.f32.mrb[22].mxu1  ;;  %10629 = vmatprep.mubr.bf16.mxu0 %v1130_v11 }
 0x364   :  { %v1121_v13 = vpop.f32.mrb[23].mxu1 }
 0x365   :  { %v1131_v14 = vpack.c.bf16 %v10612_v12, %v1121_v13 }
 0x367   :  { %10630 = vmatmul.mubr.bf16.vlgmr.msra.gmra.mrb[16].mxu0 %v1131_v14  ;;  %v12732_v14 = vld [vmem:[%s15537_s8] sm:$0xff]  }
 0x368   :  { %10634 = vmatpush3.bf16.msra.mxu0 %v12708_v2  ;;  %10649 = vmatprep.mubr.bf16.mxu0 %v1010_v5  ;;  %v12728_v2 = vld [vmem:[%s15537_s8 + $0x60] sm:$0xff]   ;;  %v12731_v5 = vld [vmem:[%s15537_s8 + $0x78] sm:$0xff]  }
 0x369   :  { %10635 = vmatprep.subr.bf16.mxu0 %v12709_v15 }
 0x36c   :  { %10636 = vmatpush3.bf16.msra.mxu0 %v12709_v15 }
 0x36d   :  { %10637 = vmatprep.subr.bf16.mxu0 %v12710_v16 }
 0x36f   :  { %v10671_v18 = vpop.f32.mrb[24].mxu1 }
 0x370   :  { %10638 = vmatpush3.bf16.msra.mxu0 %v12710_v16  ;;  %v1426_v19 = vpop.f32.mrb[25].mxu1  ;;  %v12733_v16 = vld [vmem:[%s15537_s8 + $0x8] sm:$0xff]  }
 0x371   :  { %10639 = vmatprep.subr.bf16.mxu0 %v12711_v17  ;;  %v1445_v21 = vpack.c.bf16 %v10671_v18, %v1426_v19  ;;  %v12735_v18 = vld [vmem:[%s15537_s8 + $0x18] sm:$0xff]   ;;  %v12736_v19 = vld [vmem:[%s15537_s8 + $0x20] sm:$0xff]  }
 0x373   :  { %v10674_v22 = vpop.f32.mrb[26].mxu1 }
 0x374   :  { %10640 = vmatpush3.bf16.msra.mxu0 %v12711_v17  ;;  %v1436_v23 = vpop.f32.mrb[27].mxu1  ;;  %v12734_v17 = vld [vmem:[%s15537_s8 + $0x10] sm:$0xff]  }
 0x375   :  { %10641 = vmatprep.subr.bf16.mxu0 %v12712_v20  ;;  %v1446_v25 = vpack.c.bf16 %v10674_v22, %v1436_v23  ;;  %v12739_v22 = vld [vmem:[%s15537_s8 + $0x38] sm:$0xff]   ;;  %v12740_v23 = vld [vmem:[%s15537_s8 + $0x80] sm:$0xff]  }
 0x378   :  { %10642 = vmatpush3.bf16.msra.mxu0 %v12712_v20  ;;  %v12737_v20 = vld [vmem:[%s15537_s8 + $0x28] sm:$0xff]  }
 0x379   :  { %10643 = vmatprep.subr.bf16.mxu0 %v12713_v24 }
 0x37c   :  { %10644 = vmatpush3.bf16.msra.mxu0 %v12713_v24  ;;  %v12741_v24 = vld [vmem:[%s15537_s8 + $0x88] sm:$0xff]  }
 0x37d   :  { %10645 = vmatprep.subr.bf16.mxu0 %v12714_v26 }
 0x380   :  { %10646 = vmatpush3.bf16.msra.mxu0 %v12714_v26  ;;  %v12743_v26 = vld [vmem:[%s15537_s8 + $0x98] sm:$0xff]  }
 0x381   :  { %10647 = vmatprep.subr.bf16.mxu0 %v12715_v27 }
 0x384   :  { %10648 = vmatpush3.bf16.msra.mxu0 %v12715_v27  ;;  %v12744_v27 = vld [vmem:[%s15537_s8 + $0xa0] sm:$0xff]  }
 0x385   :  { %10675 = vmatprep.subr.bf16.mxu0 %v12716_v28 }
 0x387   :  { %10650 = vmatmul.mubr.bf16.vlgmr.msra.gmra.mrb[16].mxu0 %v1011_v8 }
 0x388   :  { %10676 = vmatpush3.bf16.msra.mxu0 %v12716_v28  ;;  %10691 = vmatprep.mubr.bf16.mxu0 %v1445_v21  ;;  %v12738_v21 = vld [vmem:[%s15537_s8 + $0x30] sm:$0xff]   ;;  %v12745_v28 = vld [vmem:[%s15537_s8 + $0xa8] sm:$0xff]  }
 0x389   :  { %10677 = vmatprep.subr.bf16.mxu0 %v12717_v29 }
 0x38c   :  { %10678 = vmatpush3.bf16.msra.mxu0 %v12717_v29  ;;  %v12746_v29 = vld [vmem:[%s15537_s8 + $0xb0] sm:$0xff]  }
 0x38d   :  { %10679 = vmatprep.subr.bf16.mxu0 %v12718_v30 }
 0x390   :  { %10680 = vmatpush3.bf16.msra.mxu0 %v12718_v30  ;;  %v12747_v30 = vld [vmem:[%s15537_s8 + $0xb8] sm:$0xff]  }
 0x391   :  { %10681 = vmatprep.subr.bf16.mxu0 %v12719_v31 }
 0x394   :  { %10682 = vmatpush3.bf16.msra.mxu0 %v12719_v31  ;;  %v2165_v31 = vlaneseq }
 0x395   :  { %10683 = vmatprep.subr.bf16.mxu0 %v12720_v32 }
 0x398   :  { %10684 = vmatpush3.bf16.msra.mxu0 %v12720_v32  ;;  %v13635_v32 = vshrl.u32 %v2165_v31, 7 }
 0x399   :  { %10685 = vmatprep.subr.bf16.mxu0 %v12721_v33 }
 0x39c   :  { %10686 = vmatpush3.bf16.msra.mxu0 %v12721_v33  ;;  %v13638_v33 = vadd.s32 8, %v13635_v32 }
 0x39d   :  { %10687 = vmatprep.subr.bf16.mxu0 %v12722_v34 }
 0x3a0   :  { %10688 = vmatpush3.bf16.msra.mxu0 %v12722_v34  ;;  %v13640_v34 = vand.u32 127, %v2165_v31 }
 0x3a1   :  { %10689 = vmatprep.subr.bf16.mxu0 %v12723_v35 }
 0x3a4   :  { %10690 = vmatpush3.bf16.msra.mxu0 %v12723_v35  ;;  %v2184_v35 = vand.u32 31, %v13635_v32 }
 0x3a6   :  { %vm2200_vm4 = vcmp.eq.s32.totalorder %v2184_v35, %v13640_v34 }
 0x3a7   :  { %10692 = vmatmul.mubr.bf16.vlgmr.msra.gmra.mrb[16].mxu0 %v1446_v25  ;;  %v12742_v25 = vld [vmem:[%s15537_s8 + $0x90] sm:$0xff]  }
 0x3a8   :  { %10765 = vmatprep.mubr.msk.f32.mxu0 %vm15555_vm2, %v9114_v37  ;;  %v2185_v37 = vand.u32 31, %v13638_v33 }
 0x3aa   :  { %vm2201_vm5 = vcmp.eq.s32.totalorder %v2185_v37, %v13640_v34 }
 0x3ab   :  { %vm13668_vm6 = vmpackc.low %vm2201_vm5, %vm2200_vm4 }
 0x47a   :  { %v10693_v39 = vpop.f32.mrb[16].mxu0 }
 0x47b   :  { %v1546_v40 = vpop.f32.mrb[17].mxu0  ;;  %v1574_v49 = vadd.f32 %v10693_v39, %v9075_v38  ;;  %v13649_v39 = vadd.s32 24, %v13635_v32 }
 0x47c   :  { %v1572_v41 = vadd.f32 %v9075_v38, %v1546_v40  ;;  %v10694_v42 = vpop.f32.mrb[18].mxu0  ;;  %v13652_v40 = vadd.s32 32, %v13635_v32 }
 0x47d   :  { %v1575_v43 = vadd.f32 %v10694_v42, %v9075_v38  ;;  %v1549_v48 = vpop.f32.mrb[19].mxu0  ;;  %v13508_v54 = vmax.f32 %v1574_v49, 0.0  ;;  %v13659_v42 = vadd.s32 48, %v13635_v32  ;;  %v2187_v49 = vand.u32 31, %v13649_v39 }
 0x47e   :  { %v1573_v50 = vadd.f32 %v9075_v38, %v1549_v48  ;;  %v1576_v51 = vmax.f32 %v1572_v41, 0.0  ;;  %v13646_v38 = vadd.s32 16, %v13635_v32  ;;  %v13656_v41 = vadd.s32 40, %v13635_v32 }
 0x47f   :  { %v13506_v52 = vmax.f32 %v1575_v43, 0.0  ;;  %v13662_v43 = vadd.s32 56, %v13635_v32  ;;  %vm2203_vm8 = vcmp.eq.s32.totalorder %v2187_v49, %v13640_v34 }
 0x480   :  { %v1577_v53 = vmax.f32 %v1573_v50, 0.0  ;;  %v2186_v48 = vand.u32 31, %v13646_v38  ;;  %v2188_v50 = vand.u32 31, %v13652_v40 }
 0x481   :  { %v12060_v56 = vpack.c.bf16 %v13506_v52, %v13508_v54 }
 0x482   :  { %v12056_v55 = vpack.c.bf16 %v1577_v53, %v1576_v51  ;;  %v15626_v51 = vmov 0  ;;  %v2189_v53 = vand.u32 31, %v13656_v41  ;;  %vm2202_vm7 = vcmp.eq.s32.totalorder %v2186_v48, %v13640_v34 }
 0x483   :  { %v15627_v51 = vsel %vm13668_vm6, 4294967295, %v15626_v51  ;;  %vm13679_vm9 = vmpackc.low %vm2203_vm8, %vm2202_vm7  ;;  %vm2204_vm10 = vcmp.eq.s32.totalorder %v2188_v50, %v13640_v34 }
 0x484   :  { %12057 = vmatprep.subr.bf16.mxu1 %v12056_v55  ;;  %12073 = vmatprep.subr.bf16.mxu0 %v12056_v55  ;;  %vm2205_vm11 = vcmp.eq.s32.totalorder %v2189_v53, %v13640_v34  ;;  %v2401_v53 = vand.u32 31, %v13640_v34 }
 0x485   :  { %12059 = vmatpush3.bf16.msra.mxu1 %v12056_v55  ;;  %12075 = vmatpush3.bf16.msra.mxu0 %v12056_v55  ;;  %vm13697_vm12 = vmpackc.low %vm2205_vm11, %vm2204_vm10 }
 0x486   :  { %12061 = vmatprep.subr.bf16.mxu1 %v12060_v56  ;;  %12077 = vmatprep.subr.bf16.mxu0 %v12060_v56  ;;  %vm2404_vm0 = vcmp.eq.s32.totalorder %v2401_v53, %v13646_v38 }
 0x489   :  { %12063 = vmatpush3.bf16.msra.mxu1 %v12060_v56  ;;  %12079 = vmatpush3.bf16.msra.mxu0 %v12060_v56 }
 0x48a   :  { %12065 = vmatprep.subr.bf16.mxu1 %v12056_v55  ;;  %12080 = vmatprep.subr.bf16.mxu0 %v15581_v36 }
 0x48c   :  { %10704 = vmatmul.mubr.msk.f32.vlgmr.msra.gmra.mrb[28].mxu1 %vm15555_vm2, %v1581_v57  ;;  %10766 = vmatmul.mubr.msk.f32.vlgmr.msra.gmra.mrb[20].mxu0 %vm15555_vm2, %v9115_v58  ;;  %v2190_v57 = vand.u32 31, %v13659_v42  ;;  %v2191_v58 = vand.u32 31, %v13662_v43 }
 0x48d   :  { %12067 = vmatpush3.bf16.msra.mxu1 %v12056_v55  ;;  %10714 = vmatprep.mubr.msk.f32.mxu1 %vm15555_vm2, %v9078_v59  ;;  %v15579_v55 = vmov 1.0|1.0   ;;  %v13688_v59 = vadd.s32 64, %v13635_v32 }
 0x48e   :  { %12069 = vmatprep.subr.bf16.mxu1 %v12060_v56  ;;  %10820 = vmatprep.mubr.msk.f32.mxu0 %vm15560_vm3, %v15572_v62  ;;  %vm2206_vm13 = vcmp.eq.s32.totalorder %v2190_v57, %v13640_v34  ;;  %vm2207_vm14 = vcmp.eq.s32.totalorder %v2191_v58, %v13640_v34  ;;  %v15646_v57 = vmov 0  ;;  %v13806_v58 = vadd.s32 1, %v13635_v32 }
 0x48f   :  { %12082 = vmatpush3.bf16.msk.msra.mxu0 %vm13668_vm6, %v15579_v55  ;;  %vm13715_vm15 = vmpackc.low %vm2207_vm14, %vm2206_vm13 }
 0x490   :  { %12083 = vmatprep.subr.bf16.mxu0 %v15581_v36 }
 0x491   :  { %12071 = vmatpush3.bf16.msra.mxu1 %v12060_v56  ;;  %v15628_v56 = vmov 0 }
 0x492   :  { %10717 = vmatprep.subr.bf16.mxu1 %v15572_v62  ;;  %v15629_v56 = vsel %vm13679_vm9, 4294967295, %v15628_v56 }
 0x493   :  { %12085 = vmatpush3.bf16.msk.msra.mxu0 %vm13679_vm9, %v15579_v55 }
 0x494   :  { %10715 = vmatmul.mubr.msk.f32.vlgmr.msra.gmra.mrb[30].mxu1 %vm15555_vm2, %v9079_v60  ;;  %v13691_v60 = vadd.s32 72, %v13635_v32  ;;  %12086 = vmatprep.subr.bf16.mxu0 %v15581_v36  ;;  %vm2405_vm2 = vcmp.eq.s32.totalorder %v2401_v53, %v13649_v39 }
 0x495   :  { %10718 = vmatpush3.bf16.msra.mxu1 %v12724_v61  ;;  %10733 = vmatprep.mubr.msk.bf16.mxu1 %vm15560_vm3, %v15572_v62  ;;  %v15630_v61 = vmov 0 }
 0x496   :  { %10719 = vmatprep.subr.bf16.mxu1 %v15572_v62  ;;  %v15631_v61 = vsel %vm13697_vm12, 4294967295, %v15630_v61 }
 0x497   :  { %12088 = vmatpush3.bf16.msk.msra.mxu0 %vm13697_vm12, %v15579_v55 }
 0x498   :  { %12089 = vmatprep.subr.bf16.mxu0 %v15581_v36 }
 0x499   :  { %10720 = vmatpush3.bf16.msra.mxu1 %v12725_v63  ;;  %v2192_v63 = vand.u32 31, %v13688_v59 }
 0x49a   :  { %10721 = vmatprep.subr.bf16.mxu1 %v15572_v62 }
 0x49b   :  { %vm2208_vm4 = vcmp.eq.s32.totalorder %v2192_v63, %v13640_v34  ;;  %12091 = vmatpush3.bf16.msk.msra.mxu0 %vm13715_vm15, %v15579_v55  ;;  %v2248_v63 = vmul.u32 4, %v13635_v32 }
 0x49c   :  { %12092 = vmatprep.subr.bf16.mxu0 %v15581_v36 }
 0x49d   :  { %10722 = vmatpush3.bf16.msra.mxu1 %v12726_v0  ;;  %v2193_v0 = vand.u32 31, %v13691_v60 }
 0x49e   :  { %10723 = vmatprep.subr.bf16.mxu1 %v15572_v62 }
 0x49f   :  { %vm2209_vm5 = vcmp.eq.s32.totalorder %v2193_v0, %v13640_v34  ;;  %v2251_v0 = vmul.u32 4, %v13806_v58 }
 0x4a0   :  { %vm13727_vm7 = vmpackc.low %vm2209_vm5, %vm2208_vm4 }
 0x4a1   :  { %10724 = vmatpush3.bf16.msra.mxu1 %v12727_v1  ;;  %v13706_v1 = vadd.s32 80, %v13635_v32  ;;  %12094 = vmatpush3.bf16.msk.msra.mxu0 %vm13727_vm7, %v15579_v55 }
 0x4a2   :  { %10725 = vmatprep.subr.bf16.mxu1 %v15572_v62  ;;  %12095 = vmatprep.subr.bf16.mxu0 %v15581_v36 }
 0x4a5   :  { %10726 = vmatpush3.bf16.msra.mxu1 %v12728_v2  ;;  %v13709_v2 = vadd.s32 88, %v13635_v32 }
 0x4a6   :  { %10727 = vmatprep.subr.bf16.mxu1 %v15572_v62 }
 0x4a9   :  { %10728 = vmatpush3.bf16.msra.mxu1 %v12729_v3  ;;  %v15632_v3 = vmov 0 }
 0x4aa   :  { %10729 = vmatprep.subr.bf16.mxu1 %v15572_v62  ;;  %v15633_v3 = vsel %vm13715_vm15, 4294967295, %v15632_v3 }
 0x4ad   :  { %10730 = vmatpush3.bf16.msra.mxu1 %v12730_v4  ;;  %v2194_v4 = vand.u32 31, %v13706_v1 }
 0x4ae   :  { %10731 = vmatprep.subr.bf16.mxu1 %v15572_v62 }
 0x4af   :  { %vm2210_vm8 = vcmp.eq.s32.totalorder %v2194_v4, %v13640_v34 }
 0x4b1   :  { %10732 = vmatpush3.bf16.msra.mxu1 %v12731_v5  ;;  %v2195_v5 = vand.u32 31, %v13709_v2 }
 0x4b2   :  { %10737 = vmatprep.subr.bf16.mxu1 %v15572_v62 }
 0x4b3   :  { %vm2211_vm10 = vcmp.eq.s32.totalorder %v2195_v5, %v13640_v34 }
 0x4b4   :  { %vm13737_vm11 = vmpackc.low %vm2211_vm10, %vm2210_vm8 }
 0x4b5   :  { %12097 = vmatpush3.bf16.msk.msra.mxu0 %vm13737_vm11, %v15579_v55 }
 0x4b6   :  { %12098 = vmatprep.subr.bf16.mxu0 %v15581_v36 }
 0x55f   :  { %v10705_v6 = vpop.f32.mrb[28].mxu1  ;;  %v10767_v7 = vpop.f32.mrb[20].mxu0 }
 0x560   :  { %v1655_v8 = vpop.f32.mrb[29].mxu1  ;;  %v2036_v9 = vpop.f32.mrb[21].mxu0 }
 0x561   :  { %v1664_v10 = vpack.c.bf16 %v10705_v6, %v1655_v8  ;;  %v2045_v11 = vpack.c.bf16 %v10767_v7, %v2036_v9  ;;  %v15634_v6 = vmov 0  ;;  %v15637_v7 = vmov 0 }
 0x562   :  { %v15635_v6 = vsel %vm13727_vm7, 4294967295, %v15634_v6  ;;  %v15638_v7 = vsel %vm13737_vm11, 4294967295, %v15637_v7  ;;  %v13742_v8 = vadd.s32 96, %v13635_v32  ;;  %v13745_v9 = vadd.s32 104, %v13635_v32 }
 0x563   :  { %15636 = vst [vmem:[#allocation19_spill] sm:$0xff] %v15635_v6  ;;  %15639 = vst [vmem:[#allocation20_spill] sm:$0xff] %v15638_v7 }
 0x567   :  { %v10716_v12 = vpop.f32.mrb[30].mxu1 }
 0x568   :  { %v1756_v13 = vpop.f32.mrb[31].mxu1 }
 0x569   :  { %v1765_v15 = vpack.c.bf16 %v10716_v12, %v1756_v13  ;;  %v13756_v12 = vadd.s32 112, %v13635_v32  ;;  %v13759_v13 = vadd.s32 120, %v13635_v32 }
 0x56b   :  { %10734 = vmatmul.mubr.bf16.vlgmr.msra.gmra.mrb[32].mxu1 %v1765_v15  ;;  %v2198_v15 = vand.u32 31, %v13756_v12 }
 0x56c   :  { %10738 = vmatpush3.bf16.msra.mxu1 %v12732_v14  ;;  %10753 = vmatprep.mubr.msk.bf16.mxu1 %vm15560_vm3, %v15572_v62  ;;  %v15640_v14 = vmov 0 }
 0x56d   :  { %10739 = vmatprep.subr.bf16.mxu1 %v15572_v62  ;;  %vm2214_vm5 = vcmp.eq.s32.totalorder %v2198_v15, %v13640_v34 }
 0x570   :  { %10740 = vmatpush3.bf16.msra.mxu1 %v12733_v16  ;;  %v2199_v16 = vand.u32 31, %v13759_v13 }
 0x571   :  { %10741 = vmatprep.subr.bf16.mxu1 %v15572_v62 }
 0x572   :  { %vm2215_vm8 = vcmp.eq.s32.totalorder %v2199_v16, %v13640_v34 }
 0x573   :  { %vm13773_vm10 = vmpackc.low %vm2215_vm8, %vm2214_vm5  ;;  %vm2249_vm8 = vcmp.ge.s32.totalorder %v13640_v34, %v2248_v63 }
 0x574   :  { %10742 = vmatpush3.bf16.msra.mxu1 %v12734_v17  ;;  %v15643_v17 = vmov 0 }
 0x575   :  { %10743 = vmatprep.subr.bf16.mxu1 %v15572_v62  ;;  %v15644_v17 = vsel %vm13773_vm10, 4294967295, %v15643_v17 }
 0x576   :  { %15645 = vst [vmem:[#allocation22_spill] sm:$0xff] %v15644_v17 }
 0x578   :  { %10744 = vmatpush3.bf16.msra.mxu1 %v12735_v18 }
 0x579   :  { %10745 = vmatprep.subr.bf16.mxu1 %v15572_v62 }
 0x57c   :  { %10746 = vmatpush3.bf16.msra.mxu1 %v12736_v19 }
 0x57d   :  { %10747 = vmatprep.subr.bf16.mxu1 %v15572_v62 }
 0x580   :  { %10748 = vmatpush3.bf16.msra.mxu1 %v12737_v20 }
 0x581   :  { %10749 = vmatprep.subr.bf16.mxu1 %v15572_v62 }
 0x584   :  { %10750 = vmatpush3.bf16.msra.mxu1 %v12738_v21 }
 0x585   :  { %10751 = vmatprep.subr.bf16.mxu1 %v15572_v62 }
 0x588   :  { %10752 = vmatpush3.bf16.msra.mxu1 %v12739_v22 }
 0x589   :  { %10768 = vmatprep.subr.bf16.mxu1 %v15572_v62 }
 0x58b   :  { %10754 = vmatmul.mubr.bf16.vlgmr.msra.gmra.mrb[36].mxu1 %v1664_v10  ;;  %v2196_v10 = vand.u32 31, %v13742_v8 }
 0x58c   :  { %10769 = vmatpush3.bf16.msra.mxu1 %v12740_v23  ;;  %10784 = vmatprep.mubr.msk.bf16.mxu1 %vm15560_vm3, %v15572_v62 }
 0x58d   :  { %10770 = vmatprep.subr.bf16.mxu1 %v15572_v62  ;;  %vm2212_vm13 = vcmp.eq.s32.totalorder %v2196_v10, %v13640_v34 }
 0x590   :  { %10771 = vmatpush3.bf16.msra.mxu1 %v12741_v24 }
 0x591   :  { %10772 = vmatprep.subr.bf16.mxu1 %v15572_v62 }
 0x594   :  { %10773 = vmatpush3.bf16.msra.mxu1 %v12742_v25 }
 0x595   :  { %10774 = vmatprep.subr.bf16.mxu1 %v15572_v62 }
 0x598   :  { %10775 = vmatpush3.bf16.msra.mxu1 %v12743_v26 }
 0x599   :  { %10776 = vmatprep.subr.bf16.mxu1 %v15572_v62 }
 0x59c   :  { %10777 = vmatpush3.bf16.msra.mxu1 %v12744_v27 }
 0x59d   :  { %10778 = vmatprep.subr.bf16.mxu1 %v15572_v62 }
 0x5a0   :  { %10779 = vmatpush3.bf16.msra.mxu1 %v12745_v28 }
 0x5a1   :  { %10780 = vmatprep.subr.bf16.mxu1 %v15572_v62 }
 0x5a4   :  { %10781 = vmatpush3.bf16.msra.mxu1 %v12746_v29  ;;  %v13784_v29 = vld [vmem:[%s15538_s9] ss:$0 sm:$0xff] }
 0x5a5   :  { %10782 = vmatprep.subr.bf16.mxu1 %v15572_v62 }
 0x5a8   :  { %10783 = vmatpush3.bf16.msra.mxu1 %v12747_v30 }
 0x5a9   :  { %10823 = vmatprep.subr.mxu1 %v15572_v62 }
 0x5ab   :  { %10785 = vmatmul.mubr.bf16.vlgmr.msra.gmra.mrb[40].mxu1 %v2045_v11  ;;  %v2197_v11 = vand.u32 31, %v13745_v9 }
 0x5ac   :  { %10825 = vmatprep.mubr.msk.f32.mxu1 %vm15560_vm3, %v15572_v62 }
 0x5ad   :  { %vm2213_vm14 = vcmp.eq.s32.totalorder %v2197_v11, %v13640_v34  ;;  %v15650_v11 = vmov 0 }
 0x5ae   :  { %vm13761_vm4 = vmpackc.low %vm2213_vm14, %vm2212_vm13  ;;  %vm2402_vm13 = vcmp.eq.s32.totalorder %v2401_v53, %v13635_v32  ;;  %vm2403_vm14 = vcmp.eq.s32.totalorder %v2401_v53, %v13638_v33 }
 0x5af   :  { %v15641_v14 = vsel %vm13761_vm4, 4294967295, %v15640_v14  ;;  %12100 = vmatpush3.bf16.msk.msra.mxu0 %vm13761_vm4, %v15579_v55  ;;  %vm13797_vm5 = vmpackc.low %vm2403_vm14, %vm2402_vm13  ;;  %vm2252_vm13 = vcmp.lt.s32.totalorder %v13640_v34, %v2251_v0 }
 0x5b0   :  { %15642 = vst [vmem:[#allocation21_spill] sm:$0xff] %v15641_v14  ;;  %12101 = vmatprep.subr.bf16.mxu0 %v15581_v36  ;;  %v15647_v57 = vsel %vm13797_vm5, 4294967295, %v15646_v57  ;;  %vm2253_vm14 = vmand %vm2249_vm8, %vm2252_vm13  ;;  %vm15653_vm13 = vcmask 261120  }
 0x5b1   :  { %15648 = vst [vmem:[#allocation23_spill] sm:$0xff] %v15647_v57  ;;  %v13813_v4 = vsel %vm2253_vm14, 1.0, %v15572_v62  ;;  %vm13822_vm8 = vmpackc.low %vm2405_vm2, %vm2404_vm0  ;;  %v15716_v57 = vmov 0.0  }
 0x5b2   :  { %15649 = vst [vmem:[#allocation24_spill] sm:$0xff] %v13813_v4  ;;  %v15651_v11 = vsel %vm13822_vm8, 4294967295, %v15650_v11 }
 0x5b3   :  { %12103 = vmatpush3.bf16.msk.msra.mxu0 %vm13773_vm10, %v15579_v55  ;;  %15652 = vst [vmem:[#allocation25_spill] sm:$0xff] %v15651_v11 }
 0x5b4   :  { %12104 = vmatprep.subr.bf16.mxu0 %v15581_v36 }
 0x63e   :  { %v1865_v18 = vpop.f32.mrb[32].mxu1 }
 0x63f   :  { %v10735_v19 = vpop.f32.mrb[33].mxu1 }
 0x640   :  { %v1868_v20 = vpop.f32.mrb[34].mxu1  ;;  %v13837_v19 = vadd.s32 1, %v13640_v34 }
 0x641   :  { %v10736_v21 = vpop.f32.mrb[35].mxu1 }
 0x642   :  { %v2490_v21 = vmul.u32 4, %v13837_v19 }
 0x644   :  { %vm2491_vm2 = vcmp.lt.s32.totalorder %v13635_v32, %v2490_v21 }
 0x65e   :  { %v1954_v22 = vpop.f32.mrb[36].mxu1 }
 0x65f   :  { %v1955_v23 = vadd.f32 %v1954_v22, %v1865_v18  ;;  %v10755_v24 = vpop.f32.mrb[37].mxu1 }
 0x660   :  { %v1957_v25 = vpop.f32.mrb[38].mxu1 }
 0x661   :  { %v1958_v26 = vadd.f32 %v1957_v25, %v1868_v20  ;;  %v10756_v27 = vpop.f32.mrb[39].mxu1  ;;  %v2487_v20 = vmul.u32 4, %v13640_v34 }
 0x663   :  { %vm2488_vm0 = vcmp.ge.s32.totalorder %v13635_v32, %v2487_v20 }
 0x664   :  { %vm2492_vm14 = vmand %vm2488_vm0, %vm2491_vm2  ;;  %vm15655_vm0 = vcmask 64512  }
 0x665   :  { %v13844_v22 = vsel %vm2492_vm14, 1.0, %v15572_v62  ;;  %vm15656_vm2 = vmmov %vm15655_vm0  ;;  %vm15658_vm14 = vcmask 261120  }
 0x666   :  { %15654 = vst [vmem:[#allocation26_spill] sm:$0xff] %v13844_v22 }
 0x67e   :  { %v2145_v28 = vpop.f32.mrb[40].mxu1 }
 0x67f   :  { %v2152_v30 = vadd.f32 %v2145_v28, %v1955_v23  ;;  %v10786_v31 = vpop.f32.mrb[41].mxu1 }
 0x680   :  { %v2148_v35 = vpop.f32.mrb[42].mxu1 }
 0x681   :  { %v2161_v37 = vadd.f32 %v13784_v29, %v2152_v30  ;;  %v13787_v48 = vadd.f32 %v2148_v35, %v1958_v26  ;;  %v10787_v49 = vpop.f32.mrb[43].mxu1 }
 0x683   :  { %v13789_v50 = vmax.f32 %v2161_v37, 0.0  ;;  %v2162_v35 = vadd.f32 %v13784_v29, %v13787_v48 }
 0x685   :  { %10821 = vmatmul.mubr.f32.vlgmr.msra.gmra.mrb[22].mxu0 %v13789_v50  ;;  %v2164_v37 = vmax.f32 %v2162_v35, 0.0 }
 0x686   :  { %10836 = vmatprep.mubr.msk.f32.mxu0 %vm15560_vm3, %v15572_v62  ;;  %12106 = vmatpush3.bf16.msk.msra.mxu0 %vm13797_vm5, %v15579_v55 }
 0x687   :  { %12107 = vmatprep.subr.bf16.mxu0 %v15581_v36 }
 0x68a   :  { %12109 = vmatpush3.bf16.msk.msra.mxu0 %vm13822_vm8, %v15579_v55 }
 0x68b   :  { %10879 = vmatprep.subr.mxu0 %v15572_v62 }
 0x758   :  { %v2322_v5 = vpop.f32.mrb[22].mxu0 }
 0x759   :  { %v10822_v10 = vpop.f32.mrb[23].mxu0  ;;  %10824 = vmatpush3.msra.mxu1 %v2322_v5 }
 0x75a   :  { %10826 = vmatmul.mubr.msk.f32.vlgmr.msra.gmra.mrb[44].mxu1 %vm15556_vm1, %v13813_v4  ;;  %10839 = vmatprep.subr.mxu1 %v15572_v62  ;;  %vm15557_vm1 = vcmask 1041408  }
 0x75b   :  { %10841 = vmatprep.mubr.msk.f32.mxu1 %vm15560_vm3, %v15572_v62 }
 0x82d   :  { %v2396_v15 = vpop.f32.mrb[44].mxu1 }
 0x82e   :  { %v13830_v16 = vmul.f32 0.0625, %v2396_v15  ;;  %v10827_v18 = vpop.f32.mrb[45].mxu1 }
 0x830   :  { %10837 = vmatmul.mubr.msk.f32.vlgmr.msra.gmra.mrb[24].mxu0 %vm15653_vm13, %v13830_v16  ;;  %vm15558_vm13 = vcmask 15360  }
 0x831   :  { %10881 = vmatprep.mubr.msk.f32.mxu0 %vm15560_vm3, %v15572_v62 }
 0x903   :  { %v2483_v23 = vpop.f32.mrb[24].mxu0 }
 0x904   :  { %10840 = vmatpush3.msk.msra.mxu1 %vm15557_vm1, %v2483_v23  ;;  %v10838_v24 = vpop.f32.mrb[25].mxu0 }
 0x905   :  { %10842 = vmatmul.mubr.msk.f32.vlgmr.msra.gmra.mrb[46].mxu1 %vm15558_vm13, %v13844_v22  ;;  %12110 = vmatprep.subr.bf16.mxu1 %v15581_v36 }
 0x906   :  { %12112 = vmatpush3.bf16.msk.msra.mxu1 %vm13668_vm6, %v15579_v55  ;;  %10876 = vmatprep.mubr.msk.f32.mxu1 %vm15560_vm3, %v15572_v62 }
 0x907   :  { %12113 = vmatprep.subr.bf16.mxu1 %v15581_v36 }
 0x90a   :  { %12115 = vmatpush3.bf16.msk.msra.mxu1 %vm13679_vm9, %v15579_v55 }
 0x90b   :  { %12116 = vmatprep.subr.bf16.mxu1 %v15581_v36 }
 0x90e   :  { %12118 = vmatpush3.bf16.msk.msra.mxu1 %vm13697_vm12, %v15579_v55 }
 0x90f   :  { %12119 = vmatprep.subr.bf16.mxu1 %v15581_v36 }
 0x912   :  { %12121 = vmatpush3.bf16.msk.msra.mxu1 %vm13715_vm15, %v15579_v55 }
 0x913   :  { %12122 = vmatprep.subr.bf16.mxu1 %v15581_v36 }
 0x916   :  { %12124 = vmatpush3.bf16.msk.msra.mxu1 %vm13727_vm7, %v15579_v55 }
 0x917   :  { %12125 = vmatprep.subr.bf16.mxu1 %v15581_v36 }
 0x91a   :  { %12127 = vmatpush3.bf16.msk.msra.mxu1 %vm13737_vm11, %v15579_v55 }
 0x91b   :  { %12128 = vmatprep.subr.bf16.mxu1 %v15581_v36 }
 0x91e   :  { %12130 = vmatpush3.bf16.msk.msra.mxu1 %vm13761_vm4, %v15579_v55 }
 0x91f   :  { %12131 = vmatprep.subr.bf16.mxu1 %v15581_v36 }
 0x922   :  { %12133 = vmatpush3.bf16.msk.msra.mxu1 %vm13773_vm10, %v15579_v55 }
 0x923   :  { %10919 = vmatprep.subr.mxu1 %v15572_v62 }
 0x9d8   :  { %v2569_v25 = vpop.f32.mrb[46].mxu1 }
 0x9d9   :  { %v2573_v26 = vsub.f32 %v13789_v50, %v2569_v25  ;;  %v10843_v27 = vpop.f32.mrb[47].mxu1 }
 0x9db   :  { %v2574_v28 = vmul.f32 %v2573_v26, %v2573_v26 }
 0x9dd   :  { %10877 = vmatmul.mubr.f32.vlgmr.msra.gmra.mrb[48].mxu1 %v2574_v28 }
 0x9de   :  { %10921 = vmatprep.mubr.msk.f32.mxu1 %vm15560_vm3, %v15572_v62 }
 0xab0   :  { %v2641_v30 = vpop.f32.mrb[48].mxu1 }
 0xab1   :  { %v10878_v31 = vpop.f32.mrb[49].mxu1  ;;  %10880 = vmatpush3.msra.mxu0 %v2641_v30 }
 0xab2   :  { %12134 = vmatprep.subr.bf16.mxu0 %v15581_v36  ;;  %10882 = vmatmul.mubr.msk.f32.vlgmr.msra.gmra.mrb[26].mxu0 %vm15655_vm0, %v13813_v4 }
 0xab3   :  { %12136 = vmatpush3.bf16.msk.msra.mxu0 %vm13668_vm6, %v15579_v55  ;;  %10916 = vmatprep.mubr.msk.f32.mxu0 %vm15560_vm3, %v15572_v62 }
 0xab4   :  { %12137 = vmatprep.subr.bf16.mxu0 %v15581_v36 }
 0xab7   :  { %12139 = vmatpush3.bf16.msk.msra.mxu0 %vm13679_vm9, %v15579_v55 }
 0xab8   :  { %12140 = vmatprep.subr.bf16.mxu0 %v15581_v36 }
 0xabb   :  { %12142 = vmatpush3.bf16.msk.msra.mxu0 %vm13697_vm12, %v15579_v55 }
 0xabc   :  { %12143 = vmatprep.subr.bf16.mxu0 %v15581_v36 }
 0xabf   :  { %12145 = vmatpush3.bf16.msk.msra.mxu0 %vm13715_vm15, %v15579_v55 }
 0xac0   :  { %12146 = vmatprep.subr.bf16.mxu0 %v15581_v36 }
 0xac3   :  { %12148 = vmatpush3.bf16.msk.msra.mxu0 %vm13727_vm7, %v15579_v55 }
 0xac4   :  { %12149 = vmatprep.subr.bf16.mxu0 %v15581_v36 }
 0xac7   :  { %12151 = vmatpush3.bf16.msk.msra.mxu0 %vm13737_vm11, %v15579_v55 }
 0xac8   :  { %12152 = vmatprep.subr.bf16.mxu0 %v15581_v36 }
 0xacb   :  { %12154 = vmatpush3.bf16.msk.msra.mxu0 %vm13761_vm4, %v15579_v55 }
 0xacc   :  { %12155 = vmatprep.subr.bf16.mxu0 %v15581_v36 }
 0xacf   :  { %12157 = vmatpush3.bf16.msk.msra.mxu0 %vm13773_vm10, %v15579_v55 }
 0xad0   :  { %10935 = vmatprep.subr.mxu0 %v15572_v62 }
 0xad2   :  { %10917 = vmatmul.mubr.f32.vlgmr.msra.gmra.mrb[28].mxu0 %v2164_v37 }
 0xad3   :  { %10937 = vmatprep.mubr.msk.f32.mxu0 %vm15560_vm3, %v15572_v62 }
 0xb85   :  { %v2711_v49 = vpop.f32.mrb[26].mxu0 }
 0xb86   :  { %v10883_v53 = vpop.f32.mrb[27].mxu0  ;;  %v2715_v27 = vmul.f32 0.0625, %v2711_v49 }
 0xb88   :  { %v3154_v35 = vadd.f32 1e-05, %v2715_v27 }
 0xba5   :  { %v2782_v63 = vpop.f32.mrb[28].mxu0 }
 0xba6   :  { %v10918_v0 = vpop.f32.mrb[29].mxu0  ;;  %10920 = vmatpush3.msra.mxu1 %v2782_v63 }
 0xba7   :  { %10922 = vmatmul.mubr.msk.f32.vlgmr.msra.gmra.mrb[50].mxu1 %vm15656_vm2, %v13813_v4  ;;  %12158 = vmatprep.subr.bf16.mxu1 %v15581_v36 }
 0xba8   :  { %12160 = vmatpush3.bf16.msk.msra.mxu1 %vm13797_vm5, %v15579_v55  ;;  %10932 = vmatprep.mubr.msk.f32.mxu1 %vm15560_vm3, %v15572_v62 }
 0xba9   :  { %12161 = vmatprep.subr.bf16.mxu1 %v15581_v36 }
 0xbac   :  { %12163 = vmatpush3.bf16.msk.msra.mxu1 %vm13822_vm8, %v15579_v55 }
 0xbad   :  { %10975 = vmatprep.subr.mxu1 %v15572_v62 }
 0xc7a   :  { %v2852_v29 = vpop.f32.mrb[50].mxu1 }
 0xc7b   :  { %v13941_v48 = vmul.f32 0.0625, %v2852_v29  ;;  %v10923_v5 = vpop.f32.mrb[51].mxu1 }
 0xc7d   :  { %15657 = vst [vmem:[#allocation27_spill] sm:$0xff] %v13941_v48  ;;  %10933 = vmatmul.mubr.msk.f32.vlgmr.msra.gmra.mrb[52].mxu1 %vm15658_vm14, %v13941_v48 }
 0xc7e   :  { %10977 = vmatprep.mubr.msk.f32.mxu1 %vm15560_vm3, %v15572_v62 }
 0xd50   :  { %v2926_v10 = vpop.f32.mrb[52].mxu1 }
 0xd51   :  { %10936 = vmatpush3.msk.msra.mxu0 %vm15557_vm1, %v2926_v10  ;;  %v10934_v15 = vpop.f32.mrb[53].mxu1 }
 0xd52   :  { %10938 = vmatmul.mubr.msk.f32.vlgmr.msra.gmra.mrb[30].mxu0 %vm15558_vm13, %v13844_v22  ;;  %12164 = vmatprep.subr.bf16.mxu0 %v15581_v36 }
 0xd53   :  { %12166 = vmatpush3.bf16.msk.msra.mxu0 %vm13668_vm6, %v15579_v55  ;;  %10972 = vmatprep.mubr.msk.f32.mxu0 %vm15560_vm3, %v15572_v62 }
 0xd54   :  { %12167 = vmatprep.subr.bf16.mxu0 %v15581_v36 }
 0xd57   :  { %12169 = vmatpush3.bf16.msk.msra.mxu0 %vm13679_vm9, %v15579_v55 }
 0xd58   :  { %12170 = vmatprep.subr.bf16.mxu0 %v15581_v36 }
 0xd5b   :  { %12172 = vmatpush3.bf16.msk.msra.mxu0 %vm13697_vm12, %v15579_v55 }
 0xd5c   :  { %12173 = vmatprep.subr.bf16.mxu0 %v15581_v36 }
 0xd5f   :  { %12175 = vmatpush3.bf16.msk.msra.mxu0 %vm13715_vm15, %v15579_v55  ;;  %vm15718_vm15 = vcmask 261120  }
 0xd60   :  { %12176 = vmatprep.subr.bf16.mxu0 %v15581_v36 }
 0xd63   :  { %12178 = vmatpush3.bf16.msk.msra.mxu0 %vm13727_vm7, %v15579_v55 }
 0xd64   :  { %12179 = vmatprep.subr.bf16.mxu0 %v15581_v36 }
 0xd67   :  { %12181 = vmatpush3.bf16.msk.msra.mxu0 %vm13737_vm11, %v15579_v55 }
 0xd68   :  { %12182 = vmatprep.subr.bf16.mxu0 %v15581_v36 }
 0xd6b   :  { %12184 = vmatpush3.bf16.msk.msra.mxu0 %vm13761_vm4, %v15579_v55 }
 0xd6c   :  { %12185 = vmatprep.subr.bf16.mxu0 %v15581_v36 }
 0xd6f   :  { %12187 = vmatpush3.bf16.msk.msra.mxu0 %vm13773_vm10, %v15579_v55 }
 0xd70   :  { %11017 = vmatprep.subr.mxu0 %v15572_v62 }
 0xe25   :  { %v2999_v18 = vpop.f32.mrb[30].mxu0 }
 0xe26   :  { %v3003_v20 = vsub.f32 %v2164_v37, %v2999_v18  ;;  %v10939_v21 = vpop.f32.mrb[31].mxu0 }
 0xe28   :  { %v3004_v23 = vmul.f32 %v3003_v20, %v3003_v20 }
 0xe2a   :  { %10973 = vmatmul.mubr.f32.vlgmr.msra.gmra.mrb[32].mxu0 %v3004_v23 }
 0xe2b   :  { %11019 = vmatprep.mubr.msk.f32.mxu0 %vm15560_vm3, %v15572_v62 }
 0xefd   :  { %v3071_v24 = vpop.f32.mrb[32].mxu0 }
 0xefe   :  { %v10974_v25 = vpop.f32.mrb[33].mxu0  ;;  %10976 = vmatpush3.msra.mxu1 %v3071_v24 }
 0xeff   :  { %10978 = vmatmul.mubr.msk.f32.vlgmr.msra.gmra.mrb[54].mxu1 %vm15655_vm0, %v13813_v4  ;;  %12188 = vmatprep.subr.bf16.mxu1 %v15581_v36  ;;  %vm15660_vm0 = vcmask 261120  }
 0xf00   :  { %12190 = vmatpush3.bf16.msk.msra.mxu1 %vm13797_vm5, %v15579_v55  ;;  %10988 = vmatprep.mubr.msk.f32.mxu1 %vm15560_vm3, %v15572_v62 }
 0xf01   :  { %12191 = vmatprep.subr.bf16.mxu1 %v15581_v36 }
 0xf04   :  { %12193 = vmatpush3.bf16.msk.msra.mxu1 %vm13822_vm8, %v15579_v55 }
 0xf05   :  { %10991 = vmatprep.subr.mxu1 %v15572_v62 }
 0xfd2   :  { %v3141_v26 = vpop.f32.mrb[54].mxu1 }
 0xfd3   :  { %v3145_v28 = vmul.f32 0.0625, %v3141_v26  ;;  %v10979_v30 = vpop.f32.mrb[55].mxu1 }
 0xfd5   :  { %v3146_v31 = vadd.f32 1e-05, %v3145_v28  ;;  %v3453_v28 = vmul.f32 0.0, %v13789_v50 }
 0xfd7   :  { %12796 = vrsqrt.f32 %v3146_v31  ;;  %vm3149_vm2 = vcmp.eq.f32.partialorder %v3146_v31, inf  ;;  %v3152_v63 = vand.u32 2147483648, %v3146_v31  ;;  %vm3151_vm14 = vcmp.eq.f32.partialorder %v3146_v31, 0.0 }
 0xfd8   :  { %12798 = vrsqrt.f32 %v3154_v35  ;;  %v3547_v35 = vld [vmem:[#allocation7 + $0x8] sm:$0xff] }
 0xfe1   :  { %v12797_v37 = vpop.eup %12796 }
 0xfe2   :  { %v3148_v53 = vmul.f32 %v12797_v37, %v3146_v31  ;;  %v12799_v29 = vpop.eup %12798  ;;  %v3455_v37 = vld [vmem:[#allocation7] sm:$0xff] }
 0xfe4   :  { %v3150_v0 = vsel %vm3149_vm2, %v3146_v31, %v3148_v53  ;;  %vm15661_vm2 = vmmov %vm15660_vm0  ;;  %v12748_v53 = vld [vmem:[%s15540_s11 + $0x40] sm:$0xff]  }
 0xfe5   :  { %v14000_v5 = vsel %vm3151_vm14, %v3152_v63, %v3150_v0  ;;  %v12749_v63 = vld [vmem:[%s15540_s11] sm:$0xff]   ;;  %vm15662_vm14 = vcmask 64512   ;;  %v12751_v0 = vld [vmem:[%s15540_s11 + $0x8] sm:$0xff]  }
 0xfe6   :  { %15659 = vst [vmem:[#allocation28_spill] sm:$0xff] %v14000_v5  ;;  %v3156_v10 = vmul.f32 %v12799_v29, %v14000_v5  ;;  %v12752_v29 = vld [vmem:[%s15540_s11 + $0x50] sm:$0xff]  }
 0xfe8   :  { %10989 = vmatmul.mubr.msk.f32.vlgmr.msra.gmra.mrb[56].mxu1 %vm15660_vm0, %v3156_v10  ;;  %v3157_v18 = vmul.f32 %v3156_v10, %v13830_v16  ;;  %vm15663_vm0 = vmmov %vm15662_vm14  ;;  %v12753_v10 = vld [vmem:[%s15540_s11 + $0x10] sm:$0xff]  }
 0xfe9   :  { %10993 = vmatprep.mubr.msk.f32.mxu1 %vm15560_vm3, %v15572_v62 }
 0xfea   :  { %v3158_v20 = vsub.f32 %v13941_v48, %v3157_v18  ;;  %v12756_v18 = vld [vmem:[%s15540_s11 + $0x60] sm:$0xff]  }
0x10bb   :  { %v3228_v49 = vpop.f32.mrb[56].mxu1 }
0x10bc   :  { %v10990_v15 = vpop.f32.mrb[57].mxu1  ;;  %10992 = vmatpush3.msk.msra.mxu1 %vm15557_vm1, %v3228_v49  ;;  %v12754_v49 = vld [vmem:[%s15540_s11 + $0x58] sm:$0xff]  }
0x10bd   :  { %10994 = vmatmul.mubr.msk.f32.vlgmr.msra.gmra.mrb[58].mxu1 %vm15558_vm13, %v13844_v22  ;;  %12194 = vmatprep.subr.bf16.mxu1 %v15581_v36  ;;  %v12755_v15 = vld [vmem:[%s15540_s11 + $0x18] sm:$0xff]  }
0x10be   :  { %12196 = vmatpush3.bf16.msk.msra.mxu1 %vm13797_vm5, %v15579_v55  ;;  %11004 = vmatprep.mubr.msk.f32.mxu1 %vm15560_vm3, %v15572_v62 }
0x10bf   :  { %12197 = vmatprep.subr.bf16.mxu1 %v15581_v36 }
0x10c2   :  { %12199 = vmatpush3.bf16.msk.msra.mxu1 %vm13822_vm8, %v15579_v55 }
0x10c3   :  { %11007 = vmatprep.subr.mxu1 %v15572_v62 }
0x10c5   :  { %11005 = vmatmul.mubr.msk.f32.vlgmr.msra.gmra.mrb[60].mxu1 %vm15661_vm2, %v3158_v20  ;;  %v12757_v20 = vld [vmem:[%s15540_s11 + $0x20] sm:$0xff]   ;;  %vm15664_vm2 = vmmov %vm15663_vm0 }
0x10c6   :  { %11009 = vmatprep.mubr.msk.f32.mxu1 %vm15560_vm3, %v15572_v62 }
0x1190   :  { %v3301_v21 = vpop.f32.mrb[58].mxu1 }
0x1191   :  { %v10995_v23 = vpop.f32.mrb[59].mxu1  ;;  %v3305_v16 = vmul.f32 %v3301_v21, %v13789_v50  ;;  %v12750_v50 = vld [vmem:[%s15540_s11 + $0x48] sm:$0xff]  }
0x1192   :  { %v12758_v21 = vld [vmem:[%s15540_s11 + $0x68] sm:$0xff]  }
0x1193   :  { %v12759_v23 = vld [vmem:[%s15540_s11 + $0x28] sm:$0xff]  }
0x1198   :  { %v3375_v24 = vpop.f32.mrb[60].mxu1 }
0x1199   :  { %v11006_v25 = vpop.f32.mrb[61].mxu1  ;;  %11008 = vmatpush3.msk.msra.mxu1 %vm15557_vm1, %v3375_v24  ;;  %v12760_v24 = vld [vmem:[%s15540_s11 + $0x70] sm:$0xff]  }
0x119a   :  { %11010 = vmatmul.mubr.msk.f32.vlgmr.msra.gmra.mrb[62].mxu1 %vm15558_vm13, %v13844_v22  ;;  %11012 = vmatprep.subr.mxu1 %v15572_v62  ;;  %v12761_v25 = vld [vmem:[%s15540_s11 + $0x30] sm:$0xff]  }
0x119b   :  { %11014 = vmatprep.mubr.msk.f32.mxu1 %vm15560_vm3, %v15572_v62 }
0x126d   :  { %v3448_v26 = vpop.f32.mrb[62].mxu1 }
0x126e   :  { %v3452_v27 = vadd.f32 %v3448_v26, %v3305_v16  ;;  %v11011_v30 = vpop.f32.mrb[63].mxu1  ;;  %v12762_v16 = vld [vmem:[%s15540_s11 + $0x78] sm:$0xff]  }
0x126f   :  { %v12763_v26 = vld [vmem:[%s15540_s11 + $0x38] sm:$0xff]  }
0x1270   :  { %v14033_v31 = vadd.f32 %v3453_v28, %v3452_v27 }
0x1272   :  { %11013 = vmatpush3.msra.mxu1 %v14033_v31  ;;  %11018 = vmatpush3.msra.mxu0 %v14033_v31 }
0x1273   :  { %11020 = vmatmul.mubr.msk.f32.vlgmr.msra.gmra.mrb[34].mxu0 %vm15662_vm14, %v3547_v35  ;;  %11015 = vmatmul.mubr.msk.f32.vlgmr.msra.gmra.mrb[64].mxu1 %vm15663_vm0, %v3455_v37  ;;  %vm15665_vm14 = vmmov %vm15663_vm0 }
0x1274   :  { %11022 = vmatprep.subr.bf16.mxu1 %v15572_v62  ;;  %11042 = vmatprep.subr.bf16.mxu0 %v15572_v62 }
0x1275   :  { %11023 = vmatpush3.bf16.msra.mxu1 %v12748_v53  ;;  %11043 = vmatpush3.bf16.msra.mxu0 %v12749_v63  ;;  %v12764_v63 = vld [vmem:[%s15540_s11 + $0x80] sm:$0xff]  }
0x1276   :  { %11024 = vmatprep.subr.bf16.mxu1 %v15572_v62  ;;  %11044 = vmatprep.subr.bf16.mxu0 %v15572_v62 }
0x1277   :  { %11038 = vmatprep.mubr.msk.bf16.mxu1 %vm15560_vm3, %v15572_v62  ;;  %11058 = vmatprep.mubr.msk.bf16.mxu0 %vm15560_vm3, %v15572_v62 }
0x1279   :  { %11025 = vmatpush3.bf16.msra.mxu1 %v12750_v50  ;;  %11045 = vmatpush3.bf16.msra.mxu0 %v12751_v0  ;;  %v12765_v50 = vld [vmem:[%s15540_s11 + $0x88] sm:$0xff]   ;;  %v3816_v0 = vld [vmem:[#allocation7 + $0x10] sm:$0xff] }
0x127a   :  { %11026 = vmatprep.subr.bf16.mxu1 %v15572_v62  ;;  %11046 = vmatprep.subr.bf16.mxu0 %v15572_v62 }
0x127d   :  { %11027 = vmatpush3.bf16.msra.mxu1 %v12752_v29  ;;  %11047 = vmatpush3.bf16.msra.mxu0 %v12753_v10  ;;  %v12766_v29 = vld [vmem:[%s15540_s11 + $0x90] sm:$0xff]   ;;  %v12767_v10 = vld [vmem:[%s15540_s11 + $0x98] sm:$0xff]  }
0x127e   :  { %11028 = vmatprep.subr.bf16.mxu1 %v15572_v62  ;;  %11048 = vmatprep.subr.bf16.mxu0 %v15572_v62 }
0x1281   :  { %11029 = vmatpush3.bf16.msra.mxu1 %v12754_v49  ;;  %11049 = vmatpush3.bf16.msra.mxu0 %v12755_v15  ;;  %v12768_v49 = vld [vmem:[%s15540_s11 + $0xa0] sm:$0xff]   ;;  %v12769_v15 = vld [vmem:[%s15540_s11 + $0xa8] sm:$0xff]  }
0x1282   :  { %11030 = vmatprep.subr.bf16.mxu1 %v15572_v62  ;;  %11050 = vmatprep.subr.bf16.mxu0 %v15572_v62 }
0x1285   :  { %11031 = vmatpush3.bf16.msra.mxu1 %v12756_v18  ;;  %11051 = vmatpush3.bf16.msra.mxu0 %v12757_v20  ;;  %v12770_v18 = vld [vmem:[%s15540_s11 + $0xb0] sm:$0xff]   ;;  %v12771_v20 = vld [vmem:[%s15540_s11 + $0xb8] sm:$0xff]  }
0x1286   :  { %11032 = vmatprep.subr.bf16.mxu1 %v15572_v62  ;;  %11052 = vmatprep.subr.bf16.mxu0 %v15572_v62 }
0x1289   :  { %11033 = vmatpush3.bf16.msra.mxu1 %v12758_v21  ;;  %11053 = vmatpush3.bf16.msra.mxu0 %v12759_v23 }
0x128a   :  { %11034 = vmatprep.subr.bf16.mxu1 %v15572_v62  ;;  %11054 = vmatprep.subr.bf16.mxu0 %v15572_v62 }
0x128d   :  { %11035 = vmatpush3.bf16.msra.mxu1 %v12760_v24  ;;  %11055 = vmatpush3.bf16.msra.mxu0 %v12761_v25 }
0x128e   :  { %11036 = vmatprep.subr.bf16.mxu1 %v15572_v62  ;;  %11056 = vmatprep.subr.bf16.mxu0 %v15572_v62 }
0x1291   :  { %11037 = vmatpush3.bf16.msra.mxu1 %v12762_v16  ;;  %11057 = vmatpush3.bf16.msra.mxu0 %v12763_v26 }
0x1292   :  { %11062 = vmatprep.subr.mxu1 %v15572_v62  ;;  %11067 = vmatprep.subr.bf16.mxu0 %v15572_v62 }
0x1346   :  { %v3617_v27 = vpop.f32.mrb[34].mxu0  ;;  %v3525_v28 = vpop.f32.mrb[64].mxu1 }
0x1347   :  { %v3621_v30 = vpack.c.bf16 %v3617_v27, %v3617_v27  ;;  %v3529_v35 = vpack.c.bf16 %v3525_v28, %v3525_v28  ;;  %v11021_v37 = vpop.f32.mrb[35].mxu0  ;;  %v11016_v53 = vpop.f32.mrb[65].mxu1 }
0x1349   :  { %11039 = vmatmul.mubr.bf16.vlgmr.msra.gmra.mrb[68].mxu1 %v3621_v30  ;;  %11059 = vmatmul.mubr.bf16.vlgmr.msra.gmra.mrb[36].mxu0 %v3529_v35 }
0x134a   :  { %11063 = vmatpush3.msra.mxu1 %v14033_v31  ;;  %11064 = vmatprep.mubr.msk.f32.mxu1 %vm15560_vm3, %v15572_v62 }
0x134b   :  { %11068 = vmatpush3.bf16.msra.mxu0 %v12764_v63  ;;  %11083 = vmatprep.mubr.msk.bf16.mxu0 %vm15560_vm3, %v15572_v62  ;;  %v4006_v63 = vld [vmem:[%s15542_s13] sm:$0xff] }
0x134c   :  { %11069 = vmatprep.subr.bf16.mxu0 %v15572_v62 }
0x134f   :  { %11070 = vmatpush3.bf16.msra.mxu0 %v12765_v50  ;;  %v9345_v50 = vld [vmem:[%s15542_s13 + $0x20] sm:$0xff] }
0x1350   :  { %11071 = vmatprep.subr.bf16.mxu0 %v15572_v62 }
0x1351   :  { %11065 = vmatmul.mubr.msk.f32.vlgmr.msra.gmra.mrb[66].mxu1 %vm15664_vm2, %v3816_v0  ;;  %vm15666_vm2 = vmmov %vm15663_vm0 }
0x1352   :  { %11089 = vmatprep.mubr.msk.f32.mxu1 %vm15665_vm14, %v4006_v63  ;;  %vm15667_vm14 = vmmov %vm15663_vm0  ;;  %v12783_v63 = vld [vmem:[%s15543_s14 + $0x58] sm:$0xff]  }
0x1353   :  { %11072 = vmatpush3.bf16.msra.mxu0 %v12766_v29  ;;  %v9320_v29 = vld [vmem:[#allocation8] ss:$0 sm:$0xff] }
0x1354   :  { %11073 = vmatprep.subr.bf16.mxu0 %v15572_v62 }
0x1357   :  { %11074 = vmatpush3.bf16.msra.mxu0 %v12767_v10 }
0x1358   :  { %11075 = vmatprep.subr.bf16.mxu0 %v15572_v62 }
0x135b   :  { %11076 = vmatpush3.bf16.msra.mxu0 %v12768_v49 }
0x135c   :  { %11077 = vmatprep.subr.bf16.mxu0 %v15572_v62 }
0x135f   :  { %11078 = vmatpush3.bf16.msra.mxu0 %v12769_v15 }
0x1360   :  { %11079 = vmatprep.subr.bf16.mxu0 %v15572_v62 }
0x1363   :  { %11080 = vmatpush3.bf16.msra.mxu0 %v12770_v18 }
0x1364   :  { %11081 = vmatprep.subr.bf16.mxu0 %v15572_v62 }
0x1367   :  { %11082 = vmatpush3.bf16.msra.mxu0 %v12771_v20 }
0x141c   :  { %v3721_v21 = vpop.f32.mrb[68].mxu1  ;;  %v3809_v23 = vpop.f32.mrb[36].mxu0 }
0x141d   :  { %v11040_v24 = vpop.f32.mrb[69].mxu1  ;;  %v3810_v25 = vadd.f32 %v3809_v23, %v3721_v21  ;;  %v11060_v16 = vpop.f32.mrb[37].mxu0  ;;  %v4007_v23 = vld [vmem:[%s15542_s13 + $0x8] sm:$0xff] }
0x141e   :  { %v3724_v26 = vpop.f32.mrb[70].mxu1  ;;  %v3812_v27 = vpop.f32.mrb[38].mxu0  ;;  %v9323_v24 = vld [vmem:[%s15542_s13 + $0x10] sm:$0xff]  ;;  %v9324_v16 = vld [vmem:[%s15542_s13 + $0x18] sm:$0xff] }
0x141f   :  { %v11041_v28 = vpop.f32.mrb[71].mxu1  ;;  %v11061_v30 = vpop.f32.mrb[39].mxu0  ;;  %v12772_v26 = vld [vmem:[%s15543_s14 + $0x20] sm:$0xff]   ;;  %v12773_v27 = vld [vmem:[%s15543_s14 + $0x28] sm:$0xff]  }
0x1420   :  { %v12774_v28 = vld [vmem:[%s15543_s14 + $0x30] sm:$0xff]   ;;  %v12775_v30 = vld [vmem:[%s15543_s14 + $0x38] sm:$0xff]  }
0x1424   :  { %v3886_v35 = vpop.f32.mrb[66].mxu1 }
0x1425   :  { %v3890_v37 = vpack.c.bf16 %v3886_v35, %v3886_v35  ;;  %v11066_v53 = vpop.f32.mrb[67].mxu1  ;;  %v12777_v35 = vld [vmem:[%s15543_s14 + $0x40] sm:$0xff]  }
0x1426   :  { %v12781_v53 = vld [vmem:[%s15543_s14 + $0x50] sm:$0xff]  }
0x1427   :  { %11084 = vmatmul.mubr.bf16.vlgmr.msra.gmra.mrb[40].mxu0 %v3890_v37  ;;  %v12779_v37 = vld [vmem:[%s15543_s14 + $0x48] sm:$0xff]  }
0x1428   :  { %11123 = vmatprep.mubr.msk.f32.mxu0 %vm15663_vm0, %v9345_v50 }
0x14fa   :  { %v3990_v0 = vpop.f32.mrb[40].mxu0 }
0x14fb   :  { %v3996_v10 = vadd.f32 %v3990_v0, %v3810_v25  ;;  %v11085_v49 = vpop.f32.mrb[41].mxu0  ;;  %v9346_v25 = vld [vmem:[%s15542_s13 + $0x28] sm:$0xff] }
0x14fc   :  { %v3993_v15 = vpop.f32.mrb[42].mxu0 }
0x14fd   :  { %v4004_v18 = vadd.f32 %v9320_v29, %v3996_v10  ;;  %v11086_v20 = vpop.f32.mrb[43].mxu0 }
0x14ff   :  { %v4005_v21 = vmax.f32 %v4004_v18, 0.0 }
0x1501   :  { %11087 = vmatprep.subr.mxu1 %v4005_v21  ;;  %11121 = vmatprep.subr.mxu0 %v4005_v21 }
0x1502   :  { %11088 = vmatpush3.msra.mxu1 %v4005_v21  ;;  %11122 = vmatpush3.msra.mxu0 %v4005_v21 }
0x1503   :  { %11090 = vmatmul.mubr.msk.f32.vlgmr.msra.gmra.mrb[72].mxu1 %vm15666_vm2, %v4007_v23  ;;  %11092 = vmatprep.subr.mxu1 %v4005_v21  ;;  %vm15668_vm2 = vmmov %vm15663_vm0 }
0x1504   :  { %11093 = vmatpush3.msra.mxu1 %v4005_v21  ;;  %11094 = vmatprep.mubr.msk.f32.mxu1 %vm15667_vm14, %v9323_v24  ;;  %v12776_v21 = vld [vmem:[%s15543_s14] sm:$0xff]   ;;  %vm15669_vm14 = vcmask 523264   ;;  %v12778_v24 = vld [vmem:[%s15543_s14 + $0x8] sm:$0xff]  }
0x1505   :  { %11124 = vmatmul.mubr.msk.f32.vlgmr.msra.gmra.mrb[44].mxu0 %vm15663_vm0, %v9346_v25  ;;  %11097 = vmatprep.subr.bf16.mxu1 %v15572_v62  ;;  %vm15670_vm0 = vmmov %vm15669_vm14  ;;  %v12780_v25 = vld [vmem:[%s15543_s14 + $0x10] sm:$0xff]  }
0x1506   :  { %11126 = vmatprep.subr.bf16.mxu0 %v15572_v62  ;;  %11134 = vmatprep.mubr.msk.bf16.mxu0 %vm15560_vm3, %v15572_v62 }
0x1507   :  { %11095 = vmatmul.mubr.msk.f32.vlgmr.msra.gmra.mrb[74].mxu1 %vm15668_vm2, %v9324_v16  ;;  %11127 = vmatpush3.bf16.msra.mxu0 %v12777_v35  ;;  %v12782_v16 = vld [vmem:[%s15543_s14 + $0x18] sm:$0xff]   ;;  %vm15671_vm2 = vmmov %vm15670_vm0 }
0x1508   :  { %11098 = vmatpush3.bf16.msra.mxu1 %v12772_v26  ;;  %11105 = vmatprep.mubr.msk.bf16.mxu1 %vm15560_vm3, %v15572_v62  ;;  %v4503_v26 = vld [vmem:[%s15545_s16] sm:$0xff] }
0x1509   :  { %11099 = vmatprep.subr.bf16.mxu1 %v15572_v62  ;;  %11128 = vmatprep.subr.bf16.mxu0 %v15572_v62 }
0x150b   :  { %11129 = vmatpush3.bf16.msra.mxu0 %v12779_v37 }
0x150c   :  { %11100 = vmatpush3.bf16.msra.mxu1 %v12773_v27  ;;  %11130 = vmatprep.subr.bf16.mxu0 %v15572_v62  ;;  %v12784_v27 = vld [vmem:[%s15546_s17 + $0x20] sm:$0xff]  }
0x150d   :  { %11101 = vmatprep.subr.bf16.mxu1 %v15572_v62 }
0x150f   :  { %11131 = vmatpush3.bf16.msra.mxu0 %v12781_v53 }
0x1510   :  { %11102 = vmatpush3.bf16.msra.mxu1 %v12774_v28  ;;  %11132 = vmatprep.subr.bf16.mxu0 %v15572_v62 }
0x1511   :  { %11103 = vmatprep.subr.bf16.mxu1 %v15572_v62 }
0x1513   :  { %11133 = vmatpush3.bf16.msra.mxu0 %v12783_v63 }
0x1514   :  { %11104 = vmatpush3.bf16.msra.mxu1 %v12775_v30  ;;  %11158 = vmatprep.subr.bf16.mxu0 %v12784_v27 }
0x1515   :  { %11109 = vmatprep.subr.bf16.mxu1 %v15572_v62 }
0x15d6   :  { %v11091_v50 = vpop.f32.mrb[72].mxu1 }
0x15d7   :  { %v4080_v0 = vpop.f32.mrb[73].mxu1 }
0x15d8   :  { %v4089_v29 = vpack.c.bf16 %v11091_v50, %v4080_v0  ;;  %v11125_v10 = vpop.f32.mrb[44].mxu0 }
0x15d9   :  { %v4403_v49 = vpop.f32.mrb[45].mxu0 }
0x15da   :  { %v11096_v15 = vpop.f32.mrb[74].mxu1  ;;  %v4412_v18 = vpack.c.bf16 %v11125_v10, %v4403_v49 }
0x15db   :  { %v4173_v20 = vpop.f32.mrb[75].mxu1 }
0x15dc   :  { %v4182_v23 = vpack.c.bf16 %v11096_v15, %v4173_v20  ;;  %11135 = vmatmul.mubr.msk.bf16.vlgmr.msra.gmra.mrb[48].mxu0 %vm15669_vm14, %v4412_v18  ;;  %vm15559_vm14 = vcmask 130048   ;;  %v9362_v15 = vld [vmem:[#allocation10] ss:$0 sm:$0xff] }
0x15dd   :  { %11159 = vmatpush3.bf16.msra.mxu0 %v12784_v27 }
0x15de   :  { %11106 = vmatmul.mubr.msk.bf16.vlgmr.msra.gmra.mrb[76].mxu1 %vm15670_vm0, %v4182_v23  ;;  %vm15672_vm0 = vcmask 261120  }
0x15df   :  { %11110 = vmatpush3.bf16.msra.mxu1 %v12776_v21  ;;  %11117 = vmatprep.mubr.msk.bf16.mxu1 %vm15560_vm3, %v15572_v62 }
0x15e0   :  { %11111 = vmatprep.subr.bf16.mxu1 %v15572_v62 }
0x15e3   :  { %11112 = vmatpush3.bf16.msra.mxu1 %v12778_v24 }
0x15e4   :  { %11113 = vmatprep.subr.bf16.mxu1 %v15572_v62 }
0x15e7   :  { %11114 = vmatpush3.bf16.msra.mxu1 %v12780_v25 }
0x15e8   :  { %11115 = vmatprep.subr.bf16.mxu1 %v15572_v62 }
0x15eb   :  { %11116 = vmatpush3.bf16.msra.mxu1 %v12782_v16 }
0x15ee   :  { %11118 = vmatmul.mubr.msk.bf16.vlgmr.msra.gmra.mrb[80].mxu1 %vm15671_vm2, %v4089_v29 }
0x15ef   :  { %11142 = vmatprep.mubr.msk.f32.mxu1 %vm15559_vm14, %v4503_v26 }
0x16af   :  { %v4483_v28 = vpop.f32.mrb[48].mxu0 }
0x16b0   :  { %v11136_v30 = vpop.f32.mrb[49].mxu0 }
0x16b1   :  { %v4253_v35 = vpop.f32.mrb[76].mxu1  ;;  %v4486_v37 = vpop.f32.mrb[50].mxu0 }
0x16b2   :  { %v11107_v53 = vpop.f32.mrb[77].mxu1  ;;  %v11137_v63 = vpop.f32.mrb[51].mxu0 }
0x16b3   :  { %v4256_v50 = vpop.f32.mrb[78].mxu1  ;;  %v4504_v53 = vld [vmem:[%s15545_s16 + $0x8] sm:$0xff] }
0x16b4   :  { %v11108_v0 = vpop.f32.mrb[79].mxu1  ;;  %v9368_v63 = vld [vmem:[%s15545_s16 + $0x28] sm:$0xff] }
0x16b5   :  { %v9370_v0 = vld [vmem:[%s15545_s16 + $0x38] sm:$0xff] }
0x16c1   :  { %v4321_v29 = vpop.f32.mrb[80].mxu1 }
0x16c2   :  { %v4322_v10 = vadd.f32 %v4321_v29, %v4253_v35  ;;  %v11119_v49 = vpop.f32.mrb[81].mxu1  ;;  %v4505_v35 = vld [vmem:[%s15545_s16 + $0x10] sm:$0xff]  ;;  %v9395_v29 = vld [vmem:[%s15545_s16 + $0x40] sm:$0xff] }
0x16c3   :  { %v4324_v18 = vpop.f32.mrb[82].mxu1  ;;  %v9397_v49 = vld [vmem:[%s15545_s16 + $0x50] sm:$0xff] }
0x16c4   :  { %v4490_v20 = vadd.f32 %v4483_v28, %v4322_v10  ;;  %v4325_v21 = vadd.f32 %v4324_v18, %v4256_v50  ;;  %v11120_v23 = vpop.f32.mrb[83].mxu1  ;;  %v4506_v28 = vld [vmem:[%s15545_s16 + $0x18] sm:$0xff]  ;;  %v9369_v50 = vld [vmem:[%s15545_s16 + $0x30] sm:$0xff]  ;;  %v9396_v10 = vld [vmem:[%s15545_s16 + $0x48] sm:$0xff] }
0x16c5   :  { %v12810_v18 = vld [vmem:[%s15624_s28] sm:$0xff]  ;;  %v12787_v23 = vld [vmem:[%s15546_s17 + $0x38] sm:$0xff]  }
0x16c6   :  { %v4499_v24 = vadd.f32 %v9362_v15, %v4490_v20  ;;  %v4491_v25 = vadd.f32 %v4486_v37, %v4325_v21  ;;  %v9367_v37 = vld [vmem:[%s15545_s16 + $0x20] sm:$0xff]  ;;  %v12785_v20 = vld [vmem:[%s15546_s17 + $0x28] sm:$0xff]   ;;  %v12786_v21 = vld [vmem:[%s15546_s17 + $0x30] sm:$0xff]  }
0x16c7   :  { %11160 = vmatprep.subr.bf16.mxu0 %v12785_v20 }
0x16c8   :  { %v4500_v16 = vadd.f32 %v9362_v15, %v4491_v25  ;;  %v4501_v26 = vmax.f32 %v4499_v24, 0.0  ;;  %v9398_v15 = vld [vmem:[%s15545_s16 + $0x58] sm:$0xff]  ;;  %11161 = vmatpush3.bf16.msra.mxu0 %v12785_v20  ;;  %v12788_v24 = vld [vmem:[%s15546_s17] sm:$0xff]  }
0x16c9   :  { %11162 = vmatprep.subr.bf16.mxu0 %v12786_v21 }
0x16ca   :  { %v4502_v27 = vmax.f32 %v4500_v16, 0.0 }
0x16cc   :  { %v12200_v30 = vpack.c.bf16 %v4502_v27, %v4501_v26  ;;  %11163 = vmatpush3.bf16.msra.mxu0 %v12786_v21 }
0x16cd   :  { %11164 = vmatprep.subr.bf16.mxu0 %v12787_v23 }
0x16ce   :  { %12201 = vmatprep.subr.bf16.mxu1 %v12200_v30 }
0x16cf   :  { %12203 = vmatpush3.bf16.msra.mxu1 %v12200_v30 }
0x16d0   :  { %12205 = vmatprep.subr.bf16.mxu1 %v12200_v30  ;;  %11165 = vmatpush3.bf16.msra.mxu0 %v12787_v23  ;;  %v12791_v23 = vld [vmem:[%s15546_s17 + $0x18] sm:$0xff]  }
0x16d1   :  { %11170 = vmatprep.subr.bf16.mxu0 %v12788_v24 }
0x16d2   :  { %11143 = vmatmul.mubr.msk.f32.vlgmr.msra.gmra.mrb[84].mxu1 %vm15559_vm14, %v4504_v53 }
0x16d3   :  { %12207 = vmatpush3.bf16.msra.mxu1 %v12200_v30  ;;  %11145 = vmatprep.mubr.msk.f32.mxu1 %vm15559_vm14, %v4505_v35 }
0x16d4   :  { %12209 = vmatprep.subr.bf16.mxu1 %v12200_v30 }
0x16d6   :  { %11146 = vmatmul.mubr.msk.f32.gmra.mrb[86].mxu1 %vm15559_vm14, %v4506_v28 }
0x16d7   :  { %11152 = vmatprep.mubr.msk.f32.mxu1 %vm15559_vm14, %v9367_v37 }
0x16da   :  { %11153 = vmatmul.mubr.msk.f32.vlgmr.msra.gmra.mrb[88].mxu1 %vm15559_vm14, %v9368_v63 }
0x16db   :  { %12211 = vmatpush3.bf16.msra.mxu1 %v12200_v30  ;;  %11155 = vmatprep.mubr.msk.f32.mxu1 %vm15559_vm14, %v9369_v50 }
0x16de   :  { %11156 = vmatmul.mubr.msk.f32.gmra.mrb[90].mxu1 %vm15559_vm14, %v9370_v0 }
0x16df   :  { %11186 = vmatprep.mubr.msk.f32.mxu1 %vm15559_vm14, %v9395_v29  ;;  %v12789_v29 = vld [vmem:[%s15546_s17 + $0x8] sm:$0xff]  }
0x16e2   :  { %11187 = vmatmul.mubr.msk.f32.vlgmr.msra.gmra.mrb[92].mxu1 %vm15559_vm14, %v9396_v10 }
0x16e3   :  { %11189 = vmatprep.mubr.msk.f32.mxu1 %vm15559_vm14, %v9397_v49 }
0x16e6   :  { %11190 = vmatmul.mubr.msk.f32.gmra.mrb[94].mxu1 %vm15559_vm14, %v9398_v15  ;;  %v12790_v15 = vld [vmem:[%s15546_s17 + $0x10] sm:$0xff]  }
0x16e7   :  { %11212 = vmatprep.mubr.msk.f32.mxu1 %vm15672_vm0, %v12810_v18  ;;  %vm15673_vm0 = vmmov %vm15671_vm2 }
0x16e8   :  { %vm15674_vm1 = vmmov %vm15673_vm0 }
0x17a5   :  { %v11144_v25 = vpop.f32.mrb[84].mxu1 }
0x17a6   :  { %v4586_v16 = vpop.f32.mrb[85].mxu1 }
0x17a7   :  { %v4605_v26 = vpack.c.bf16 %v11144_v25, %v4586_v16  ;;  %v12793_v16 = vld [vmem:[%s15546_s17 + $0x48] sm:$0xff]  }
0x17a9   :  { %v11147_v27 = vpop.f32.mrb[86].mxu1 }
0x17aa   :  { %v4596_v30 = vpop.f32.mrb[87].mxu1 }
0x17ab   :  { %v4606_v53 = vpack.c.bf16 %v11147_v27, %v4596_v30  ;;  %v12795_v27 = vld [vmem:[%s15546_s17 + $0x58] sm:$0xff]  }
0x17ac   :  { %v12811_v30 = vld [vmem:[#allocation2 + $0x18] sm:$0xff]  }
0x17ad   :  { %v11154_v35 = vpop.f32.mrb[88].mxu1 }
0x17ae   :  { %v4698_v28 = vpop.f32.mrb[89].mxu1 }
0x17af   :  { %v4717_v37 = vpack.c.bf16 %v11154_v35, %v4698_v28  ;;  %v12813_v35 = vld [vmem:[#allocation2 + $0x28] sm:$0xff]  }
0x17b1   :  { %v11157_v63 = vpop.f32.mrb[90].mxu1  ;;  %11166 = vmatprep.mubr.msk.bf16.mxu0 %vm15671_vm2, %v4717_v37  ;;  %vm15676_vm2 = vmmov %vm15673_vm0  ;;  %v9417_v37 = vld [vmem:[#allocation11] ss:$0 sm:$0xff] }
0x17b2   :  { %v4708_v50 = vpop.f32.mrb[91].mxu1 }
0x17b3   :  { %v4718_v0 = vpack.c.bf16 %v11157_v63, %v4708_v50 }
0x17b5   :  { %11167 = vmatmul.mubr.msk.bf16.vlgmr.msra.gmra.mrb[52].mxu0 %vm15673_vm0, %v4718_v0  ;;  %v11188_v10 = vpop.f32.mrb[92].mxu1 }
0x17b6   :  { %11171 = vmatpush3.bf16.msra.mxu0 %v12788_v24  ;;  %11178 = vmatprep.mubr.msk.bf16.mxu0 %vm15674_vm1, %v4605_v26  ;;  %v4969_v49 = vpop.f32.mrb[93].mxu1  ;;  %v12792_v24 = vld [vmem:[%s15546_s17 + $0x40] sm:$0xff]   ;;  %vm15675_vm1 = vmmov %vm15673_vm0  ;;  %v12794_v26 = vld [vmem:[%s15546_s17 + $0x50] sm:$0xff]  }
0x17b7   :  { %11172 = vmatprep.subr.bf16.mxu0 %v12789_v29  ;;  %v4988_v18 = vpack.c.bf16 %v11188_v10, %v4969_v49 }
0x17b9   :  { %v11191_v20 = vpop.f32.mrb[94].mxu1 }
0x17ba   :  { %11173 = vmatpush3.bf16.msra.mxu0 %v12789_v29  ;;  %v4979_v21 = vpop.f32.mrb[95].mxu1 }
0x17bb   :  { %11174 = vmatprep.subr.bf16.mxu0 %v12790_v15  ;;  %v4989_v25 = vpack.c.bf16 %v11191_v20, %v4979_v21  ;;  %v12814_v21 = vld [vmem:[%s15624_s28 + $0x8] sm:$0xff] }
0x17be   :  { %11175 = vmatpush3.bf16.msra.mxu0 %v12790_v15 }
0x17bf   :  { %11176 = vmatprep.subr.bf16.mxu0 %v12791_v23 }
0x17c2   :  { %11177 = vmatpush3.bf16.msra.mxu0 %v12791_v23  ;;  %v12815_v23 = vld [vmem:[%s15624_s28 + $0x10] sm:$0xff] }
0x17c3   :  { %11192 = vmatprep.subr.bf16.mxu0 %v12792_v24 }
0x17c5   :  { %11179 = vmatmul.mubr.msk.bf16.vlgmr.msra.gmra.mrb[52].mxu0 %vm15675_vm1, %v4606_v53  ;;  %v12812_v53 = vld [vmem:[#allocation2 + $0x20] sm:$0xff]   ;;  %vm15677_vm1 = vcmask 261120  }
0x17c6   :  { %11193 = vmatpush3.bf16.msra.mxu0 %v12792_v24  ;;  %11200 = vmatprep.mubr.msk.bf16.mxu0 %vm15676_vm2, %v4988_v18  ;;  %vm15678_vm2 = vmmov %vm15677_vm1  ;;  %v12817_v24 = vld [vmem:[%s15624_s28 + $0x40] sm:$0xff] }
0x17c7   :  { %11194 = vmatprep.subr.bf16.mxu0 %v12793_v16 }
0x17ca   :  { %11195 = vmatpush3.bf16.msra.mxu0 %v12793_v16  ;;  %v12818_v16 = vld [vmem:[#allocation2] sm:$0xff]  }
0x17cb   :  { %11196 = vmatprep.subr.bf16.mxu0 %v12794_v26 }
0x17ce   :  { %11197 = vmatpush3.bf16.msra.mxu0 %v12794_v26  ;;  %v12819_v26 = vld [vmem:[%s15624_s28 + $0x48] sm:$0xff] }
0x17cf   :  { %11198 = vmatprep.subr.bf16.mxu0 %v12795_v27 }
0x17d2   :  { %11199 = vmatpush3.bf16.msra.mxu0 %v12795_v27  ;;  %v12820_v27 = vld [vmem:[%s15624_s28 + $0x50] sm:$0xff] }
0x17d3   :  { %11232 = vmatprep.subr.bf16.mxu0 %v12811_v30 }
0x17d5   :  { %11201 = vmatmul.mubr.msk.bf16.vlgmr.msra.gmra.mrb[52].mxu0 %vm15673_vm0, %v4989_v25  ;;  %v12816_v25 = vld [vmem:[%s15624_s28 + $0x18] sm:$0xff]  ;;  %vm15679_vm0 = vmmov %vm15677_vm1 }
0x17d6   :  { %11233 = vmatpush3.bf16.msra.mxu0 %v12811_v30  ;;  %v12821_v30 = vld [vmem:[#allocation2 + $0x8] sm:$0xff]  }
0x17d7   :  { %11234 = vmatprep.subr.bf16.mxu0 %v12812_v53 }
0x17da   :  { %11235 = vmatpush3.bf16.msra.mxu0 %v12812_v53  ;;  %v12822_v53 = vld [vmem:[%s15624_s28 + $0x58] sm:$0xff] }
0x17db   :  { %11236 = vmatprep.subr.bf16.mxu0 %v12813_v35 }
0x17de   :  { %11237 = vmatpush3.bf16.msra.mxu0 %v12813_v35  ;;  %v12823_v35 = vld [vmem:[#allocation2 + $0x10] sm:$0xff]  }
0x18a8   :  { %v11202_v28 = vpop.f32.mrb[52].mxu0 }
0x18a9   :  { %v5063_v63 = vpop.f32.mrb[53].mxu0  ;;  %v5091_v0 = vadd.f32 %v11202_v28, %v9417_v37  ;;  %v12824_v28 = vld [vmem:[#allocation2 + $0x30] sm:$0xff]  }
0x18aa   :  { %v11203_v50 = vpop.f32.mrb[54].mxu0  ;;  %v5089_v49 = vadd.f32 %v9417_v37, %v5063_v63 }
0x18ab   :  { %v5092_v29 = vadd.f32 %v11203_v50, %v9417_v37  ;;  %v5066_v10 = vpop.f32.mrb[55].mxu0 }
0x18ac   :  { %v5090_v15 = vadd.f32 %v9417_v37, %v5066_v10 }
0x18ad   :  { %v14321_v18 = vpack.c.bf16 %v5092_v29, %v5091_v0 }
0x18ae   :  { %v12212_v20 = vpack.c.bf16 %v5090_v15, %v5089_v49 }
0x18b0   :  { %12213 = vmatprep.subr.bf16.mxu1 %v12212_v20  ;;  %12229 = vmatprep.subr.bf16.mxu0 %v12212_v20 }
0x18b1   :  { %12215 = vmatpush3.bf16.msra.mxu1 %v12212_v20 }
0x18b2   :  { %12217 = vmatprep.subr.bf16.mxu1 %v14321_v18 }
0x18b5   :  { %12219 = vmatpush3.bf16.msra.mxu1 %v14321_v18 }
0x18b6   :  { %12221 = vmatprep.subr.bf16.mxu1 %v12212_v20 }
0x18b8   :  { %11213 = vmatmul.mubr.msk.f32.vlgmr.msra.gmra.mrb[96].mxu1 %vm15677_vm1, %v12814_v21  ;;  %vm15680_vm1 = vmmov %vm15679_vm0 }
0x18b9   :  { %12223 = vmatpush3.bf16.msra.mxu1 %v12212_v20  ;;  %11215 = vmatprep.mubr.msk.f32.mxu1 %vm15678_vm2, %v12815_v23  ;;  %vm15681_vm2 = vmmov %vm15679_vm0  ;;  %v12825_v23 = vld [vmem:[#allocation2 + $0x38] sm:$0xff]  }
0x18ba   :  { %12225 = vmatprep.subr.bf16.mxu1 %v14321_v18 }
0x18bc   :  { %11216 = vmatmul.mubr.msk.f32.gmra.mrb[98].mxu1 %vm15679_vm0, %v12816_v25 }
0x18bd   :  { %12227 = vmatpush3.bf16.msra.mxu1 %v14321_v18  ;;  %11226 = vmatprep.mubr.msk.f32.mxu1 %vm15680_vm1, %v12817_v24  ;;  %vm15682_vm1 = vmmov %vm15679_vm0 }
0x18be   :  { %11242 = vmatprep.subr.bf16.mxu1 %v12818_v16 }
0x18c0   :  { %11227 = vmatmul.mubr.msk.f32.vlgmr.msra.gmra.mrb[100].mxu1 %vm15681_vm2, %v12819_v26  ;;  %vm15683_vm2 = vcmask 392192   ;;  %v12826_v26 = vld [vmem:[#allocation2 + $0x40] sm:$0xff]  }
0x18c1   :  { %11229 = vmatprep.mubr.msk.f32.mxu1 %vm15679_vm0, %v12820_v27  ;;  %11243 = vmatpush3.bf16.msra.mxu1 %v12818_v16  ;;  %vm15684_vm0 = vmmov %vm15683_vm2  ;;  %v12827_v27 = vld [vmem:[%s15624_s28 + $0x80] sm:$0xff] }
0x18c2   :  { %11244 = vmatprep.subr.bf16.mxu1 %v12821_v30  ;;  %vm15686_vm13 = vmmov %vm15684_vm0 }
0x18c4   :  { %11230 = vmatmul.mubr.msk.f32.gmra.mrb[102].mxu1 %vm15682_vm1, %v12822_v53  ;;  %vm15685_vm1 = vmmov %vm15684_vm0  ;;  %v12830_v53 = vld [vmem:[%s15624_s28 + $0x98] sm:$0xff] }
0x18c5   :  { %11245 = vmatpush3.bf16.msra.mxu1 %v12821_v30  ;;  %v12828_v30 = vld [vmem:[%s15624_s28 + $0x88] sm:$0xff] }
0x18c6   :  { %11246 = vmatprep.subr.bf16.mxu1 %v12823_v35 }
0x18c9   :  { %11247 = vmatpush3.bf16.msra.mxu1 %v12823_v35 }
0x18ca   :  { %11266 = vmatprep.subr.bf16.mxu1 %v12824_v28 }
0x198b   :  { %v11214_v37 = vpop.f32.mrb[96].mxu1 }
0x198c   :  { %v5167_v63 = vpop.f32.mrb[97].mxu1 }
0x198d   :  { %v5186_v50 = vpack.c.bf16 %v11214_v37, %v5167_v63 }
0x198f   :  { %v11217_v0 = vpop.f32.mrb[98].mxu1  ;;  %11248 = vmatprep.mubr.msk.bf16.mxu1 %vm15683_vm2, %v5186_v50  ;;  %vm15687_vm2 = vcmask 261120  }
0x1990   :  { %v5177_v29 = vpop.f32.mrb[99].mxu1 }
0x1991   :  { %v5187_v10 = vpack.c.bf16 %v11217_v0, %v5177_v29 }
0x1993   :  { %v11228_v49 = vpop.f32.mrb[100].mxu1  ;;  %11249 = vmatmul.mubr.msk.bf16.vlgmr.msra.gmra.mrb[104].mxu1 %vm15684_vm0, %v5187_v10  ;;  %vm15688_vm0 = vmmov %vm15687_vm2 }
0x1994   :  { %v5262_v15 = vpop.f32.mrb[101].mxu1  ;;  %11267 = vmatpush3.bf16.msra.mxu1 %v12824_v28 }
0x1995   :  { %v5281_v21 = vpack.c.bf16 %v11228_v49, %v5262_v15  ;;  %11268 = vmatprep.subr.bf16.mxu1 %v12825_v23 }
0x1997   :  { %v11231_v25 = vpop.f32.mrb[102].mxu1  ;;  %11238 = vmatprep.mubr.msk.bf16.mxu0 %vm15685_vm1, %v5281_v21  ;;  %vm15690_vm1 = vmmov %vm15688_vm0  ;;  %v12832_v21 = vld [vmem:[%s15534_s5 + $0x40] sm:$0xff]  }
0x1998   :  { %v5272_v24 = vpop.f32.mrb[103].mxu1  ;;  %11269 = vmatpush3.bf16.msra.mxu1 %v12825_v23  ;;  %v12833_v23 = vld [vmem:[%s15534_s5 + $0x48] sm:$0xff]  }
0x1999   :  { %v5282_v16 = vpack.c.bf16 %v11231_v25, %v5272_v24  ;;  %11270 = vmatprep.subr.bf16.mxu1 %v12826_v26  ;;  %v12834_v25 = vld [vmem:[%s15534_s5 + $0x50] sm:$0xff]   ;;  %v12835_v24 = vld [vmem:[%s15534_s5 + $0x58] sm:$0xff]  }
0x199b   :  { %11239 = vmatmul.mubr.msk.bf16.vlgmr.msra.gmra.mrb[56].mxu0 %vm15686_vm13, %v5282_v16  ;;  %vm15689_vm13 = vmmov %vm15688_vm0  ;;  %v12836_v16 = vld [vmem:[%s15534_s5 + $0x60] sm:$0xff]  }
0x199c   :  { %12231 = vmatpush3.bf16.msra.mxu0 %v12212_v20  ;;  %11260 = vmatprep.mubr.msk.f32.mxu0 %vm15687_vm2, %v12827_v27  ;;  %v12829_v20 = vld [vmem:[%s15624_s28 + $0x90] sm:$0xff]  ;;  %vm15691_vm2 = vmmov %vm15688_vm0 }
0x199d   :  { %12233 = vmatprep.subr.bf16.mxu0 %v14321_v18  ;;  %11271 = vmatpush3.bf16.msra.mxu1 %v12826_v26  ;;  %v12837_v26 = vld [vmem:[%s15534_s5 + $0x68] sm:$0xff]   ;;  %v12838_v27 = vld [vmem:[%s15534_s5 + $0x70] sm:$0xff]  }
0x199e   :  { %11298 = vmatprep.subr.bf16.mxu1 %v15572_v62 }
0x19a0   :  { %12235 = vmatpush3.bf16.msra.mxu0 %v14321_v18  ;;  %v12831_v18 = vld [vmem:[%s15533_s4] sm:$0xff] }
0x19a3   :  { %11261 = vmatmul.mubr.msk.f32.vlgmr.msra.gmra.mrb[46].mxu0 %vm15688_vm0, %v12828_v30  ;;  %vm15692_vm0 = vcmask 392192   ;;  %v12839_v30 = vld [vmem:[%s15534_s5 + $0x78] sm:$0xff]  }
0x19a4   :  { %11263 = vmatprep.mubr.msk.f32.mxu0 %vm15689_vm13, %v12829_v20  ;;  %vm15693_vm13 = vmmov %vm15692_vm0 }
0x19a7   :  { %11264 = vmatmul.mubr.msk.f32.gmra.mrb[60].mxu0 %vm15690_vm1, %v12830_v53 }
0x19a8   :  { %11284 = vmatprep.mubr.msk.f32.mxu0 %vm15691_vm2, %v12831_v18  ;;  %vm15694_vm2 = vmmov %vm15690_vm1 }
0x1a6e   :  { %v11240_v35 = vpop.f32.mrb[56].mxu0 }
0x1a6f   :  { %v5323_v28 = vpop.f32.mrb[57].mxu0 }
0x1a70   :  { %v11241_v37 = vpop.f32.mrb[58].mxu0 }
0x1a71   :  { %v5326_v63 = vpop.f32.mrb[59].mxu0 }
0x1a76   :  { %v11262_v50 = vpop.f32.mrb[46].mxu0 }
0x1a77   :  { %v5467_v0 = vpop.f32.mrb[47].mxu0 }
0x1a78   :  { %v5486_v29 = vpack.c.bf16 %v11262_v50, %v5467_v0 }
0x1a7a   :  { %v11265_v10 = vpop.f32.mrb[60].mxu0  ;;  %11272 = vmatprep.mubr.msk.bf16.mxu1 %vm15692_vm0, %v5486_v29  ;;  %vm15695_vm0 = vmmov %vm15690_vm1 }
0x1a7b   :  { %v5477_v49 = vpop.f32.mrb[61].mxu0 }
0x1a7c   :  { %v5487_v15 = vpack.c.bf16 %v11265_v10, %v5477_v49  ;;  %v12840_v49 = vld [vmem:[%s15625_s25] ss:$0 sm:$0xff] }
0x1a7e   :  { %11273 = vmatmul.mubr.msk.bf16.vlgmr.msra.gmra.mrb[104].mxu1 %vm15693_vm13, %v5487_v15  ;;  %vm15696_vm13 = vmmov %vm15695_vm0 }
0x1a7f   :  { %11299 = vmatpush3.bf16.msra.mxu1 %v12832_v21  ;;  %11314 = vmatprep.mubr.msk.bf16.mxu1 %vm15560_vm3, %v15572_v62 }
0x1a80   :  { %11300 = vmatprep.subr.bf16.mxu1 %v15572_v62 }
0x1a83   :  { %11301 = vmatpush3.bf16.msra.mxu1 %v12833_v23 }
0x1a84   :  { %11302 = vmatprep.subr.bf16.mxu1 %v15572_v62 }
0x1a87   :  { %11303 = vmatpush3.bf16.msra.mxu1 %v12834_v25 }
0x1a88   :  { %11304 = vmatprep.subr.bf16.mxu1 %v15572_v62 }
0x1a8b   :  { %11305 = vmatpush3.bf16.msra.mxu1 %v12835_v24 }
0x1a8c   :  { %11306 = vmatprep.subr.bf16.mxu1 %v15572_v62 }
0x1a8f   :  { %11307 = vmatpush3.bf16.msra.mxu1 %v12836_v16 }
0x1a90   :  { %11308 = vmatprep.subr.bf16.mxu1 %v15572_v62 }
0x1a93   :  { %11309 = vmatpush3.bf16.msra.mxu1 %v12837_v26 }
0x1a94   :  { %11310 = vmatprep.subr.bf16.mxu1 %v15572_v62 }
0x1a97   :  { %11311 = vmatpush3.bf16.msra.mxu1 %v12838_v27 }
0x1a98   :  { %11312 = vmatprep.subr.bf16.mxu1 %v15572_v62 }
0x1a9b   :  { %11313 = vmatpush3.bf16.msra.mxu1 %v12839_v30  ;;  %v12842_v30 = vld [vmem:[%s15533_s4 + $0x20] sm:$0xff] }
0x1b51   :  { %v11274_v20 = vpop.f32.mrb[104].mxu1 }
0x1b52   :  { %v12621_v53 = vadd.f32 %v11274_v20, %v11240_v35  ;;  %v5528_v18 = vpop.f32.mrb[105].mxu1  ;;  %v12843_v20 = vld [vmem:[%s15533_s4 + $0x28] sm:$0xff] }
0x1b53   :  { %v12622_v50 = vadd.f32 %v5528_v18, %v5323_v28  ;;  %v11275_v0 = vpop.f32.mrb[106].mxu1  ;;  %v12845_v18 = vld [vmem:[%s15534_s5 + $0x8] sm:$0xff]  }
0x1b54   :  { %v12623_v29 = vadd.f32 %v11275_v0, %v11241_v37  ;;  %v5531_v10 = vpop.f32.mrb[107].mxu1  ;;  %v5549_v25 = vadd.f32 %v12840_v49, %v12621_v53  ;;  %v12844_v53 = vld [vmem:[%s15534_s5] sm:$0xff]   ;;  %v12847_v0 = vld [vmem:[%s15534_s5 + $0x18] sm:$0xff]  }
0x1b55   :  { %v5547_v15 = vadd.f32 %v12840_v49, %v12622_v50  ;;  %v12624_v21 = vadd.f32 %v5531_v10, %v5326_v63  ;;  %v12841_v63 = vld [vmem:[%s15533_s4 + $0x8] sm:$0xff]  ;;  %v12846_v50 = vld [vmem:[%s15534_s5 + $0x10] sm:$0xff]  }
0x1b56   :  { %v5550_v23 = vadd.f32 %v12840_v49, %v12623_v29  ;;  %v14426_v35 = vmax.f32 %v5549_v25, 0.0  ;;  %v12848_v29 = vld [vmem:[%s15534_s5 + $0x20] sm:$0xff]   ;;  %v12849_v10 = vld [vmem:[%s15534_s5 + $0x28] sm:$0xff]  }
0x1b57   :  { %v5548_v24 = vadd.f32 %v12840_v49, %v12624_v21  ;;  %v14420_v16 = vmax.f32 %v5547_v15, 0.0  ;;  %v12850_v49 = vld [vmem:[%s15534_s5 + $0x30] sm:$0xff]   ;;  %v12851_v15 = vld [vmem:[%s15534_s5 + $0x38] sm:$0xff]  }
0x1b58   :  { %v14422_v26 = vmax.f32 %v5550_v23, 0.0 }
0x1b59   :  { %v14424_v27 = vmax.f32 %v5548_v24, 0.0  ;;  %v12852_v24 = vld [vmem:[%s15534_s5 + $0x80] sm:$0xff]  }
0x1b5a   :  { %v14432_v37 = vpack.c.bf16 %v14422_v26, %v14426_v35 }
0x1b5b   :  { %v12236_v28 = vpack.c.bf16 %v14424_v27, %v14420_v16 }
0x1b5d   :  { %12237 = vmatprep.subr.bf16.mxu0 %v12236_v28  ;;  %12253 = vmatprep.subr.bf16.mxu1 %v12236_v28 }
0x1b5e   :  { %12239 = vmatpush3.bf16.msra.mxu0 %v12236_v28 }
0x1b5f   :  { %12241 = vmatprep.subr.bf16.mxu0 %v14432_v37 }
0x1b62   :  { %12243 = vmatpush3.bf16.msra.mxu0 %v14432_v37 }
0x1b63   :  { %12245 = vmatprep.subr.bf16.mxu0 %v12236_v28 }
0x1b65   :  { %11285 = vmatmul.mubr.msk.f32.vlgmr.msra.gmra.mrb[62].mxu0 %vm15690_vm1, %v12841_v63  ;;  %vm15697_vm1 = vmmov %vm15695_vm0 }
0x1b66   :  { %12247 = vmatpush3.bf16.msra.mxu0 %v12236_v28  ;;  %11295 = vmatprep.mubr.msk.f32.mxu0 %vm15694_vm2, %v12842_v30 }
0x1b67   :  { %12249 = vmatprep.subr.bf16.mxu0 %v14432_v37 }
0x1b6a   :  { %12251 = vmatpush3.bf16.msra.mxu0 %v14432_v37 }
0x1b6b   :  { %11318 = vmatprep.subr.bf16.mxu0 %v15572_v62 }
0x1b6d   :  { %11296 = vmatmul.mubr.msk.f32.vlgmr.msra.gmra.mrb[64].mxu0 %vm15695_vm0, %v12843_v20  ;;  %v12853_v20 = vld [vmem:[%s15534_s5 + $0x88] sm:$0xff]  }
0x1b6e   :  { %11319 = vmatpush3.bf16.msra.mxu0 %v12844_v53  ;;  %11334 = vmatprep.mubr.msk.bf16.mxu0 %vm15560_vm3, %v15572_v62 }
0x1b6f   :  { %11320 = vmatprep.subr.bf16.mxu0 %v15572_v62 }
0x1b72   :  { %11321 = vmatpush3.bf16.msra.mxu0 %v12845_v18  ;;  %v12854_v18 = vld [vmem:[%s15533_s4 + $0x40] sm:$0xff] }
0x1b73   :  { %11322 = vmatprep.subr.bf16.mxu0 %v15572_v62 }
0x1b76   :  { %11323 = vmatpush3.bf16.msra.mxu0 %v12846_v50  ;;  %v12855_v50 = vld [vmem:[%s15534_s5 + $0x90] sm:$0xff]  }
0x1b77   :  { %11324 = vmatprep.subr.bf16.mxu0 %v15572_v62 }
0x1b7a   :  { %11325 = vmatpush3.bf16.msra.mxu0 %v12847_v0  ;;  %v12857_v0 = vld [vmem:[%s15533_s4 + $0x48] sm:$0xff] }
0x1b7b   :  { %11326 = vmatprep.subr.bf16.mxu0 %v15572_v62 }
0x1b7e   :  { %11327 = vmatpush3.bf16.msra.mxu0 %v12848_v29  ;;  %v12859_v29 = vld [vmem:[%s15534_s5 + $0xa8] sm:$0xff]  }
0x1b7f   :  { %11328 = vmatprep.subr.bf16.mxu0 %v15572_v62 }
0x1b82   :  { %11329 = vmatpush3.bf16.msra.mxu0 %v12849_v10  ;;  %v12860_v10 = vld [vmem:[%s15534_s5 + $0xb0] sm:$0xff]  }
0x1b83   :  { %11330 = vmatprep.subr.bf16.mxu0 %v15572_v62 }
0x1b86   :  { %11331 = vmatpush3.bf16.msra.mxu0 %v12850_v49  ;;  %v12861_v49 = vld [vmem:[%s15534_s5 + $0xb8] sm:$0xff]  }
0x1b87   :  { %11332 = vmatprep.subr.bf16.mxu0 %v15572_v62 }
0x1b8a   :  { %11333 = vmatpush3.bf16.msra.mxu0 %v12851_v15 }
0x1b8b   :  { %11349 = vmatprep.subr.bf16.mxu0 %v15572_v62 }
0x1c38   :  { %v11286_v21 = vpop.f32.mrb[62].mxu0 }
0x1c39   :  { %v5625_v23 = vpop.f32.mrb[63].mxu0 }
0x1c3a   :  { %v5634_v25 = vpack.c.bf16 %v11286_v21, %v5625_v23 }
0x1c3c   :  { %11335 = vmatmul.mubr.bf16.vlgmr.msra.gmra.mrb[68].mxu0 %v5634_v25 }
0x1c3d   :  { %11350 = vmatpush3.bf16.msra.mxu0 %v12852_v24  ;;  %11365 = vmatprep.mubr.msk.bf16.mxu0 %vm15560_vm3, %v15572_v62 }
0x1c3e   :  { %11351 = vmatprep.subr.bf16.mxu0 %v15572_v62 }
0x1c40   :  { %v11297_v63 = vpop.f32.mrb[64].mxu0 }
0x1c41   :  { %v5705_v30 = vpop.f32.mrb[65].mxu0  ;;  %11352 = vmatpush3.bf16.msra.mxu0 %v12853_v20 }
0x1c42   :  { %v5714_v53 = vpack.c.bf16 %v11297_v63, %v5705_v30  ;;  %11353 = vmatprep.subr.bf16.mxu0 %v15572_v62 }
0x1c44   :  { %11315 = vmatmul.mubr.bf16.vlgmr.msra.gmra.mrb[108].mxu1 %v5714_v53 }
0x1c45   :  { %12255 = vmatpush3.bf16.msra.mxu1 %v12236_v28  ;;  %11346 = vmatprep.mubr.msk.f32.mxu1 %vm15696_vm13, %v12854_v18  ;;  %v12856_v28 = vld [vmem:[%s15534_s5 + $0x98] sm:$0xff]  }
0x1c46   :  { %12257 = vmatprep.subr.bf16.mxu1 %v14432_v37  ;;  %11354 = vmatpush3.bf16.msra.mxu0 %v12855_v50 }
0x1c47   :  { %11355 = vmatprep.subr.bf16.mxu0 %v15572_v62 }
0x1c49   :  { %12259 = vmatpush3.bf16.msra.mxu1 %v14432_v37  ;;  %v12858_v37 = vld [vmem:[%s15534_s5 + $0xa0] sm:$0xff]  }
0x1c4a   :  { %11356 = vmatpush3.bf16.msra.mxu0 %v12856_v28  ;;  %12260 = vmatprep.subr.bf16.mxu1 %v15581_v36 }
0x1c4b   :  { %11357 = vmatprep.subr.bf16.mxu0 %v15572_v62 }
0x1c4c   :  { %11347 = vmatmul.mubr.msk.f32.vlgmr.msra.gmra.mrb[112].mxu1 %vm15697_vm1, %v12857_v0 }
0x1c4d   :  { %11373 = vmatprep.mubr.msk.f32.mxu1 %vm15560_vm3, %v15572_v62 }
0x1c4e   :  { %11358 = vmatpush3.bf16.msra.mxu0 %v12858_v37  ;;  %v12862_v37 = vld [vmem:[%s15537_s8] sm:$0xff]  }
0x1c4f   :  { %11359 = vmatprep.subr.bf16.mxu0 %v15572_v62 }
0x1c52   :  { %11360 = vmatpush3.bf16.msra.mxu0 %v12859_v29  ;;  %v12863_v29 = vld [vmem:[%s15537_s8 + $0x8] sm:$0xff]  }
0x1c53   :  { %11361 = vmatprep.subr.bf16.mxu0 %v15572_v62 }
0x1c56   :  { %11362 = vmatpush3.bf16.msra.mxu0 %v12860_v10  ;;  %v12864_v10 = vld [vmem:[%s15537_s8 + $0x10] sm:$0xff]  }
0x1c57   :  { %11363 = vmatprep.subr.bf16.mxu0 %v15572_v62 }
0x1c5a   :  { %11364 = vmatpush3.bf16.msra.mxu0 %v12861_v49  ;;  %v12865_v49 = vld [vmem:[%s15537_s8 + $0x18] sm:$0xff]  }
0x1c5b   :  { %11403 = vmatprep.subr.bf16.mxu0 %v15572_v62 }
0x1d0f   :  { %v5790_v15 = vpop.f32.mrb[68].mxu0 }
0x1d10   :  { %v11336_v21 = vpop.f32.mrb[69].mxu0 }
0x1d11   :  { %v5793_v23 = vpop.f32.mrb[70].mxu0  ;;  %v12867_v21 = vld [vmem:[%s15537_s8 + $0x28] sm:$0xff]  }
0x1d12   :  { %v11337_v25 = vpop.f32.mrb[71].mxu0 }
0x1d13   :  { %v12869_v25 = vld [vmem:[%s15537_s8 + $0x38] sm:$0xff]  }
0x1d17   :  { %v5749_v24 = vpop.f32.mrb[108].mxu1 }
0x1d18   :  { %v5791_v63 = vadd.f32 %v5790_v15, %v5749_v24  ;;  %v11316_v30 = vpop.f32.mrb[109].mxu1  ;;  %v12866_v15 = vld [vmem:[%s15537_s8 + $0x20] sm:$0xff]  }
0x1d19   :  { %v5752_v20 = vpop.f32.mrb[110].mxu1 }
0x1d1a   :  { %v5794_v53 = vadd.f32 %v5793_v23, %v5752_v20  ;;  %v11317_v18 = vpop.f32.mrb[111].mxu1  ;;  %v12868_v23 = vld [vmem:[%s15537_s8 + $0x30] sm:$0xff]  }
0x1d1f   :  { %v11348_v50 = vpop.f32.mrb[112].mxu1 }
0x1d20   :  { %v5867_v28 = vpop.f32.mrb[113].mxu1 }
0x1d21   :  { %v5876_v0 = vpack.c.bf16 %v11348_v50, %v5867_v28  ;;  %v12870_v50 = vld [vmem:[#allocation5] ss:$0 sm:$0xff] }
0x1d23   :  { %11366 = vmatmul.mubr.bf16.vlgmr.msra.gmra.mrb[72].mxu0 %v5876_v0 }
0x1d24   :  { %11404 = vmatpush3.bf16.msra.mxu0 %v12862_v37  ;;  %11419 = vmatprep.mubr.msk.bf16.mxu0 %vm15560_vm3, %v15572_v62 }
0x1d25   :  { %11405 = vmatprep.subr.bf16.mxu0 %v15572_v62 }
0x1d28   :  { %11406 = vmatpush3.bf16.msra.mxu0 %v12863_v29 }
0x1d29   :  { %11407 = vmatprep.subr.bf16.mxu0 %v15572_v62 }
0x1d2c   :  { %11408 = vmatpush3.bf16.msra.mxu0 %v12864_v10 }
0x1d2d   :  { %11409 = vmatprep.subr.bf16.mxu0 %v15572_v62 }
0x1d30   :  { %11410 = vmatpush3.bf16.msra.mxu0 %v12865_v49 }
0x1d31   :  { %11411 = vmatprep.subr.bf16.mxu0 %v15572_v62 }
0x1d34   :  { %11412 = vmatpush3.bf16.msra.mxu0 %v12866_v15 }
0x1d35   :  { %11413 = vmatprep.subr.bf16.mxu0 %v15572_v62 }
0x1d38   :  { %11414 = vmatpush3.bf16.msra.mxu0 %v12867_v21  ;;  %v12873_v21 = vld [vmem:[%s15537_s8 + $0x40] sm:$0xff]  }
0x1d39   :  { %11415 = vmatprep.subr.bf16.mxu0 %v15572_v62 }
0x1d3c   :  { %11416 = vmatpush3.bf16.msra.mxu0 %v12868_v23  ;;  %v12874_v23 = vld [vmem:[%s15537_s8 + $0x48] sm:$0xff]  }
0x1d3d   :  { %11417 = vmatprep.subr.bf16.mxu0 %v15572_v62 }
0x1d40   :  { %11418 = vmatpush3.bf16.msra.mxu0 %v12869_v25  ;;  %v12875_v25 = vld [vmem:[%s15537_s8 + $0x50] sm:$0xff]  }
0x1df6   :  { %v5911_v24 = vpop.f32.mrb[72].mxu0 }
0x1df7   :  { %v5918_v30 = vadd.f32 %v5911_v24, %v5791_v63  ;;  %v11367_v20 = vpop.f32.mrb[73].mxu0  ;;  %v12871_v63 = vld [vmem:[%s15536_s7] sm:$0xff]  ;;  %v12876_v24 = vld [vmem:[%s15537_s8 + $0x58] sm:$0xff]  }
0x1df8   :  { %v5914_v18 = vpop.f32.mrb[74].mxu0  ;;  %v12878_v20 = vld [vmem:[%s15537_s8 + $0x68] sm:$0xff]  }
0x1df9   :  { %v5920_v28 = vadd.f32 %v12870_v50, %v5918_v30  ;;  %v5919_v0 = vadd.f32 %v5914_v18, %v5794_v53  ;;  %v11368_v37 = vpop.f32.mrb[75].mxu0  ;;  %v12872_v53 = vld [vmem:[%s15536_s7 + $0x10] sm:$0xff]  ;;  %v12877_v30 = vld [vmem:[%s15537_s8 + $0x60] sm:$0xff]  }
0x1dfa   :  { %v12879_v18 = vld [vmem:[%s15537_s8 + $0x70] sm:$0xff]  }
0x1dfb   :  { %v5921_v29 = vadd.f32 %v12870_v50, %v5919_v0  ;;  %v14565_v10 = vmax.f32 %v5920_v28, 0.0  ;;  %v12880_v50 = vld [vmem:[%s15537_s8 + $0x78] sm:$0xff]   ;;  %v6280_v28 = vand.u32 7, %v13635_v32  ;;  %v6281_v0 = vand.u32 7, %v13638_v33 }
0x1dfd   :  { %v14567_v49 = vmax.f32 %v5921_v29, 0.0  ;;  %vm6296_vm2 = vcmp.eq.s32.totalorder %v6280_v28, %v13640_v34  ;;  %vm6297_vm0 = vcmp.eq.s32.totalorder %v6281_v0, %v13640_v34  ;;  %v6282_v29 = vand.u32 7, %v13646_v38 }
0x1dfe   :  { %vm14625_vm13 = vmpackc.low %vm6297_vm0, %vm6296_vm2 }
0x1dff   :  { %v14571_v15 = vpack.c.bf16 %v14567_v49, %v14565_v10  ;;  %12270 = vmatprep.subr.msk.bf16.mxu0 %vm14625_vm13, %v15579_v55  ;;  %vm6298_vm1 = vcmp.eq.s32.totalorder %v6282_v29, %v13640_v34 }
0x1e01   :  { %12262 = vmatpush3.bf16.msra.mxu1 %v14571_v15 }
0x1e02   :  { %12263 = vmatprep.subr.bf16.mxu1 %v15581_v36 }
0x1e04   :  { %11374 = vmatmul.mubr.msk.f32.vlgmr.msra.gmra.mrb[114].mxu1 %vm15559_vm14, %v12871_v63  ;;  %v6283_v63 = vand.u32 7, %v13649_v39 }
0x1e05   :  { %12265 = vmatpush3.bf16.msra.mxu1 %v14571_v15  ;;  %11380 = vmatprep.mubr.msk.f32.mxu1 %vm15560_vm3, %v15572_v62 }
0x1e06   :  { %11383 = vmatprep.subr.bf16.mxu1 %v15572_v62 }
0x1e08   :  { %11381 = vmatmul.mubr.msk.f32.vlgmr.msra.gmra.mrb[116].mxu1 %vm15559_vm14, %v12872_v53  ;;  %vm6299_vm14 = vcmp.eq.s32.totalorder %v6283_v63, %v13640_v34  ;;  %v6284_v53 = vand.u32 7, %v13652_v40  ;;  %v6288_v63 = vand.u32 7, %v13688_v59 }
0x1e09   :  { %11384 = vmatpush3.bf16.msra.mxu1 %v12873_v21  ;;  %11399 = vmatprep.mubr.msk.bf16.mxu1 %vm15560_vm3, %v15572_v62  ;;  %v6285_v21 = vand.u32 7, %v13656_v41  ;;  %vm14638_vm2 = vmpackc.low %vm6299_vm14, %vm6298_vm1 }
0x1e0a   :  { %11385 = vmatprep.subr.bf16.mxu1 %v15572_v62  ;;  %vm6300_vm0 = vcmp.eq.s32.totalorder %v6284_v53, %v13640_v34  ;;  %v6289_v53 = vand.u32 7, %v13691_v60  ;;  %vm6304_vm5 = vcmp.eq.s32.totalorder %v6288_v63, %v13640_v34  ;;  %v6295_v63 = vand.u32 7, %v13759_v13 }
0x1e0b   :  { %vm6301_vm3 = vcmp.eq.s32.totalorder %v6285_v21, %v13640_v34 }
0x1e0c   :  { %vm14653_vm14 = vmpackc.low %vm6301_vm3, %vm6300_vm0  ;;  %vm15704_vm3 = vmmov 0   ;;  %vm6305_vm10 = vcmp.eq.s32.totalorder %v6289_v53, %v13640_v34  ;;  %v12883_v53 = vld [vmem:[%s15537_s8 + $0x88] sm:$0xff]   ;;  %vm6311_vm7 = vcmp.eq.s32.totalorder %v6295_v63, %v13640_v34  ;;  %v12889_v63 = vld [vmem:[%s15537_s8 + $0xb8] sm:$0xff]  }
0x1e0d   :  { %11386 = vmatpush3.bf16.msra.mxu1 %v12874_v23 }
0x1e0e   :  { %11387 = vmatprep.subr.bf16.mxu1 %v15572_v62 }
0x1e11   :  { %11388 = vmatpush3.bf16.msra.mxu1 %v12875_v25 }
0x1e12   :  { %11389 = vmatprep.subr.bf16.mxu1 %v15572_v62 }
0x1e15   :  { %11390 = vmatpush3.bf16.msra.mxu1 %v12876_v24 }
0x1e16   :  { %11391 = vmatprep.subr.bf16.mxu1 %v15572_v62 }
0x1e19   :  { %11392 = vmatpush3.bf16.msra.mxu1 %v12877_v30 }
0x1e1a   :  { %11393 = vmatprep.subr.bf16.mxu1 %v15572_v62 }
0x1e1d   :  { %11394 = vmatpush3.bf16.msra.mxu1 %v12878_v20  ;;  %v6286_v20 = vand.u32 7, %v13659_v42 }
0x1e1e   :  { %11395 = vmatprep.subr.bf16.mxu1 %v15572_v62 }
0x1e1f   :  { %vm6302_vm1 = vcmp.eq.s32.totalorder %v6286_v20, %v13640_v34  ;;  %v6292_v20 = vand.u32 7, %v13742_v8 }
0x1e21   :  { %11396 = vmatpush3.bf16.msra.mxu1 %v12879_v18  ;;  %v6287_v18 = vand.u32 7, %v13662_v43 }
0x1e22   :  { %11397 = vmatprep.subr.bf16.mxu1 %v15572_v62 }
0x1e23   :  { %vm6303_vm8 = vcmp.eq.s32.totalorder %v6287_v18, %v13640_v34  ;;  %v6293_v18 = vand.u32 7, %v13745_v9 }
0x1e24   :  { %vm14670_vm0 = vmpackc.low %vm6303_vm8, %vm6302_vm1  ;;  %vm15709_vm1 = vcmask 130048  }
0x1e25   :  { %11398 = vmatpush3.bf16.msra.mxu1 %v12880_v50  ;;  %vm14685_vm8 = vmpackc.low %vm6305_vm10, %vm6304_vm5  ;;  %vm6308_vm5 = vcmp.eq.s32.totalorder %v6292_v20, %v13640_v34  ;;  %v12885_v20 = vld [vmem:[%s15537_s8 + $0x98] sm:$0xff]  }
0x1e26   :  { %12266 = vmatprep.subr.bf16.mxu1 %v15581_v36 }
0x1ed7   :  { %v5992_v23 = vpop.f32.mrb[114].mxu1 }
0x1ed8   :  { %v5996_v25 = vpack.c.bf16 %v5992_v23, %v5992_v23  ;;  %v11375_v24 = vpop.f32.mrb[115].mxu1  ;;  %v6291_v23 = vand.u32 7, %v13709_v2 }
0x1ed9   :  { %v12881_v24 = vld [vmem:[%s15536_s7 + $0x20] sm:$0xff] }
0x1eda   :  { %11420 = vmatmul.mubr.bf16.vlgmr.msra.gmra.mrb[76].mxu0 %v5996_v25  ;;  %vm6307_vm11 = vcmp.eq.s32.totalorder %v6291_v23, %v13640_v34  ;;  %v12884_v23 = vld [vmem:[%s15537_s8 + $0x90] sm:$0xff]  }
0x1edb   :  { %12272 = vmatpush3.bf16.msk.msra.mxu0 %vm14625_vm13, %v15579_v55  ;;  %v6065_v50 = vpop.f32.mrb[116].mxu1  ;;  %11482 = vmatprep.mubr.f32.mxu0 %v13379_v44 }
0x1edc   :  { %v6069_v28 = vpack.c.bf16 %v6065_v50, %v6065_v50  ;;  %12274 = vmatprep.subr.msk.bf16.mxu0 %vm14638_vm2, %v15579_v55  ;;  %v11382_v0 = vpop.f32.mrb[117].mxu1  ;;  %v12882_v50 = vld [vmem:[%s15537_s8 + $0x80] sm:$0xff]  }
0x1edd   :  { %v6294_v0 = vand.u32 7, %v13756_v12 }
0x1ede   :  { %11400 = vmatmul.mubr.bf16.vlgmr.msra.gmra.mrb[120].mxu1 %v6069_v28  ;;  %v15710_v28 = vmov 0 }
0x1edf   :  { %12268 = vmatpush3.bf16.msra.mxu1 %v14571_v15  ;;  %12276 = vmatpush3.bf16.msk.msra.mxu0 %vm14638_vm2, %v15579_v55  ;;  %v6290_v15 = vand.u32 7, %v13706_v1 }
0x1ee0   :  { %12278 = vmatprep.subr.msk.bf16.mxu0 %vm14653_vm14, %v15579_v55  ;;  %11427 = vmatprep.mubr.msk.f32.mxu1 %vm15704_vm3, %v15572_v62 }
0x1ee1   :  { %11430 = vmatprep.subr.bf16.mxu1 %v15572_v62  ;;  %vm6306_vm4 = vcmp.eq.s32.totalorder %v6290_v15, %v13640_v34  ;;  %v15712_v15 = vmov 0 }
0x1ee2   :  { %vm14707_vm10 = vmpackc.low %vm6307_vm11, %vm6306_vm4  ;;  %vm6310_vm4 = vcmp.eq.s32.totalorder %v6294_v0, %v13640_v34  ;;  %v12888_v0 = vld [vmem:[%s15537_s8 + $0xb0] sm:$0xff]  }
0x1ee3   :  { %12280 = vmatpush3.bf16.msk.msra.mxu0 %vm14653_vm14, %v15579_v55  ;;  %v15711_v28 = vsel %vm14707_vm10, 4294967295, %v15710_v28 }
0x1ee4   :  { %12282 = vmatprep.subr.msk.bf16.mxu0 %vm14670_vm0, %v15579_v55 }
0x1ee6   :  { %11428 = vmatmul.mubr.msk.f32.vlgmr.msra.gmra.mrb[118].mxu1 %vm15709_vm1, %v12881_v24  ;;  %vm6309_vm1 = vcmp.eq.s32.totalorder %v6293_v18, %v13640_v34  ;;  %v15714_v24 = vmov 0  ;;  %v12886_v18 = vld [vmem:[%s15537_s8 + $0xa0] sm:$0xff]  }
0x1ee7   :  { %12284 = vmatpush3.bf16.msk.msra.mxu0 %vm14670_vm0, %v15579_v55  ;;  %11431 = vmatpush3.bf16.msra.mxu1 %v12882_v50  ;;  %vm14727_vm11 = vmpackc.low %vm6309_vm1, %vm6308_vm5  ;;  %v12887_v50 = vld [vmem:[%s15537_s8 + $0xa8] sm:$0xff]  }
0x1ee8   :  { %12286 = vmatprep.subr.msk.bf16.mxu0 %vm14685_vm8, %v15579_v55  ;;  %11432 = vmatprep.subr.bf16.mxu1 %v15572_v62  ;;  %v15713_v15 = vsel %vm14727_vm11, 4294967295, %v15712_v15  ;;  %vm14743_vm5 = vmpackc.low %vm6311_vm7, %vm6310_vm4 }
0x1ee9   :  { %11446 = vmatprep.mubr.msk.bf16.mxu1 %vm15704_vm3, %v15572_v62  ;;  %v15715_v24 = vsel %vm14743_vm5, 4294967295, %v15714_v24 }
0x1eeb   :  { %12288 = vmatpush3.bf16.msk.msra.mxu0 %vm14685_vm8, %v15579_v55  ;;  %11433 = vmatpush3.bf16.msra.mxu1 %v12883_v53 }
0x1eec   :  { %12290 = vmatprep.subr.msk.bf16.mxu0 %vm14707_vm10, %v15579_v55  ;;  %11434 = vmatprep.subr.bf16.mxu1 %v15572_v62 }
0x1eef   :  { %12292 = vmatpush3.bf16.msk.msra.mxu0 %vm14707_vm10, %v15579_v55  ;;  %11435 = vmatpush3.bf16.msra.mxu1 %v12884_v23 }
0x1ef0   :  { %12294 = vmatprep.subr.msk.bf16.mxu0 %vm14727_vm11, %v15579_v55  ;;  %11436 = vmatprep.subr.bf16.mxu1 %v15572_v62 }
0x1ef3   :  { %12296 = vmatpush3.bf16.msk.msra.mxu0 %vm14727_vm11, %v15579_v55  ;;  %11437 = vmatpush3.bf16.msra.mxu1 %v12885_v20 }
0x1ef4   :  { %12298 = vmatprep.subr.msk.bf16.mxu0 %vm14743_vm5, %v15579_v55  ;;  %11438 = vmatprep.subr.bf16.mxu1 %v15572_v62 }
0x1ef7   :  { %12300 = vmatpush3.bf16.msk.msra.mxu0 %vm14743_vm5, %v15579_v55  ;;  %11439 = vmatpush3.bf16.msra.mxu1 %v12886_v18 }
0x1ef8   :  { %11440 = vmatprep.subr.bf16.mxu1 %v15572_v62  ;;  %12308 = vmatprep.subr.msk.bf16.mxu0 %vm14625_vm13, %v15579_v55 }
0x1efa   :  { %11483 = vmatmul.mubr.f32.vlgmr.msra.gmra.mrb[66].mxu0 %v13383_v46 }
0x1efb   :  { %11485 = vmatprep.mubr.f32.mxu0 %v13385_v47  ;;  %11441 = vmatpush3.bf16.msra.mxu1 %v12887_v50 }
0x1efc   :  { %11442 = vmatprep.subr.bf16.mxu1 %v15572_v62  ;;  %12310 = vmatpush3.bf16.msk.msra.mxu0 %vm14625_vm13, %v15579_v55 }
0x1efd   :  { %12312 = vmatprep.subr.msk.bf16.mxu0 %vm14638_vm2, %v15579_v55 }
0x1efe   :  { %11486 = vmatmul.mubr.f32.gmra.mrb[80].mxu0 %v13381_v45 }
0x1eff   :  { %11443 = vmatpush3.bf16.msra.mxu1 %v12888_v0 }
0x1f00   :  { %11444 = vmatprep.subr.bf16.mxu1 %v15572_v62  ;;  %12314 = vmatpush3.bf16.msk.msra.mxu0 %vm14638_vm2, %v15579_v55 }
0x1f01   :  { %12316 = vmatprep.subr.msk.bf16.mxu0 %vm14653_vm14, %v15579_v55 }
0x1f03   :  { %11445 = vmatpush3.bf16.msra.mxu1 %v12889_v63 }
0x1f04   :  { %12301 = vmatprep.subr.bf16.mxu1 %v15581_v36  ;;  %12318 = vmatpush3.bf16.msk.msra.mxu0 %vm14653_vm14, %v15579_v55 }
0x1f05   :  { %12320 = vmatprep.subr.msk.bf16.mxu0 %vm14670_vm0, %v15579_v55 }
0x1f08   :  { %12322 = vmatpush3.bf16.msk.msra.mxu0 %vm14670_vm0, %v15579_v55 }
0x1f09   :  { %12324 = vmatprep.subr.msk.bf16.mxu0 %vm14685_vm8, %v15579_v55 }
0x1f0c   :  { %12326 = vmatpush3.bf16.msk.msra.mxu0 %vm14685_vm8, %v15579_v55 }
0x1f0d   :  { %12328 = vmatprep.subr.msk.bf16.mxu0 %vm14707_vm10, %v15579_v55 }
0x1f10   :  { %12330 = vmatpush3.bf16.msk.msra.mxu0 %vm14707_vm10, %v15579_v55 }
0x1f11   :  { %12332 = vmatprep.subr.msk.bf16.mxu0 %vm14727_vm11, %v15579_v55 }
0x1f14   :  { %12334 = vmatpush3.bf16.msk.msra.mxu0 %vm14727_vm11, %v15579_v55 }
0x1f15   :  { %12336 = vmatprep.subr.msk.bf16.mxu0 %vm14743_vm5, %v15579_v55 }
0x1f18   :  { %12338 = vmatpush3.bf16.msk.msra.mxu0 %vm14743_vm5, %v15579_v55  ;;  %v6344_v55 = vmul.u32 16, %v13635_v32 }
0x1f19   :  { %12377 = vmatprep.subr.bf16.mxu0 %v15581_v36  ;;  %v6346_v36 = vmul.u32 16, %v13806_v58 }
0x1f1a   :  { %vm6345_vm7 = vcmp.ge.s32.totalorder %v13640_v34, %v6344_v55  ;;  %v15719_v55 = vmov 0 }
0x1f1b   :  { %vm6347_vm1 = vcmp.lt.s32.totalorder %v13640_v34, %v6346_v36  ;;  %v6510_v36 = vand.u32 7, %v13640_v34 }
0x1f1c   :  { %vm6348_vm4 = vmand %vm6345_vm7, %vm6347_vm1 }
0x1f1d   :  { %vm14845_vm12 = vcmp.eq.s32.totalorder %v6510_v36, %v13635_v32 }
0x1f1e   :  { %v15720_v55 = vsel %vm14845_vm12, 4294967295, %v15719_v55 }
0x1fad   :  { %v6144_v53 = vpop.f32.mrb[76].mxu0 }
0x1fae   :  { %v11421_v23 = vpop.f32.mrb[77].mxu0 }
0x1faf   :  { %v6147_v20 = vpop.f32.mrb[78].mxu0 }
0x1fb0   :  { %v11422_v18 = vpop.f32.mrb[79].mxu0 }
0x1fb1   :  { %v6104_v50 = vpop.f32.mrb[120].mxu1 }
0x1fb2   :  { %v6145_v0 = vadd.f32 %v6144_v53, %v6104_v50  ;;  %v11401_v63 = vpop.f32.mrb[121].mxu1 }
0x1fb3   :  { %v6107_v62 = vpop.f32.mrb[122].mxu1 }
0x1fb4   :  { %v11402_v5 = vpop.f32.mrb[123].mxu1 }
0x1fb9   :  { %v6218_v22 = vpop.f32.mrb[118].mxu1 }
0x1fba   :  { %v6222_v48 = vpack.c.bf16 %v6218_v22, %v6218_v22  ;;  %v11429_v11 = vpop.f32.mrb[119].mxu1  ;;  %v15717_v22 = vmov 0.0|0.0  }
0x1fbc   :  { %11447 = vmatmul.mubr.bf16.vlgmr.msra.gmra.mrb[124].mxu1 %v6222_v48  ;;  %v14836_v48 = vsel %vm6348_vm4, 1.0, %v15716_v57 }
0x1fbd   :  { %11496 = vmatprep.mubr.msk.f32.mxu1 %vm15704_vm3, %v15716_v57 }
0x1fcd   :  { %v11484_v4 = vpop.f32.mrb[66].mxu0 }
0x1fce   :  { %v6417_v23 = vpop.f32.mrb[67].mxu0 }
0x1fcf   :  { %v12302_v20 = vpack.c.bf16 %v11484_v4, %v6417_v23  ;;  %v15593_v4 = vmov 1.0   ;;  %v12890_v23 = vld [vmem:[%s15538_s9] ss:$0 sm:$0xff] }
0x1fd1   :  { %v11487_v62 = vpop.f32.mrb[80].mxu0  ;;  %12303 = vmatpush3.bf16.msra.mxu1 %v12302_v20 }
0x1fd2   :  { %v6427_v5 = vpop.f32.mrb[81].mxu0  ;;  %12304 = vmatprep.subr.bf16.mxu1 %v15717_v22 }
0x1fd3   :  { %v12305_v11 = vpack.c.bf16 %v11487_v62, %v6427_v5 }
0x1fd5   :  { %12306 = vmatpush3.bf16.msra.mxu1 %v12305_v11 }
0x1fd6   :  { %11499 = vmatprep.subr.mxu1 %v15716_v57 }
0x1fd8   :  { %11497 = vmatmul.mubr.msk.f32.vlgmr.msra.gmra.mrb[128].mxu1 %vm15718_vm15, %v14836_v48  ;;  %vm15722_vm15 = vcmask 64512  }
0x1fd9   :  { %11501 = vmatprep.mubr.msk.f32.mxu1 %vm15704_vm3, %v15716_v57  ;;  %11500 = vmatpush3.msk.msra.mxu1 %vm14845_vm12, %v15593_v4 }
0x208f   :  { %v6257_v53 = vpop.f32.mrb[124].mxu1 }
0x2090   :  { %v6263_v18 = vadd.f32 %v6257_v53, %v6145_v0  ;;  %v11448_v50 = vpop.f32.mrb[125].mxu1  ;;  %v6587_v0 = vmul.u32 16, %v13640_v34  ;;  %v6592_v53 = vmul.u32 16, %v13837_v19 }
0x2091   :  { %v6260_v63 = vpop.f32.mrb[126].mxu1 }
0x2092   :  { %v6264_v20 = vadd.f32 %v12890_v23, %v6263_v18  ;;  %v11449_v62 = vpop.f32.mrb[127].mxu1  ;;  %vm6588_vm7 = vcmp.ge.s32.totalorder %v13635_v32, %v6587_v0  ;;  %vm6593_vm1 = vcmp.lt.s32.totalorder %v13635_v32, %v6592_v53  ;;  %vm6589_vm9 = vcmp.ge.s32.totalorder %v13638_v33, %v6587_v0 }
0x2093   :  { %vm6597_vm4 = vmand %vm6588_vm7, %vm6593_vm1  ;;  %vm6594_vm6 = vcmp.lt.s32.totalorder %v13638_v33, %v6592_v53  ;;  %vm6590_vm5 = vcmp.ge.s32.totalorder %v13646_v38, %v6587_v0  ;;  %vm6595_vm11 = vcmp.lt.s32.totalorder %v13646_v38, %v6592_v53  ;;  %vm6591_vm7 = vcmp.ge.s32.totalorder %v13649_v39, %v6587_v0 }
0x2094   :  { %v14855_v5 = vmax.f32 %v6264_v20, 0.0  ;;  %vm14872_vm12 = vmand %vm6589_vm9, %vm6594_vm6  ;;  %vm6596_vm1 = vcmp.lt.s32.totalorder %v13649_v39, %v6592_v53  ;;  %vm15730_vm6 = vcmask 1041408  }
0x2095   :  { %vm14880_vm10 = vmand %vm6590_vm5, %vm6595_vm11  ;;  %v14893_v7 = vsel %vm14872_vm12, 1.0, %v15716_v57 }
0x2096   :  { %15721 = vst [vmem:[#allocation29_spill] sm:$0xff] %v14855_v5  ;;  %v6266_v11 = vsub.f32 %v14855_v5, %v14033_v31  ;;  %v14899_v53 = vsel %vm14880_vm10, 1.0, %v15716_v57  ;;  %vm15731_vm9 = vmmov %vm15730_vm6  ;;  %vm15736_vm10 = vcmask 261120  }
0x2098   :  { %v6267_v36 = vmul.f32 %v6266_v11, %v6266_v11 }
0x209a   :  { %6268 = vadd.xlane.f32.xlu0 %v6267_v36 }
0x20ab   :  { %v6505_v17 = vpop.f32.mrb[128].mxu1 }
0x20ac   :  { %v14859_v14 = vmul.f32 0.00390625, %v6505_v17  ;;  %v11498_v4 = vpop.f32.mrb[129].mxu1  ;;  %v14870_v17 = vsel %vm6597_vm4, 1.0, %v15716_v57  ;;  %vm14886_vm4 = vmand %vm6591_vm7, %vm6596_vm1  ;;  %vm15738_vm7 = vnez %v15713_v15  ;;  %vm15739_vm1 = vnez %v15715_v24 }
0x20ad   :  { %v14910_v31 = vsel %vm14886_vm4, 1.0, %v15716_v57  ;;  %v15741_v24 = vmov 1.0   ;;  %vm15745_vm4 = vmmov %vm15730_vm6 }
0x20ae   :  { %11502 = vmatmul.mubr.msk.f32.vlgmr.msra.gmra.mrb[130].mxu1 %vm15722_vm15, %v14859_v14  ;;  %vm15725_vm15 = vcmask 15360  }
0x20af   :  { %11506 = vmatprep.mubr.msk.f32.mxu1 %vm15725_vm15, %v14870_v17  ;;  %vm15732_vm11 = vmmov %vm15725_vm15  ;;  %vm15737_vm15 = vnez %v15711_v28 }
0x20b0   :  { %vm15733_vm5 = vmmov %vm15732_vm11 }
0x20b1   :  { %vm15734_vm12 = vmmov %vm15733_vm5 }
0x2127   :  { %v6269_v50 = vpop.xlane.xlu0 %6268 }
0x2128   :  { %v6270_v63 = vrot.slane %v6269_v50, 4 }
0x212a   :  { %v6271_v23 = vadd.f32 %v6270_v63, %v6269_v50 }
0x212c   :  { %v6272_v20 = vrot.slane %v6271_v23, 2 }
0x212e   :  { %v6273_v62 = vadd.f32 %v6272_v20, %v6271_v23 }
0x2130   :  { %v6274_v11 = vrot.slane %v6273_v62, 1 }
0x2132   :  { %v6275_v36 = vadd.f32 %v6274_v11, %v6273_v62 }
0x2134   :  { %12661 = vpush %v6275_v36 }
0x2165   :  { %s12662_s9 = spop %12661 }
0x2166   :  { %s6279_s17 = smul.f32 0.0009765625, %s12662_s9 }
0x2181   :  { %v6583_v5 = vpop.f32.mrb[130].mxu1 }
0x2182   :  { %11504 = vmatprep.subr.msk.mxu1 %vm15730_vm6, %v6583_v5  ;;  %v11503_v0 = vpop.f32.mrb[131].mxu1  ;;  %vm15746_vm6 = vmmov %vm15745_vm4 }
0x2183   :  { %11505 = vmatpush3.msk.msra.mxu1 %vm15731_vm9, %v6583_v5  ;;  %vm15747_vm9 = vmmov %vm15733_vm5 }
0x2184   :  { %11507 = vmatmul.mubr.msk.f32.vlgmr.msra.gmra.mrb[132].mxu1 %vm15732_vm11, %v14893_v7  ;;  %12339 = vmatprep.subr.bf16.mxu1 %v15717_v22  ;;  %vm15748_vm11 = vmmov %vm15733_vm5 }
0x2185   :  { %11509 = vmatprep.mubr.msk.f32.mxu1 %vm15733_vm5, %v14899_v53 }
0x2188   :  { %11510 = vmatmul.mubr.msk.f32.gmra.mrb[134].mxu1 %vm15734_vm12, %v14910_v31 }
0x2189   :  { %11558 = vmatprep.mubr.msk.f32.mxu1 %vm15704_vm3, %v15716_v57 }
0x2257   :  { %v11508_v5 = vpop.f32.mrb[132].mxu1 }
0x2258   :  { %v6710_v4 = vsub.f32 %v13383_v46, %v11508_v5  ;;  %v6690_v50 = vpop.f32.mrb[133].mxu1 }
0x2259   :  { %v6709_v63 = vsub.f32 %v13379_v44, %v6690_v50 }
0x225a   :  { %v6714_v62 = vmul.f32 %v6710_v4, %v6710_v4 }
0x225b   :  { %v6713_v23 = vmul.f32 %v6709_v63, %v6709_v63  ;;  %v11511_v20 = vpop.f32.mrb[134].mxu1 }
0x225c   :  { %v6712_v11 = vsub.f32 %v13381_v45, %v11511_v20  ;;  %v6700_v18 = vpop.f32.mrb[135].mxu1 }
0x225d   :  { %v6711_v36 = vsub.f32 %v13385_v47, %v6700_v18  ;;  %11544 = vmatprep.mubr.f32.mxu0 %v6713_v23  ;;  %v15735_v47 = vmov 1.0|1.0  }
0x225e   :  { %11545 = vmatmul.mubr.f32.vlgmr.msra.gmra.mrb[82].mxu0 %v6714_v62  ;;  %v6716_v6 = vmul.f32 %v6712_v11, %v6712_v11 }
0x225f   :  { %v6715_v0 = vmul.f32 %v6711_v36, %v6711_v36 }
0x2261   :  { %11547 = vmatprep.mubr.f32.mxu0 %v6715_v0 }
0x2262   :  { %11548 = vmatmul.mubr.f32.gmra.mrb[84].mxu0 %v6716_v6 }
0x2263   :  { %11607 = vmatprep.mubr.msk.f32.mxu0 %vm15704_vm3, %v15716_v57 }
0x2331   :  { %v11546_v46 = vpop.f32.mrb[82].mxu0 }
0x2332   :  { %v6783_v5 = vpop.f32.mrb[83].mxu0 }
0x2333   :  { %v12340_v44 = vpack.c.bf16 %v11546_v46, %v6783_v5 }
0x2335   :  { %v11549_v50 = vpop.f32.mrb[84].mxu0  ;;  %12341 = vmatpush3.bf16.msra.mxu1 %v12340_v44 }
0x2336   :  { %v6793_v4 = vpop.f32.mrb[85].mxu0  ;;  %12342 = vmatprep.subr.bf16.mxu1 %v15717_v22 }
0x2337   :  { %v12343_v45 = vpack.c.bf16 %v11549_v50, %v6793_v4 }
0x2339   :  { %12344 = vmatpush3.bf16.msra.mxu1 %v12343_v45 }
0x233a   :  { %12346 = vmatprep.subr.msk.bf16.mxu1 %vm14625_vm13, %v15735_v47 }
0x233c   :  { %11559 = vmatmul.mubr.msk.f32.vlgmr.msra.gmra.mrb[136].mxu1 %vm15736_vm10, %v14836_v48 }
0x233d   :  { %12348 = vmatpush3.bf16.msk.msra.mxu1 %vm14625_vm13, %v15735_v47  ;;  %11593 = vmatprep.mubr.f32.mxu1 %v14420_v16 }
0x233e   :  { %12350 = vmatprep.subr.msk.bf16.mxu1 %vm14638_vm2, %v15735_v47 }
0x2341   :  { %12352 = vmatpush3.bf16.msk.msra.mxu1 %vm14638_vm2, %v15735_v47 }
0x2342   :  { %12354 = vmatprep.subr.msk.bf16.mxu1 %vm14653_vm14, %v15735_v47 }
0x2345   :  { %12356 = vmatpush3.bf16.msk.msra.mxu1 %vm14653_vm14, %v15735_v47 }
0x2346   :  { %12358 = vmatprep.subr.msk.bf16.mxu1 %vm14670_vm0, %v15735_v47 }
0x2349   :  { %12360 = vmatpush3.bf16.msk.msra.mxu1 %vm14670_vm0, %v15735_v47 }
0x234a   :  { %12362 = vmatprep.subr.msk.bf16.mxu1 %vm14685_vm8, %v15735_v47 }
0x234d   :  { %12364 = vmatpush3.bf16.msk.msra.mxu1 %vm14685_vm8, %v15735_v47 }
0x234e   :  { %12366 = vmatprep.subr.msk.bf16.mxu1 %vm15737_vm15, %v15735_v47 }
0x2351   :  { %12368 = vmatpush3.bf16.msk.msra.mxu1 %vm15737_vm15, %v15735_v47 }
0x2352   :  { %12370 = vmatprep.subr.msk.bf16.mxu1 %vm15738_vm7, %v15735_v47 }
0x2355   :  { %12372 = vmatpush3.bf16.msk.msra.mxu1 %vm15738_vm7, %v15735_v47 }
0x2356   :  { %12374 = vmatprep.subr.msk.bf16.mxu1 %vm15739_vm1, %v15735_v47 }
0x2359   :  { %12376 = vmatpush3.bf16.msk.msra.mxu1 %vm15739_vm1, %v15735_v47 }
0x235a   :  { %12384 = vmatprep.subr.msk.bf16.mxu1 %vm14625_vm13, %v15735_v47 }
0x235c   :  { %11594 = vmatmul.mubr.f32.vlgmr.msra.gmra.mrb[138].mxu1 %v14424_v27 }
0x235d   :  { %11596 = vmatprep.mubr.f32.mxu1 %v14426_v35  ;;  %12386 = vmatpush3.bf16.msk.msra.mxu1 %vm14625_vm13, %v15735_v47  ;;  %vm15740_vm13 = vmmov %vm15736_vm10 }
0x235e   :  { %12388 = vmatprep.subr.msk.bf16.mxu1 %vm14638_vm2, %v15735_v47 }
0x2360   :  { %11597 = vmatmul.mubr.f32.gmra.mrb[140].mxu1 %v14422_v26 }
0x2361   :  { %12390 = vmatpush3.bf16.msk.msra.mxu1 %vm14638_vm2, %v15735_v47  ;;  %vm15742_vm2 = vnez %v15720_v55 }
0x2362   :  { %12392 = vmatprep.subr.msk.bf16.mxu1 %vm14653_vm14, %v15735_v47 }
0x2365   :  { %12394 = vmatpush3.bf16.msk.msra.mxu1 %vm14653_vm14, %v15735_v47  ;;  %vm15743_vm14 = vcmask 64512  }
0x2366   :  { %12396 = vmatprep.subr.msk.bf16.mxu1 %vm14670_vm0, %v15735_v47 }
0x2369   :  { %12398 = vmatpush3.bf16.msk.msra.mxu1 %vm14670_vm0, %v15735_v47  ;;  %vm7356_vm0 = vcmask 58368  }
0x236a   :  { %12400 = vmatprep.subr.msk.bf16.mxu1 %vm14685_vm8, %v15735_v47 }
0x236d   :  { %12402 = vmatpush3.bf16.msk.msra.mxu1 %vm14685_vm8, %v15735_v47  ;;  %vm15744_vm8 = vmmov %vm15733_vm5 }
0x236e   :  { %12404 = vmatprep.subr.msk.bf16.mxu1 %vm15737_vm15, %v15735_v47 }
0x2371   :  { %12406 = vmatpush3.bf16.msk.msra.mxu1 %vm15737_vm15, %v15735_v47 }
0x2372   :  { %12408 = vmatprep.subr.msk.bf16.mxu1 %vm15738_vm7, %v15735_v47 }
0x2375   :  { %12410 = vmatpush3.bf16.msk.msra.mxu1 %vm15738_vm7, %v15735_v47 }
0x2376   :  { %12412 = vmatprep.subr.msk.bf16.mxu1 %vm15739_vm1, %v15735_v47 }
0x2379   :  { %12414 = vmatpush3.bf16.msk.msra.mxu1 %vm15739_vm1, %v15735_v47 }
0x237a   :  { %12453 = vmatprep.subr.bf16.mxu1 %v15717_v22 }
0x240f   :  { %v15026_v6 = vpop.f32.mrb[136].mxu1 }
0x2410   :  { %v11560_v37 = vpop.f32.mrb[137].mxu1 }
0x242f   :  { %v11595_v30 = vpop.f32.mrb[138].mxu1 }
0x2430   :  { %v6939_v29 = vpop.f32.mrb[139].mxu1 }
0x2431   :  { %v12378_v21 = vpack.c.bf16 %v11595_v30, %v6939_v29 }
0x2433   :  { %v11598_v25 = vpop.f32.mrb[140].mxu1  ;;  %12379 = vmatpush3.bf16.msra.mxu0 %v12378_v21 }
0x2434   :  { %v6949_v28 = vpop.f32.mrb[141].mxu1  ;;  %12380 = vmatprep.subr.bf16.mxu0 %v15717_v22 }
0x2435   :  { %v12381_v15 = vpack.c.bf16 %v11598_v25, %v6949_v28 }
0x2437   :  { %12382 = vmatpush3.bf16.msra.mxu0 %v12381_v15 }
0x2438   :  { %11610 = vmatprep.subr.mxu0 %v15716_v57 }
0x243a   :  { %11608 = vmatmul.mubr.msk.f32.vlgmr.msra.gmra.mrb[86].mxu0 %vm15740_vm13, %v14836_v48 }
0x243b   :  { %11611 = vmatpush3.msk.msra.mxu0 %vm15742_vm2, %v15741_v24  ;;  %11612 = vmatprep.mubr.msk.f32.mxu0 %vm15704_vm3, %v15716_v57  ;;  %vm15753_vm2 = vcmask 261120  }
0x250d   :  { %v7024_v63 = vpop.f32.mrb[86].mxu0 }
0x250e   :  { %v7028_v23 = vmul.f32 0.00390625, %v7024_v63  ;;  %v11609_v20 = vpop.f32.mrb[87].mxu0 }
0x2510   :  { %v7354_v62 = vsub.f32 %v7028_v23, %v14859_v14  ;;  %11613 = vmatmul.mubr.msk.f32.vlgmr.msra.gmra.mrb[88].mxu0 %vm15743_vm14, %v7028_v23 }
0x2511   :  { %11617 = vmatprep.mubr.msk.f32.mxu0 %vm15744_vm8, %v14870_v17 }
0x2512   :  { %v7355_v11 = vmul.f32 %v7354_v62, %v7354_v62 }
0x2514   :  { %v7357_v18 = vsel %vm7356_vm0, %v7355_v11, 0.0 }
0x2515   :  { %7358 = vadd.xlane.f32.xlu0 %v7357_v18 }
0x25a2   :  { %v7359_v55 = vpop.xlane.xlu0 %7358 }
0x25a3   :  { %v7360_v36 = vrot.slane %v7359_v55, 4 }
0x25a5   :  { %v7361_v0 = vadd.f32 %v7360_v36, %v7359_v55  ;;  %v7407_v55 = vand.u32 15, %v13652_v40  ;;  %v7409_v40 = vand.u32 15, %v13659_v42  ;;  %v7411_v42 = vand.u32 15, %v13688_v59 }
0x25a6   :  { %v7413_v59 = vand.u32 15, %v13706_v1  ;;  %v7415_v1 = vand.u32 15, %v13742_v8  ;;  %v7417_v8 = vand.u32 15, %v13756_v12  ;;  %v15764_v12 = vmov 0 }
0x25a7   :  { %v7362_v46 = vrot.slane %v7361_v0, 2  ;;  %vm7423_vm14 = vcmp.eq.s32.totalorder %v7407_v55, %v13640_v34 }
0x25a9   :  { %v7363_v5 = vadd.f32 %v7362_v46, %v7361_v0 }
0x25ab   :  { %v7364_v44 = vrot.slane %v7363_v5, 1 }
0x25ad   :  { %v7365_v50 = vadd.f32 %v7364_v44, %v7363_v5  ;;  %v15762_v5 = vmov 0 }
0x25af   :  { %12663 = vpush %v7365_v50 }
0x25e0   :  { %s12664_s10 = spop %12663 }
0x25e1   :  { %s7369_s27 = smul.f32 0.0625, %s12664_s10 }
0x25e3   :  { %v7098_v4 = vpop.f32.mrb[88].mxu0 }
0x25e4   :  { %11615 = vmatprep.subr.msk.mxu0 %vm15745_vm4, %v7098_v4  ;;  %v11614_v14 = vpop.f32.mrb[89].mxu0 }
0x25e5   :  { %11616 = vmatpush3.msk.msra.mxu0 %vm15746_vm6, %v7098_v4  ;;  %vm7425_vm6 = vcmp.eq.s32.totalorder %v7409_v40, %v13640_v34 }
0x25e6   :  { %11618 = vmatmul.mubr.msk.f32.vlgmr.msra.gmra.mrb[90].mxu0 %vm15747_vm9, %v14893_v7  ;;  %12415 = vmatprep.subr.bf16.mxu0 %v15717_v22 }
0x25e7   :  { %11620 = vmatprep.mubr.msk.f32.mxu0 %vm15748_vm11, %v14899_v53 }
0x25ea   :  { %11621 = vmatmul.mubr.msk.f32.gmra.mrb[92].mxu0 %vm15733_vm5, %v14910_v31  ;;  %vm7427_vm5 = vcmp.eq.s32.totalorder %v7411_v42, %v13640_v34 }
0x25eb   :  { %11669 = vmatprep.mubr.msk.f32.mxu0 %vm15704_vm3, %v15716_v57 }
0x26b9   :  { %v11619_v17 = vpop.f32.mrb[90].mxu0 }
0x26ba   :  { %v7191_v45 = vsub.f32 %v14424_v27, %v11619_v17  ;;  %v7171_v37 = vpop.f32.mrb[91].mxu0  ;;  %v7403_v27 = vand.u32 15, %v13635_v32 }
0x26bb   :  { %v7190_v30 = vsub.f32 %v14420_v16, %v7171_v37  ;;  %v7404_v16 = vand.u32 15, %v13638_v33 }
0x26bc   :  { %v7195_v7 = vmul.f32 %v7191_v45, %v7191_v45  ;;  %vm7419_vm12 = vcmp.eq.s32.totalorder %v7403_v27, %v13640_v34 }
0x26bd   :  { %v7194_v29 = vmul.f32 %v7190_v30, %v7190_v30  ;;  %v11622_v21 = vpop.f32.mrb[92].mxu0  ;;  %vm7420_vm10 = vcmp.eq.s32.totalorder %v7404_v16, %v13640_v34  ;;  %v7467_v16 = vmul.u32 8, %v13635_v32 }
0x26be   :  { %v7193_v25 = vsub.f32 %v14422_v26, %v11622_v21  ;;  %v7181_v28 = vpop.f32.mrb[93].mxu0  ;;  %v7405_v26 = vand.u32 15, %v13646_v38  ;;  %vm15066_vm15 = vmpackc.low %vm7420_vm10, %vm7419_vm12  ;;  %v7408_v38 = vand.u32 15, %v13656_v41  ;;  %v7410_v41 = vand.u32 15, %v13662_v43 }
0x26bf   :  { %v7192_v53 = vsub.f32 %v14426_v35, %v7181_v28  ;;  %11655 = vmatprep.mubr.f32.mxu1 %v7194_v29  ;;  %v7406_v35 = vand.u32 15, %v13649_v39  ;;  %v7412_v43 = vand.u32 15, %v13691_v60  ;;  %v7414_v60 = vand.u32 15, %v13709_v2 }
0x26c0   :  { %11656 = vmatmul.mubr.f32.vlgmr.msra.gmra.mrb[142].mxu1 %v7195_v7  ;;  %v7197_v15 = vmul.f32 %v7193_v25, %v7193_v25  ;;  %vm7421_vm7 = vcmp.eq.s32.totalorder %v7405_v26, %v13640_v34  ;;  %vm7424_vm8 = vcmp.eq.s32.totalorder %v7408_v38, %v13640_v34  ;;  %vm7426_vm9 = vcmp.eq.s32.totalorder %v7410_v41, %v13640_v34 }
0x26c1   :  { %v7196_v31 = vmul.f32 %v7192_v53, %v7192_v53  ;;  %vm7422_vm1 = vcmp.eq.s32.totalorder %v7406_v35, %v13640_v34  ;;  %vm15094_vm4 = vmpackc.low %vm7424_vm8, %vm7423_vm14  ;;  %vm7428_vm12 = vcmp.eq.s32.totalorder %v7412_v43, %v13640_v34  ;;  %v7416_v2 = vand.u32 15, %v13745_v9 }
0x26c2   :  { %vm15077_vm13 = vmpackc.low %vm7422_vm1, %vm7421_vm7  ;;  %vm7429_vm7 = vcmp.eq.s32.totalorder %v7413_v59, %v13640_v34  ;;  %vm7430_vm1 = vcmp.eq.s32.totalorder %v7414_v60, %v13640_v34  ;;  %vm7431_vm14 = vcmp.eq.s32.totalorder %v7415_v1, %v13640_v34  ;;  %v7418_v9 = vand.u32 15, %v13759_v13 }
0x26c3   :  { %11658 = vmatprep.mubr.f32.mxu1 %v7196_v31  ;;  %vm15108_vm11 = vmpackc.low %vm7426_vm9, %vm7425_vm6  ;;  %vm7432_vm8 = vcmp.eq.s32.totalorder %v7416_v2, %v13640_v34  ;;  %vm7433_vm9 = vcmp.eq.s32.totalorder %v7417_v8, %v13640_v34  ;;  %v6872_v13 = vmul.f32 0.00390625, %v15026_v6  ;;  %v7703_v2 = vmul.u32 8, %v13640_v34 }
0x26c4   :  { %11659 = vmatmul.mubr.f32.gmra.mrb[144].mxu1 %v7197_v15  ;;  %vm15122_vm10 = vmpackc.low %vm7428_vm12, %vm7427_vm5  ;;  %vm7434_vm5 = vcmp.eq.s32.totalorder %v7418_v9, %v13640_v34  ;;  %v7706_v8 = vmul.u32 8, %v13837_v19 }
0x26c5   :  { %11711 = vmatprep.mubr.msk.f32.mxu1 %vm15704_vm3, %v15716_v57  ;;  %vm15150_vm6 = vmpackc.low %vm7432_vm8, %vm7431_vm14  ;;  %v7379_v44 = vadd.f32 1e-05, %v6872_v13 }
0x26c6   :  { %v15763_v5 = vsel %vm15150_vm6, 4294967295, %v15762_v5  ;;  %vm15162_vm12 = vmpackc.low %vm7434_vm5, %vm7433_vm9  ;;  %vm7468_vm9 = vcmp.ge.s32.totalorder %v13640_v34, %v7467_v16 }
0x26c7   :  { %v15765_v12 = vsel %vm15162_vm12, 4294967295, %v15764_v12  ;;  %12800 = vrsqrt.f32 %v7379_v44  ;;  %v7385_v25 = vand.u32 2147483648, %v7379_v44  ;;  %vm7384_vm8 = vcmp.eq.f32.partialorder %v7379_v44, 0.0 }
0x26d1   :  { %v12801_v45 = vpop.eup %12800 }
0x26d2   :  { %v7381_v37 = vmul.f32 %v12801_v45, %v7379_v44 }
0x2793   :  { %v11657_v24 = vpop.f32.mrb[142].mxu1 }
0x2794   :  { %v7264_v63 = vpop.f32.mrb[143].mxu1 }
0x2795   :  { %v12416_v23 = vpack.c.bf16 %v11657_v24, %v7264_v63  ;;  %v7469_v24 = vmul.u32 8, %v13806_v58  ;;  %v7623_v58 = vand.u32 15, %v13640_v34 }
0x2797   :  { %v11660_v20 = vpop.f32.mrb[144].mxu1  ;;  %12417 = vmatpush3.bf16.msra.mxu0 %v12416_v23  ;;  %vm7470_vm5 = vcmp.lt.s32.totalorder %v13640_v34, %v7469_v24 }
0x2798   :  { %v7274_v62 = vpop.f32.mrb[145].mxu1  ;;  %12418 = vmatprep.subr.bf16.mxu0 %v15717_v22 }
0x2799   :  { %v12419_v11 = vpack.c.bf16 %v11660_v20, %v7274_v62  ;;  %v15767_v20 = vmov 0  ;;  %v15769_v62 = vmov 0 }
0x279b   :  { %12420 = vmatpush3.bf16.msra.mxu0 %v12419_v11 }
0x279c   :  { %12422 = vmatprep.subr.msk.bf16.mxu0 %vm15066_vm15, %v15735_v47 }
0x279e   :  { %11670 = vmatmul.mubr.msk.f32.vlgmr.msra.gmra.mrb[94].mxu0 %vm15753_vm2, %v14836_v48  ;;  %vm15136_vm2 = vmpackc.low %vm7430_vm1, %vm7429_vm7  ;;  %vm7382_vm7 = vcmp.eq.f32.partialorder %v7379_v44, inf }
0x279f   :  { %12424 = vmatpush3.bf16.msk.msra.mxu0 %vm15066_vm15, %v15735_v47  ;;  %11704 = vmatprep.mubr.f32.mxu0 %v13508_v54  ;;  %v7383_v21 = vsel %vm7382_vm7, %v7379_v44, %v7381_v37  ;;  %vm7471_vm7 = vmand %vm7468_vm9, %vm7470_vm5  ;;  %vm7704_vm5 = vcmp.ge.s32.totalorder %v13635_v32, %v7703_v2 }
0x27a0   :  { %12426 = vmatprep.subr.msk.bf16.mxu0 %vm15077_vm13, %v15735_v47  ;;  %v7386_v53 = vsel %vm7384_vm8, %v7385_v25, %v7383_v21  ;;  %v15232_v35 = vsel %vm7471_vm7, 1.0, %v15716_v57  ;;  %vm7707_vm7 = vcmp.lt.s32.totalorder %v13635_v32, %v7706_v8 }
0x27a3   :  { %12428 = vmatpush3.bf16.msk.msra.mxu0 %vm15077_vm13, %v15735_v47 }
0x27a4   :  { %12430 = vmatprep.subr.msk.bf16.mxu0 %vm15094_vm4, %v15735_v47 }
0x27a7   :  { %12432 = vmatpush3.bf16.msk.msra.mxu0 %vm15094_vm4, %v15735_v47 }
0x27a8   :  { %12434 = vmatprep.subr.msk.bf16.mxu0 %vm15108_vm11, %v15735_v47 }
0x27ab   :  { %12436 = vmatpush3.bf16.msk.msra.mxu0 %vm15108_vm11, %v15735_v47 }
0x27ac   :  { %12438 = vmatprep.subr.msk.bf16.mxu0 %vm15122_vm10, %v15735_v47 }
0x27af   :  { %12440 = vmatpush3.bf16.msk.msra.mxu0 %vm15122_vm10, %v15735_v47 }
0x27b0   :  { %12442 = vmatprep.subr.msk.bf16.mxu0 %vm15136_vm2, %v15735_v47 }
0x27b3   :  { %12444 = vmatpush3.bf16.msk.msra.mxu0 %vm15136_vm2, %v15735_v47 }
0x27b4   :  { %12446 = vmatprep.subr.msk.bf16.mxu0 %vm15150_vm6, %v15735_v47 }
0x27b7   :  { %12448 = vmatpush3.bf16.msk.msra.mxu0 %vm15150_vm6, %v15735_v47 }
0x27b8   :  { %12450 = vmatprep.subr.msk.bf16.mxu0 %vm15162_vm12, %v15735_v47 }
0x27bb   :  { %12452 = vmatpush3.bf16.msk.msra.mxu0 %vm15162_vm12, %v15735_v47 }
0x27bc   :  { %12460 = vmatprep.subr.msk.bf16.mxu0 %vm15066_vm15, %v15735_v47 }
0x27be   :  { %11705 = vmatmul.mubr.f32.vlgmr.msra.gmra.mrb[96].mxu0 %v13506_v52 }
0x27bf   :  { %12462 = vmatpush3.bf16.msk.msra.mxu0 %vm15066_vm15, %v15735_v47 }
0x27c0   :  { %12464 = vmatprep.subr.msk.bf16.mxu0 %vm15077_vm13, %v15735_v47 }
0x27c3   :  { %12466 = vmatpush3.bf16.msk.msra.mxu0 %vm15077_vm13, %v15735_v47 }
0x27c4   :  { %12468 = vmatprep.subr.msk.bf16.mxu0 %vm15094_vm4, %v15735_v47 }
0x27c7   :  { %12470 = vmatpush3.bf16.msk.msra.mxu0 %vm15094_vm4, %v15735_v47 }
0x27c8   :  { %12472 = vmatprep.subr.msk.bf16.mxu0 %vm15108_vm11, %v15735_v47 }
0x27cb   :  { %12474 = vmatpush3.bf16.msk.msra.mxu0 %vm15108_vm11, %v15735_v47 }
0x27cc   :  { %12476 = vmatprep.subr.msk.bf16.mxu0 %vm15122_vm10, %v15735_v47 }
0x27cf   :  { %12478 = vmatpush3.bf16.msk.msra.mxu0 %vm15122_vm10, %v15735_v47 }
0x27d0   :  { %12480 = vmatprep.subr.msk.bf16.mxu0 %vm15136_vm2, %v15735_v47 }
0x27d3   :  { %12482 = vmatpush3.bf16.msk.msra.mxu0 %vm15136_vm2, %v15735_v47 }
0x27d4   :  { %12484 = vmatprep.subr.msk.bf16.mxu0 %vm15150_vm6, %v15735_v47 }
0x27d7   :  { %12486 = vmatpush3.bf16.msk.msra.mxu0 %vm15150_vm6, %v15735_v47 }
0x27d8   :  { %12488 = vmatprep.subr.msk.bf16.mxu0 %vm15162_vm12, %v15735_v47 }
0x27db   :  { %12490 = vmatpush3.bf16.msk.msra.mxu0 %vm15162_vm12, %v15735_v47  ;;  %vm15772_vm12 = vcmask 15360  }
0x27dc   :  { %12526 = vmatprep.subr.bf16.mxu0 %v15717_v22 }
0x2871   :  { %v7349_v50 = vpop.f32.mrb[94].mxu0 }
0x2872   :  { %v7353_v4 = vmul.f32 0.00390625, %v7349_v50  ;;  %v11671_v14 = vpop.f32.mrb[95].mxu0 }
0x2874   :  { %v7371_v17 = vadd.f32 1e-05, %v7353_v4 }
0x2876   :  { %12802 = vrsqrt.f32 %v7371_v17  ;;  %vm7374_vm1 = vcmp.eq.f32.partialorder %v7371_v17, inf  ;;  %v7377_v7 = vand.u32 2147483648, %v7371_v17  ;;  %vm7376_vm14 = vcmp.eq.f32.partialorder %v7371_v17, 0.0 }
0x2880   :  { %v12803_v30 = vpop.eup %12802 }
0x2881   :  { %v7373_v29 = vmul.f32 %v12803_v30, %v7371_v17 }
0x2883   :  { %v7375_v28 = vsel %vm7374_vm1, %v7371_v17, %v7373_v29  ;;  %vm15241_vm1 = vcmp.eq.s32.totalorder %v7623_v58, %v13635_v32 }
0x2884   :  { %v7378_v6 = vsel %vm7376_vm14, %v7377_v7, %v7375_v28  ;;  %v15768_v20 = vsel %vm15241_vm1, 4294967295, %v15767_v20  ;;  %vm15246_vm14 = vcmp.eq.s32.totalorder %v7623_v58, %v13638_v33 }
0x2885   :  { %v7387_v31 = vsub.f32 %v7378_v6, %v7386_v53  ;;  %v15770_v62 = vsel %vm15246_vm14, 4294967295, %v15769_v62  ;;  %vm15611_vm8 = vmpackc.low %vm15246_vm14, %vm15241_vm1  ;;  %vm7708_vm1 = vcmp.lt.s32.totalorder %v13638_v33, %v7706_v8 }
0x2887   :  { %v7388_v15 = vmul.f32 %v7387_v31, %v7387_v31 }
0x2889   :  { %v7389_v27 = vsel %vm7356_vm0, %v7388_v15, 0.0  ;;  %vm15766_vm0 = vcmask 130048  }
0x288a   :  { %7390 = vadd.xlane.f32.xlu1 %v7389_v27  ;;  %vm15771_vm9 = vmmov %vm15766_vm0 }
0x2891   :  { %v11706_v63 = vpop.f32.mrb[96].mxu0 }
0x2892   :  { %v7540_v23 = vpop.f32.mrb[97].mxu0 }
0x2893   :  { %v12454_v26 = vpack.c.bf16 %v11706_v63, %v7540_v23 }
0x2895   :  { %12455 = vmatpush3.bf16.msra.mxu1 %v12454_v26 }
0x2896   :  { %12456 = vmatprep.subr.bf16.mxu1 %v15717_v22 }
0x2898   :  { %11712 = vmatmul.mubr.msk.f32.vlgmr.msra.gmra.mrb[146].mxu1 %vm15766_vm0, %v15232_v35  ;;  %vm7709_vm0 = vmand %vm7704_vm5, %vm7707_vm7  ;;  %vm15781_vm7 = vnez %v15770_v62 }
0x2899   :  { %11718 = vmatprep.mubr.msk.f32.mxu1 %vm15704_vm3, %v15716_v57  ;;  %12458 = vmatpush3.bf16.msk.msra.mxu1 %vm15611_vm8, %v15735_v47  ;;  %vm7705_vm8 = vcmp.ge.s32.totalorder %v13638_v33, %v7703_v2  ;;  %v9588_v9 = vsel %vm7709_vm0, 1.0, %v15716_v57  ;;  %vm15775_vm5 = vmmov %vm15772_vm12  ;;  %vm15782_vm0 = vnez %v15768_v20 }
0x289a   :  { %vm7710_vm14 = vmand %vm7705_vm8, %vm7708_vm1  ;;  %vm15778_vm1 = vnez %v15765_v12 }
0x289b   :  { %v15273_v44 = vsel %vm7710_vm14, 1.0, %v15716_v57  ;;  %vm15779_vm14 = vmmov %vm15775_vm5 }
0x2917   :  { %v7391_v11 = vpop.xlane.xlu1 %7390 }
0x2918   :  { %v7392_v55 = vrot.slane %v7391_v11, 4 }
0x291a   :  { %v7393_v38 = vadd.f32 %v7392_v55, %v7391_v11  ;;  %v15799_v11 = vld [vmem:[#allocation22_spill] sm:$0xff]  ;;  %v15801_v55 = vld [vmem:[#allocation29_spill] sm:$0xff] }
0x291c   :  { %v7394_v40 = vrot.slane %v7393_v38, 2 }
0x291e   :  { %v7395_v41 = vadd.f32 %v7394_v40, %v7393_v38 }
0x2920   :  { %v7396_v42 = vrot.slane %v7395_v41, 1 }
0x2922   :  { %v7397_v43 = vadd.f32 %v7396_v42, %v7395_v41 }
0x2924   :  { %12665 = vpush %v7397_v43 }
0x2955   :  { %s12666_s30 = spop %12665 }
0x2956   :  { %s7401_s23 = smul.f32 0.0625, %s12666_s30 }
0x2958   :  { %s7402_s13 = sadd.f32 %s7401_s23, %s7369_s27 }
0x296b   :  { %v7618_v59 = vpop.f32.mrb[146].mxu1 }
0x296c   :  { %v15260_v60 = vmul.f32 0.015625, %v7618_v59  ;;  %v11713_v1 = vpop.f32.mrb[147].mxu1 }
0x296e   :  { %11719 = vmatmul.mubr.msk.f32.vlgmr.msra.gmra.mrb[148].mxu1 %vm15771_vm9, %v15260_v60  ;;  %vm15773_vm9 = vcmask 1041408  }
0x296f   :  { %11723 = vmatprep.mubr.msk.f32.mxu1 %vm15772_vm12, %v9588_v9  ;;  %vm15774_vm6 = vmmov %vm15773_vm9  ;;  %vm15777_vm12 = vnez %v15763_v5 }
0x2a41   :  { %v7699_v13 = vpop.f32.mrb[148].mxu1 }
0x2a42   :  { %11721 = vmatprep.subr.msk.mxu1 %vm15773_vm9, %v7699_v13  ;;  %v11720_v34 = vpop.f32.mrb[149].mxu1  ;;  %vm15783_vm9 = vmpackc.low %vm15781_vm7, %vm15782_vm0  ;;  %vm15800_vm0 = vnez %v15799_v11 }
0x2a43   :  { %11722 = vmatpush3.msk.msra.mxu1 %vm15774_vm6, %v7699_v13  ;;  %vm15776_vm6 = vcmask 130048  }
0x2a44   :  { %11724 = vmatmul.mubr.msk.f32.vlgmr.msra.gmra.mrb[150].mxu1 %vm15775_vm5, %v15273_v44  ;;  %12491 = vmatprep.subr.bf16.mxu1 %v15717_v22  ;;  %vm15780_vm8 = vmmov %vm15776_vm6 }
0x2a45   :  { %11765 = vmatprep.mubr.msk.f32.mxu1 %vm15704_vm3, %v15716_v57  ;;  %vm15784_vm5 = vmmov %vm15776_vm6 }
0x2b17   :  { %v11725_v32 = vpop.f32.mrb[150].mxu1 }
0x2b18   :  { %v7800_v33 = vsub.f32 %v13506_v52, %v11725_v32  ;;  %v7790_v19 = vpop.f32.mrb[151].mxu1 }
0x2b19   :  { %v7799_v50 = vsub.f32 %v13508_v54, %v7790_v19 }
0x2b1a   :  { %v7802_v14 = vmul.f32 %v7800_v33, %v7800_v33 }
0x2b1b   :  { %v7801_v4 = vmul.f32 %v7799_v50, %v7799_v50 }
0x2b1d   :  { %11758 = vmatprep.mubr.f32.mxu0 %v7801_v4 }
0x2b1e   :  { %11759 = vmatmul.mubr.f32.vlgmr.msra.gmra.mrb[98].mxu0 %v7802_v14 }
0x2b1f   :  { %11807 = vmatprep.mubr.msk.f32.mxu0 %vm15704_vm3, %v15716_v57 }
0x2bf1   :  { %v11760_v17 = vpop.f32.mrb[98].mxu0 }
0x2bf2   :  { %v7869_v45 = vpop.f32.mrb[99].mxu0 }
0x2bf3   :  { %v12492_v37 = vpack.c.bf16 %v11760_v17, %v7869_v45  ;;  %v15802_v45 = vld [vmem:[#allocation24_spill] sm:$0xff] }
0x2bf5   :  { %12493 = vmatpush3.bf16.msra.mxu1 %v12492_v37  ;;  %v15804_v37 = vld [vmem:[#allocation23_spill] sm:$0xff] }
0x2bf6   :  { %12495 = vmatprep.subr.msk.bf16.mxu1 %vm15066_vm15, %v15735_v47 }
0x2bf8   :  { %11766 = vmatmul.mubr.msk.f32.vlgmr.msra.gmra.mrb[152].mxu1 %vm15776_vm6, %v15232_v35  ;;  %vm8398_vm6 = vcmask 123904  }
0x2bf9   :  { %12497 = vmatpush3.bf16.msk.msra.mxu1 %vm15066_vm15, %v15735_v47  ;;  %11800 = vmatprep.mubr.f32.mxu1 %v14565_v10 }
0x2bfa   :  { %12499 = vmatprep.subr.msk.bf16.mxu1 %vm15077_vm13, %v15735_v47 }
0x2bfd   :  { %12501 = vmatpush3.bf16.msk.msra.mxu1 %vm15077_vm13, %v15735_v47 }
0x2bfe   :  { %12503 = vmatprep.subr.msk.bf16.mxu1 %vm15094_vm4, %v15735_v47 }
0x2c01   :  { %12505 = vmatpush3.bf16.msk.msra.mxu1 %vm15094_vm4, %v15735_v47 }
0x2c02   :  { %12507 = vmatprep.subr.msk.bf16.mxu1 %vm15108_vm11, %v15735_v47 }
0x2c05   :  { %12509 = vmatpush3.bf16.msk.msra.mxu1 %vm15108_vm11, %v15735_v47 }
0x2c06   :  { %12511 = vmatprep.subr.msk.bf16.mxu1 %vm15122_vm10, %v15735_v47 }
0x2c09   :  { %12513 = vmatpush3.bf16.msk.msra.mxu1 %vm15122_vm10, %v15735_v47 }
0x2c0a   :  { %12515 = vmatprep.subr.msk.bf16.mxu1 %vm15136_vm2, %v15735_v47 }
0x2c0d   :  { %12517 = vmatpush3.bf16.msk.msra.mxu1 %vm15136_vm2, %v15735_v47 }
0x2c0e   :  { %12519 = vmatprep.subr.msk.bf16.mxu1 %vm15777_vm12, %v15735_v47 }
0x2c11   :  { %12521 = vmatpush3.bf16.msk.msra.mxu1 %vm15777_vm12, %v15735_v47 }
0x2c12   :  { %12523 = vmatprep.subr.msk.bf16.mxu1 %vm15778_vm1, %v15735_v47 }
0x2c15   :  { %12525 = vmatpush3.bf16.msk.msra.mxu1 %vm15778_vm1, %v15735_v47 }
0x2c18   :  { %11801 = vmatmul.mubr.f32.vlgmr.msra.gmra.mrb[154].mxu1 %v14567_v49 }
0x2c19   :  { %11819 = vmatprep.mubr.msk.f32.mxu1 %vm15779_vm14, %v9588_v9 }
0x2ccb   :  { %v15339_v52 = vpop.f32.mrb[152].mxu1 }
0x2ccc   :  { %v11767_v54 = vpop.f32.mrb[153].mxu1  ;;  %v7948_v38 = vmul.f32 0.015625, %v15339_v52  ;;  %v15806_v52 = vld [vmem:[#allocation25_spill] sm:$0xff] }
0x2cce   :  { %v8421_v40 = vadd.f32 1e-05, %v7948_v38 }
0x2cd0   :  { %12804 = vrsqrt.f32 %v8421_v40 }
0x2ceb   :  { %v11802_v30 = vpop.f32.mrb[154].mxu1 }
0x2cec   :  { %v8015_v29 = vpop.f32.mrb[155].mxu1 }
0x2ced   :  { %v12527_v21 = vpack.c.bf16 %v11802_v30, %v8015_v29 }
0x2cef   :  { %12528 = vmatpush3.bf16.msra.mxu0 %v12527_v21 }
0x2cf0   :  { %12529 = vmatprep.subr.bf16.mxu0 %v15717_v22 }
0x2cf2   :  { %11808 = vmatmul.mubr.msk.f32.vlgmr.msra.gmra.mrb[100].mxu0 %vm15780_vm8, %v15232_v35 }
0x2cf3   :  { %12531 = vmatpush3.bf16.msk.msra.mxu0 %vm15783_vm9, %v15735_v47  ;;  %11814 = vmatprep.mubr.msk.f32.mxu0 %vm15704_vm3, %v15716_v57  ;;  %vm8424_vm9 = vcmp.eq.f32.partialorder %v8421_v40, inf }
0x2cf4   :  { %12533 = vmatprep.subr.msk.bf16.mxu0 %vm15066_vm15, %v15735_v47 }
0x2dc5   :  { %v8090_v7 = vpop.f32.mrb[100].mxu0 }
0x2dc6   :  { %v8094_v25 = vmul.f32 0.015625, %v8090_v7  ;;  %v11809_v28 = vpop.f32.mrb[101].mxu0 }
0x2dc8   :  { %v8396_v6 = vsub.f32 %v8094_v25, %v15260_v60  ;;  %11815 = vmatmul.mubr.msk.f32.vlgmr.msra.gmra.mrb[102].mxu0 %vm15784_vm5, %v8094_v25  ;;  %v12805_v60 = vpop.eup %12804 }
0x2dc9   :  { %12535 = vmatpush3.bf16.msk.msra.mxu0 %vm15066_vm15, %v15735_v47  ;;  %vm15785_vm15 = vcmask 1041408   ;;  %v8423_v1 = vmul.f32 %v12805_v60, %v8421_v40 }
0x2dca   :  { %v8397_v53 = vmul.f32 %v8396_v6, %v8396_v6  ;;  %12537 = vmatprep.subr.msk.bf16.mxu0 %vm15077_vm13, %v15735_v47 }
0x2dcb   :  { %v8425_v9 = vsel %vm8424_vm9, %v8421_v40, %v8423_v1  ;;  %vm15809_vm9 = vcmask 261120  }
0x2dcc   :  { %v8399_v31 = vsel %vm8398_vm6, %v8397_v53, 0.0 }
0x2dcd   :  { %8400 = vadd.xlane.f32.xlu1 %v8399_v31  ;;  %12539 = vmatpush3.bf16.msk.msra.mxu0 %vm15077_vm13, %v15735_v47  ;;  %vm15786_vm13 = vmmov %vm15785_vm15 }
0x2dce   :  { %12541 = vmatprep.subr.msk.bf16.mxu0 %vm15094_vm4, %v15735_v47 }
0x2dd1   :  { %12543 = vmatpush3.bf16.msk.msra.mxu0 %vm15094_vm4, %v15735_v47  ;;  %vm15787_vm4 = vmmov %vm15779_vm14 }
0x2dd2   :  { %12545 = vmatprep.subr.msk.bf16.mxu0 %vm15108_vm11, %v15735_v47 }
0x2dd5   :  { %12547 = vmatpush3.bf16.msk.msra.mxu0 %vm15108_vm11, %v15735_v47  ;;  %vm15788_vm11 = vmmov %vm15784_vm5 }
0x2dd6   :  { %12549 = vmatprep.subr.msk.bf16.mxu0 %vm15122_vm10, %v15735_v47 }
0x2dd9   :  { %12551 = vmatpush3.bf16.msk.msra.mxu0 %vm15122_vm10, %v15735_v47  ;;  %vm15789_vm10 = vnez %v15627_v51 }
0x2dda   :  { %12553 = vmatprep.subr.msk.bf16.mxu0 %vm15136_vm2, %v15735_v47 }
0x2ddd   :  { %12555 = vmatpush3.bf16.msk.msra.mxu0 %vm15136_vm2, %v15735_v47  ;;  %vm15790_vm2 = vnez %v15629_v56 }
0x2dde   :  { %12557 = vmatprep.subr.msk.bf16.mxu0 %vm15777_vm12, %v15735_v47 }
0x2de1   :  { %12559 = vmatpush3.bf16.msk.msra.mxu0 %vm15777_vm12, %v15735_v47  ;;  %vm15791_vm12 = vnez %v15631_v61 }
0x2de2   :  { %12561 = vmatprep.subr.msk.bf16.mxu0 %vm15778_vm1, %v15735_v47 }
0x2de5   :  { %12563 = vmatpush3.bf16.msk.msra.mxu0 %vm15778_vm1, %v15735_v47  ;;  %vm15792_vm1 = vnez %v15633_v3 }
0x2de6   :  { %11899 = vmatprep.subr.mxu0 %v15716_v57 }
0x2e5a   :  { %v8401_v18 = vpop.xlane.xlu1 %8400 }
0x2e5b   :  { %v8402_v39 = vrot.slane %v8401_v18, 4 }
0x2e5d   :  { %v8403_v48 = vadd.f32 %v8402_v39, %v8401_v18  ;;  %v15808_v18 = vld [vmem:[#allocation27_spill] sm:$0xff] }
0x2e5f   :  { %v8404_v36 = vrot.slane %v8403_v48, 2 }
0x2e61   :  { %v8405_v0 = vadd.f32 %v8404_v36, %v8403_v48 }
0x2e63   :  { %v8406_v46 = vrot.slane %v8405_v0, 1 }
0x2e65   :  { %v8407_v15 = vadd.f32 %v8406_v46, %v8405_v0 }
0x2e67   :  { %12667 = vpush %v8407_v15 }
0x2e98   :  { %s12668_s5 = spop %12667 }
0x2e99   :  { %s8411_s18 = smul.f32 0.03125, %s12668_s5 }
0x2e9b   :  { %v8164_v5 = vpop.f32.mrb[102].mxu0  ;;  %s8412_s25 = sadd.f32 %s8411_s18, %s7402_s13 }
0x2e9c   :  { %11817 = vmatprep.subr.msk.mxu1 %vm15785_vm15, %v8164_v5  ;;  %v11816_v27 = vpop.f32.mrb[103].mxu0 }
0x2e9d   :  { %11818 = vmatpush3.msk.msra.mxu1 %vm15786_vm13, %v8164_v5  ;;  %vm8426_vm13 = vcmp.eq.f32.partialorder %v8421_v40, 0.0 }
0x2e9e   :  { %11820 = vmatmul.mubr.msk.f32.vlgmr.msra.gmra.mrb[156].mxu1 %vm15787_vm4, %v15273_v44  ;;  %12564 = vmatprep.subr.bf16.mxu1 %v15717_v22  ;;  %v8427_v44 = vand.u32 2147483648, %v8421_v40  ;;  %vm15803_vm4 = vcmask 64512  }
0x2e9f   :  { %11861 = vmatprep.mubr.msk.f32.mxu1 %vm15704_vm3, %v15716_v57 }
0x2ea0   :  { %v8428_v33 = vsel %vm8426_vm13, %v8427_v44, %v8425_v9  ;;  %vm15812_vm13 = vcmask 15360  }
0x2f71   :  { %v11821_v12 = vpop.f32.mrb[156].mxu1 }
0x2f72   :  { %v8247_v16 = vsub.f32 %v14567_v49, %v11821_v12  ;;  %v8237_v24 = vpop.f32.mrb[157].mxu1  ;;  %v15795_v49 = vld [vmem:[#allocation20_spill] sm:$0xff] }
0x2f73   :  { %v8246_v63 = vsub.f32 %v14565_v10, %v8237_v24  ;;  %v15793_v10 = vld [vmem:[#allocation19_spill] sm:$0xff]  ;;  %vm15796_vm8 = vnez %v15795_v49 }
0x2f74   :  { %v8249_v26 = vmul.f32 %v8247_v16, %v8247_v16  ;;  %vm15794_vm14 = vnez %v15793_v10 }
0x2f75   :  { %v8248_v23 = vmul.f32 %v8246_v63, %v8246_v63 }
0x2f77   :  { %11854 = vmatprep.mubr.f32.mxu0 %v8248_v23  ;;  %v15811_v23 = vld [vmem:[#allocation26_spill] sm:$0xff] }
0x2f78   :  { %11855 = vmatmul.mubr.f32.vlgmr.msra.gmra.mrb[104].mxu0 %v8249_v26 }
0x2f79   :  { %11901 = vmatprep.mubr.msk.f32.mxu0 %vm15704_vm3, %v15716_v57 }
0x304b   :  { %v11856_v58 = vpop.f32.mrb[104].mxu0 }
0x304c   :  { %v8316_v20 = vpop.f32.mrb[105].mxu0 }
0x304d   :  { %v12565_v62 = vpack.c.bf16 %v11856_v58, %v8316_v20 }
0x304f   :  { %12566 = vmatpush3.bf16.msra.mxu1 %v12565_v62 }
0x3050   :  { %12567 = vmatprep.subr.bf16.mxu1 %v15717_v22 }
0x3052   :  { %11862 = vmatmul.mubr.msk.f32.vlgmr.msra.gmra.mrb[158].mxu1 %vm15788_vm11, %v15232_v35  ;;  %v15797_v35 = vld [vmem:[#allocation21_spill] sm:$0xff]  ;;  %vm15805_vm11 = vnez %v15804_v37 }
0x3053   :  { %12569 = vmatpush3.bf16.msk.msra.mxu1 %vm15789_vm10, %v15735_v47  ;;  %11896 = vmatprep.mubr.msk.f32.mxu1 %vm15704_vm3, %v15716_v57  ;;  %vm15798_vm7 = vnez %v15797_v35 }
0x3054   :  { %12570 = vmatprep.subr.bf16.mxu1 %v15717_v22 }
0x3057   :  { %12572 = vmatpush3.bf16.msk.msra.mxu1 %vm15790_vm2, %v15735_v47 }
0x3058   :  { %12573 = vmatprep.subr.bf16.mxu1 %v15717_v22 }
0x305b   :  { %12575 = vmatpush3.bf16.msk.msra.mxu1 %vm15791_vm12, %v15735_v47 }
0x305c   :  { %12576 = vmatprep.subr.bf16.mxu1 %v15717_v22 }
0x305f   :  { %12578 = vmatpush3.bf16.msk.msra.mxu1 %vm15792_vm1, %v15735_v47 }
0x3060   :  { %12579 = vmatprep.subr.bf16.mxu1 %v15717_v22 }
0x3063   :  { %12581 = vmatpush3.bf16.msk.msra.mxu1 %vm15794_vm14, %v15735_v47 }
0x3064   :  { %12582 = vmatprep.subr.bf16.mxu1 %v15717_v22 }
0x3067   :  { %12584 = vmatpush3.bf16.msk.msra.mxu1 %vm15796_vm8, %v15735_v47 }
0x3068   :  { %12585 = vmatprep.subr.bf16.mxu1 %v15717_v22 }
0x306b   :  { %12587 = vmatpush3.bf16.msk.msra.mxu1 %vm15798_vm7, %v15735_v47 }
0x306c   :  { %12588 = vmatprep.subr.bf16.mxu1 %v15717_v22 }
0x306f   :  { %12590 = vmatpush3.bf16.msk.msra.mxu1 %vm15800_vm0, %v15735_v47 }
0x3070   :  { %11915 = vmatprep.subr.mxu1 %v15716_v57 }
0x3072   :  { %11897 = vmatmul.mubr.f32.vlgmr.msra.gmra.mrb[160].mxu1 %v15801_v55 }
0x3073   :  { %11917 = vmatprep.mubr.msk.f32.mxu1 %vm15704_vm3, %v15716_v57 }
0x3125   :  { %v8391_v41 = vpop.f32.mrb[158].mxu1 }
0x3126   :  { %v8395_v42 = vmul.f32 0.015625, %v8391_v41  ;;  %v11863_v43 = vpop.f32.mrb[159].mxu1 }
0x3128   :  { %v8413_v59 = vadd.f32 1e-05, %v8395_v42 }
0x312a   :  { %12806 = vrsqrt.f32 %v8413_v59  ;;  %vm8416_vm5 = vcmp.eq.f32.partialorder %v8413_v59, inf  ;;  %v8419_v13 = vand.u32 2147483648, %v8413_v59  ;;  %vm8418_vm15 = vcmp.eq.f32.partialorder %v8413_v59, 0.0 }
0x3134   :  { %v12807_v2 = vpop.eup %12806 }
0x3135   :  { %v8415_v8 = vmul.f32 %v12807_v2, %v8413_v59 }
0x3137   :  { %v8417_v34 = vsel %vm8416_vm5, %v8413_v59, %v8415_v8  ;;  %vm8877_vm5 = vcmask 254976  }
0x3138   :  { %v8420_v32 = vsel %vm8418_vm15, %v8419_v13, %v8417_v34  ;;  %vm15810_vm15 = vcmask 1041408  }
0x3139   :  { %v8429_v19 = vsub.f32 %v8420_v32, %v8428_v33 }
0x313b   :  { %v8430_v50 = vmul.f32 %v8429_v19, %v8429_v19 }
0x313d   :  { %v8431_v4 = vsel %vm8398_vm6, %v8430_v50, 0.0  ;;  %vm15807_vm6 = vnez %v15806_v52 }
0x313e   :  { %8432 = vadd.xlane.f32.xlu0 %v8431_v4 }
0x3145   :  { %v8511_v14 = vpop.f32.mrb[160].mxu1 }
0x3146   :  { %v11898_v17 = vpop.f32.mrb[161].mxu1  ;;  %11900 = vmatpush3.msra.mxu0 %v8511_v14 }
0x3147   :  { %11902 = vmatmul.mubr.msk.f32.vlgmr.msra.gmra.mrb[106].mxu0 %vm15803_vm4, %v15802_v45  ;;  %12591 = vmatprep.subr.bf16.mxu0 %v15717_v22 }
0x3148   :  { %12593 = vmatpush3.bf16.msk.msra.mxu0 %vm15805_vm11, %v15735_v47  ;;  %11912 = vmatprep.mubr.msk.f32.mxu0 %vm15704_vm3, %v15716_v57 }
0x3149   :  { %12594 = vmatprep.subr.bf16.mxu0 %v15717_v22 }
0x314c   :  { %12596 = vmatpush3.bf16.msk.msra.mxu0 %vm15807_vm6, %v15735_v47 }
0x314d   :  { %11955 = vmatprep.subr.mxu0 %v15716_v57 }
0x31cb   :  { %v8433_v54 = vpop.xlane.xlu0 %8432 }
0x31cc   :  { %v8434_v30 = vrot.slane %v8433_v54, 4 }
0x31ce   :  { %v8435_v29 = vadd.f32 %v8434_v30, %v8433_v54 }
0x31d0   :  { %v8436_v21 = vrot.slane %v8435_v29, 2 }
0x31d2   :  { %v8437_v7 = vadd.f32 %v8436_v21, %v8435_v29 }
0x31d4   :  { %v8438_v25 = vrot.slane %v8437_v7, 1 }
0x31d6   :  { %v8439_v28 = vadd.f32 %v8438_v25, %v8437_v7 }
0x31d8   :  { %12669 = vpush %v8439_v28 }
0x3209   :  { %s12670_s2 = spop %12669 }
0x320a   :  { %s8443_s0 = smul.f32 0.03125, %s12670_s2 }
0x320c   :  { %s8444_s12 = sadd.f32 %s8443_s0, %s8412_s25 }
0x321a   :  { %v8581_v6 = vpop.f32.mrb[106].mxu0 }
0x321b   :  { %v8585_v53 = vmul.f32 0.0625, %v8581_v6  ;;  %v11903_v31 = vpop.f32.mrb[107].mxu0 }
0x321d   :  { %v8875_v39 = vsub.f32 %v8585_v53, %v15808_v18  ;;  %11913 = vmatmul.mubr.msk.f32.vlgmr.msra.gmra.mrb[108].mxu0 %vm15809_vm9, %v8585_v53 }
0x321e   :  { %11957 = vmatprep.mubr.msk.f32.mxu0 %vm15704_vm3, %v15716_v57 }
0x321f   :  { %v8876_v48 = vmul.f32 %v8875_v39, %v8875_v39 }
0x3221   :  { %v8878_v36 = vsel %vm8877_vm5, %v8876_v48, 0.0 }
0x3222   :  { %8879 = vadd.xlane.f32.xlu1 %v8878_v36 }
0x32af   :  { %v8880_v0 = vpop.xlane.xlu1 %8879 }
0x32b0   :  { %v8881_v46 = vrot.slane %v8880_v0, 4 }
0x32b2   :  { %v8882_v15 = vadd.f32 %v8881_v46, %v8880_v0 }
0x32b4   :  { %v8883_v5 = vrot.slane %v8882_v15, 2 }
0x32b6   :  { %v8884_v27 = vadd.f32 %v8883_v5, %v8882_v15 }
0x32b8   :  { %v8885_v12 = vrot.slane %v8884_v27, 1 }
0x32ba   :  { %v8886_v16 = vadd.f32 %v8885_v12, %v8884_v27 }
0x32bc   :  { %12671 = vpush %v8886_v16 }
0x32ed   :  { %s12672_s6 = spop %12671 }
0x32ee   :  { %s8890_s24 = smul.f32 0.015625, %s12672_s6 }
0x32f0   :  { %v8655_v24 = vpop.f32.mrb[108].mxu0  ;;  %s8891_s14 = sadd.f32 %s8890_s24, %s8444_s12 }
0x32f1   :  { %11916 = vmatpush3.msk.msra.mxu1 %vm15810_vm15, %v8655_v24  ;;  %v11914_v63 = vpop.f32.mrb[109].mxu0 }
0x32f2   :  { %11918 = vmatmul.mubr.msk.f32.vlgmr.msra.gmra.mrb[162].mxu1 %vm15812_vm13, %v15811_v23  ;;  %12597 = vmatprep.subr.bf16.mxu1 %v15717_v22 }
0x32f3   :  { %12599 = vmatpush3.bf16.msk.msra.mxu1 %vm15789_vm10, %v15735_v47  ;;  %11952 = vmatprep.mubr.msk.f32.mxu1 %vm15704_vm3, %v15716_v57  ;;  %vm15813_vm3 = vmmov %vm15803_vm4 }
0x32f4   :  { %12600 = vmatprep.subr.bf16.mxu1 %v15717_v22 }
0x32f7   :  { %12602 = vmatpush3.bf16.msk.msra.mxu1 %vm15790_vm2, %v15735_v47 }
0x32f8   :  { %12603 = vmatprep.subr.bf16.mxu1 %v15717_v22 }
0x32fb   :  { %12605 = vmatpush3.bf16.msk.msra.mxu1 %vm15791_vm12, %v15735_v47 }
0x32fc   :  { %12606 = vmatprep.subr.bf16.mxu1 %v15717_v22 }
0x32ff   :  { %12608 = vmatpush3.bf16.msk.msra.mxu1 %vm15792_vm1, %v15735_v47 }
0x3300   :  { %12609 = vmatprep.subr.bf16.mxu1 %v15717_v22 }
0x3303   :  { %12611 = vmatpush3.bf16.msk.msra.mxu1 %vm15794_vm14, %v15735_v47 }
0x3304   :  { %12612 = vmatprep.subr.bf16.mxu1 %v15717_v22 }
0x3307   :  { %12614 = vmatpush3.bf16.msk.msra.mxu1 %vm15796_vm8, %v15735_v47 }
0x3308   :  { %12615 = vmatprep.subr.bf16.mxu1 %v15717_v22 }
0x330b   :  { %12617 = vmatpush3.bf16.msk.msra.mxu1 %vm15798_vm7, %v15735_v47 }
0x330c   :  { %12618 = vmatprep.subr.bf16.mxu1 %v15717_v22 }
0x330f   :  { %12620 = vmatpush3.bf16.msk.msra.mxu1 %vm15800_vm0, %v15735_v47 }
0x33c5   :  { %v8728_v51 = vpop.f32.mrb[162].mxu1 }
0x33c6   :  { %v8732_v56 = vsub.f32 %v15801_v55, %v8728_v51  ;;  %v11919_v61 = vpop.f32.mrb[163].mxu1  ;;  %v15814_v55 = vld [vmem:[#allocation28_spill] sm:$0xff] }
0x33c8   :  { %v8733_v3 = vmul.f32 %v8732_v56, %v8732_v56 }
0x33ca   :  { %11953 = vmatmul.mubr.f32.vlgmr.msra.gmra.mrb[164].mxu1 %v8733_v3 }
0x349d   :  { %v8800_v57 = vpop.f32.mrb[164].mxu1 }
0x349e   :  { %v11954_v26 = vpop.f32.mrb[165].mxu1  ;;  %11956 = vmatpush3.msra.mxu0 %v8800_v57 }
0x349f   :  { %11958 = vmatmul.mubr.msk.f32.vlgmr.msra.gmra.mrb[110].mxu0 %vm15813_vm3, %v15802_v45 }
0x3572   :  { %v8870_v58 = vpop.f32.mrb[110].mxu0 }
0x3573   :  { %v8874_v20 = vmul.f32 0.0625, %v8870_v58  ;;  %v11959_v62 = vpop.f32.mrb[111].mxu0 }
0x3575   :  { %v8892_v22 = vadd.f32 1e-05, %v8874_v20 }
0x3577   :  { %12808 = vrsqrt.f32 %v8892_v22  ;;  %vm8895_vm10 = vcmp.eq.f32.partialorder %v8892_v22, inf  ;;  %v8898_v47 = vand.u32 2147483648, %v8892_v22  ;;  %vm8897_vm2 = vcmp.eq.f32.partialorder %v8892_v22, 0.0 }
0x3581   :  { %v12809_v10 = vpop.eup %12808 }
0x3582   :  { %v8894_v49 = vmul.f32 %v12809_v10, %v8892_v22 }
0x3584   :  { %v8896_v35 = vsel %vm8895_vm10, %v8892_v22, %v8894_v49 }
0x3585   :  { %v8899_v11 = vsel %vm8897_vm2, %v8898_v47, %v8896_v35 }
0x3586   :  { %v8900_v38 = vsub.f32 %v8899_v11, %v15814_v55 }
0x3588   :  { %v8901_v40 = vmul.f32 %v8900_v38, %v8900_v38 }
0x358a   :  { %v8902_v41 = vsel %vm8877_vm5, %v8901_v40, 0.0 }
0x358b   :  { %8903 = vadd.xlane.f32.xlu0 %v8902_v41 }
0x3618   :  { %v8904_v42 = vpop.xlane.xlu0 %8903 }
0x3619   :  { %v8905_v43 = vrot.slane %v8904_v42, 4 }
0x361b   :  { %v8906_v59 = vadd.f32 %v8905_v43, %v8904_v42 }
0x361d   :  { %v8907_v60 = vrot.slane %v8906_v59, 2 }
0x361f   :  { %v8908_v1 = vadd.f32 %v8907_v60, %v8906_v59 }
0x3621   :  { %v8909_v2 = vrot.slane %v8908_v1, 1 }
0x3623   :  { %v8910_v8 = vadd.f32 %v8909_v2, %v8908_v1 }
0x3625   :  { %12673 = vpush %v8910_v8 }
0x3656   :  { %s12674_s7 = spop %12673 }
0x3657   :  { %s8914_s21 = smul.f32 0.015625, %s12674_s7 }
0x3659   :  { %s8915_s3 = sadd.f32 %s8914_s21, %s8891_s14 }
0x365b   :  { %s8916_s28 = smul.f32 10.0, %s8915_s3 }
0x365d   :  { %s8917_s11 = sadd.f32 %s8916_s28, %s6279_s17 }
0x365f   :  { %8919 = sst [smem:[#allocation13]] %s8917_s11 }
0x3660   :  { %13032 = shalt.err (!%p13029_p8)
}
0x3661   :  { %s13058_s8 = smov [#allocation13]  }
0x3662   :  { %8927 = dma.smem_to_hbm %s13058_s8, 16, %s15548_s19, [#allocation4]  }
0x3663   :  { %13041 = dma.done.wait [#allocation4], 16  }
0x3664   :  { %13042 = vsyncadd [#allocation4], 4294967280 }
0x3665   :  { %8931 = sfence }
0x3666   :  { %8932 = vsyncpa [#allocation3], 1 }
0x3667   :  { %8933 = vsyncpa [#allocation6], 1 }
0x3668   :  { %8934 = vsyncpa [#allocation9], 1 }
0x3669   :  { %8935 = vsyncpa [#allocation12], 1 }
0x366a   :  { %8936 = vsyncpa [#allocation4], 1 }

</bundles_post_ra>
